<compile_context>
chip_gen: v7x
topology: tpu7x:2x2x1
jax: 0.10.0
libtpu: 0.0.40
codegen_flags: <defaults>
</compile_context>

<pallas_src>
import functools

import jax
import jax.numpy as jnp
from jax import lax
from jax.experimental import pallas as pl
from jax.experimental.pallas import tpu as pltpu


# ---------------------------------------------------------------------------
# Fused kernel: one grid step == one group of G molecules (block-diagonal batch)
# ---------------------------------------------------------------------------
def _fused_adj_mat_seer_kernel(
        dm_x_ref, nodes_x_ref, adm_ref, aadj_ref,
        w1d_ref, b1d_ref, w2d_ref, b2d_ref, w3d_ref, b3d_ref,
        wdr_ref, bdr_ref, blk_ref, csel_ref, rexp_ref, wc_ref, bc_ref,
        w1_ref, b1_ref, w2_ref, b2_ref, w3_ref, b3_ref, w4_ref, b4_ref,
        wr_ref, br_ref,
        out_ref, *, G, D, E):
    f32 = jnp.float32
    cdt = w1d_ref.dtype          # matmul-operand dtype (bf16 fast path / f32 check path)
    GD = G * D

    def gcn(x, a_hat, w_ref, b_ref):
        # relu( A_hat @ (x W + b) );  A_hat = D^-1/2 A D^-1/2 precomputed in XLA.
        xw = jnp.dot(x.astype(cdt), w_ref[...], preferred_element_type=f32) + b_ref[...]
        z = jnp.dot(a_hat, xw.astype(cdt), preferred_element_type=f32)
        return jnp.maximum(z, 0.0)

    # ---- distance-matrix GCN branch ----
    a_dm = adm_ref[...]
    h = gcn(dm_x_ref[...], a_dm, w1d_ref, b1d_ref)
    h = gcn(h, a_dm, w2d_ref, b2d_ref)
    h = gcn(h, a_dm, w3d_ref, b3d_ref)                                    # (GD, H)

    # dm_resize: one scalar per node, produced in lane-dense row layout (1, GD).
    hw_row = lax.dot_general(wdr_ref[...], h.astype(cdt),
                             (((1,), (1,)), ((), ())),
                             preferred_element_type=f32) + bdr_ref[...]   # (1, GD)

    # nodes_coord_fc, per graph:
    #   emb_g[g, d]        = hw_row[0, g*D + d]
    #   full_g[g, d*E + e] = sum_i emb_g[g, i] * Wc[i, d*E + e] + bc[d*E + e]
    #   nw[g*D + d, e]     = full_g[g, d*E + e]
    # All selection / scatter matrices are tiny precomputed 0/1 constants, so this is
    # only MXU matmuls + elementwise (no in-kernel reshape / iota / concatenate).
    ksel = blk_ref[...] * hw_row.astype(cdt)                              # (G, GD)
    emb_g = jnp.dot(ksel, csel_ref[...], preferred_element_type=f32)      # (G, D)
    full_g = (jnp.dot(emb_g.astype(cdt), wc_ref[...],
                      preferred_element_type=f32) + bc_ref[...])          # (G, D*E)

    rexp = rexp_ref[...]                                                  # (GD, D*G)
    nw = jnp.zeros((GD, E), f32)
    for d in range(D):                                                    # D tiny matmuls
        sl = full_g[:, d * E:(d + 1) * E].astype(cdt)                     # (G, E)
        nw = nw + jnp.dot(rexp[:, d * G:(d + 1) * G], sl,
                          preferred_element_type=f32)                     # (GD, E)

    merged = nodes_x_ref[...] + nw                                        # (GD, E) f32

    # ---- adjacency GCN branch ----
    a_adj = aadj_ref[...]
    c = gcn(merged, a_adj, w1_ref, b1_ref)
    c = gcn(c, a_adj, w2_ref, b2_ref)
    c = gcn(c, a_adj, w3_ref, b3_ref)
    c = gcn(c, a_adj, w4_ref, b4_ref)                                     # (GD, H)

    out_ref[...] = (jnp.dot(c.astype(cdt), wr_ref[...], preferred_element_type=f32)
                    + br_ref[...]).astype(out_ref.dtype)                  # (GD, NP)


# ---------------------------------------------------------------------------
# Wrapper
# ---------------------------------------------------------------------------
def _default_group_rows():
    """Target stacked rows per grid step: 256 fills the 2x256^2 MXU on v6e/v7x,
    128 matches the v5e (and unknown-gen) 128x128 MXU tiles."""
    try:
        kind = jax.devices()[0].device_kind.lower()
    except Exception:
        kind = ""
    return 256 if ("v6" in kind or "v7" in kind) else 128


def adj_mat_seer_forward(elements, dist_mat, adj_mat, p, *,
                         group_size=None, compute_dtype=jnp.bfloat16):
    B, D = elements.shape
    E = p["nodes_embedding"].shape[1]
    H = p["w_gcn1"].shape[1]
    NBT = p["b_resize"].shape[1] // D
    cdt = compute_dtype

    # ---- block-diagonal batching: G molecules per grid step ----
    if group_size is None:
        group_size = max(1, _default_group_rows() // D)
    G = max(1, int(group_size))
    while (G * D) % 8 != 0:          # keep the stacked row dim sublane-aligned
        G += 1
    B_pad = ((B + G - 1) // G) * G
    pad = B_pad - B
    if pad:
        # Padded graphs gather embedding row 0 but have all-zero adjacency, so their
        # GCN rows are exactly 0 and never leak into real graphs (block-diagonal);
        # their output rows are sliced off below.
        elements = jnp.pad(elements, ((0, pad), (0, 0)))
        dist_mat = jnp.pad(dist_mat, ((0, pad), (0, 0), (0, 0)))
        adj_mat = jnp.pad(adj_mat, ((0, pad), (0, 0), (0, 0)))
    num_groups = B_pad // G
    GD = G * D

    # Lane-dense output columns (unmasked full-lane stores); pad sliced off after.
    NP = ((D * NBT + 127) // 128) * 128

    # ---- XLA-side prep: embedding gathers + normalized block-diagonal adjacency ----
    dm_x = jnp.take(p["dm_nodes_embedding"], elements, axis=0).reshape(B_pad * D, E).astype(cdt)
    nodes_x = jnp.take(p["nodes_embedding"], elements, axis=0).reshape(B_pad * D, E).astype(jnp.float32)

    def norm_block_diag(a):
        # Symmetric normalization in f32, then block-diagonal per group, then cast.
        a = a.astype(jnp.float32)
        deg = a.sum(-1)
        inv = lax.rsqrt(jnp.maximum(deg, 1e-12))
        a_n = inv[..., :, None] * a * inv[..., None, :]            # (B_pad, D, D)
        a_n = a_n.reshape(num_groups, G, D, D)
        eye = jnp.eye(G, dtype=jnp.float32)
        bd = jnp.einsum("ngij,gh->ngihj", a_n, eye).reshape(B_pad * D, GD)
        return bd.astype(cdt)

    a_dm = norm_block_diag(dist_mat)
    a_adj = norm_block_diag(adj_mat)

    # ---- tiny 0/1 selection constants for the nodes_coord_fc path ----
    r = jnp.arange(GD)
    blk_ind = (r[None, :] // D == jnp.arange(G)[:, None]).astype(cdt)          # (G, GD)
    colsel = (r[:, None] % D == jnp.arange(D)[None, :]).astype(cdt)            # (GD, D)
    dg = jnp.arange(D * G)
    rowexp = (r[:, None] == ((dg % G) * D + dg // G)[None, :]).astype(cdt)     # (GD, D*G)

    wb = lambda k: p[k].astype(cdt)            # matmul operands
    fb = lambda k: p[k].astype(jnp.float32)    # biases stay f32

    wr_pad = jnp.pad(p["w_resize"], ((0, 0), (0, NP - D * NBT))).astype(cdt)
    br_pad = jnp.pad(p["b_resize"], ((0, 0), (0, NP - D * NBT))).astype(jnp.float32)

    weights = [
        wb("w_gcn1_dm"), fb("b_gcn1_dm"), wb("w_gcn2_dm"), fb("b_gcn2_dm"),
        wb("w_gcn3_dm"), fb("b_gcn3_dm"),
        wb("w_dm_resize"), fb("b_dm_resize"),
        blk_ind, colsel, rowexp, wb("w_coord"), fb("b_coord"),
        wb("w_gcn1"), fb("b_gcn1"), wb("w_gcn2"), fb("b_gcn2"),
        wb("w_gcn3"), fb("b_gcn3"), wb("w_gcn4"), fb("b_gcn4"),
        wr_pad, br_pad,
    ]

    data_specs = [
        pl.BlockSpec((GD, E), lambda i: (i, 0)),
        pl.BlockSpec((GD, E), lambda i: (i, 0)),
        pl.BlockSpec((GD, GD), lambda i: (i, 0)),
        pl.BlockSpec((GD, GD), lambda i: (i, 0)),
    ]
    # Weights / constants are grid-invariant (constant index maps -> no re-DMA per step).
    weight_specs = [pl.BlockSpec(w.shape, lambda i: (0, 0)) for w in weights]

    # Advisory cost estimate for XLA's scheduler.
    def _gcn_macs(fin):
        return GD * fin * H + GD * GD * H
    macs_per_group = (2 * _gcn_macs(E) + 5 * _gcn_macs(H)          # 7 GCN layers total
                      + GD * H                                      # dm_resize
                      + G * GD * D + G * D * (D * E)                # emb_g + full_g
                      + D * GD * G * E                              # row scatter
                      + GD * H * NP)                                # resize
    bytes_acc = sum(int(a.size) * a.dtype.itemsize
                    for a in [dm_x, nodes_x, a_dm, a_adj] + weights)
    bytes_acc += B_pad * D * NP * 4
    cost = pl.CostEstimate(flops=int(2 * macs_per_group * num_groups),
                           transcendentals=0,
                           bytes_accessed=int(bytes_acc))

    kernel = functools.partial(_fused_adj_mat_seer_kernel, G=G, D=D, E=E)
    out = pl.pallas_call(
        kernel,
        out_shape=jax.ShapeDtypeStruct((B_pad * D, NP), jnp.float32),
        grid=(num_groups,),
        in_specs=data_specs + weight_specs,
        out_specs=pl.BlockSpec((GD, NP), lambda i: (i, 0)),
        compiler_params=pltpu.CompilerParams(dimension_semantics=("parallel",)),
        cost_estimate=cost,
    )(dm_x, nodes_x, a_dm, a_adj, *weights)

    # Pure layout + elementwise epilogue stays in XLA.
    scaled = out[: B * D, : D * NBT].reshape(B, D, D, NBT)
    return scaled + jnp.transpose(scaled, (0, 2, 1, 3))


# ---------------------------------------------------------------------------
# Deterministic synthetic parameters (shapes follow the PyTorch __init__)
# ---------------------------------------------------------------------------
def init_params(key, D, E, H, NBT, num_embeddings):
    keys = iter(jax.random.split(key, 32))

    def lin(in_f, out_f):
        w = jax.random.normal(next(keys), (in_f, out_f), jnp.float32) / jnp.sqrt(
            jnp.float32(in_f))
        b = 0.01 * jax.random.normal(next(keys), (1, out_f), jnp.float32)
        return w, b

    p = {}
    p["dm_nodes_embedding"] = jax.random.normal(next(keys), (num_embeddings, E), jnp.float32)
    p["nodes_embedding"] = jax.random.normal(next(keys), (num_embeddings, E), jnp.float32)
    p["w_gcn1_dm"], p["b_gcn1_dm"] = lin(E, H)
    p["w_gcn2_dm"], p["b_gcn2_dm"] = lin(H, H)
    p["w_gcn3_dm"], p["b_gcn3_dm"] = lin(H, H)
    # dm_resize keeps PyTorch (out, in) = (1, H) layout
    p["w_dm_resize"] = jax.random.normal(next(keys), (1, H), jnp.float32) / jnp.sqrt(
        jnp.float32(H))
    p["b_dm_resize"] = 0.01 * jax.random.normal(next(keys), (1, 1), jnp.float32)
    p["w_coord"], p["b_coord"] = lin(D, D * E)
    p["w_gcn1"], p["b_gcn1"] = lin(E, H)
    p["w_gcn2"], p["b_gcn2"] = lin(H, H)
    p["w_gcn3"], p["b_gcn3"] = lin(H, H)
    p["w_gcn4"], p["b_gcn4"] = lin(H, H)
    p["w_resize"], p["b_resize"] = lin(H, D * NBT)
    return p


# ---------------------------------------------------------------------------
# Pure-JAX reference (semantics identical to the PyTorch module)
# ---------------------------------------------------------------------------
def reference_forward(elements, dist_mat, adj_mat, p):
    B, D = elements.shape
    E = p["nodes_embedding"].shape[1]
    NBT = p["b_resize"].shape[1] // D

    def l_norm(a):
        deg = a.sum(-1)
        inv = lax.rsqrt(jnp.maximum(deg, 1e-12))
        return inv[..., :, None] * a * inv[..., None, :]

    def gcn(x, ln, w, b):
        return jnp.einsum("bij,bjk->bik", ln, x @ w + b)

    relu = lambda x: jnp.maximum(x, 0.0)

    dm_emb = p["dm_nodes_embedding"][elements]
    dm_ln = l_norm(dist_mat)
    h = relu(gcn(dm_emb, dm_ln, p["w_gcn1_dm"], p["b_gcn1_dm"]))
    h = relu(gcn(h, dm_ln, p["w_gcn2_dm"], p["b_gcn2_dm"]))
    h = relu(gcn(h, dm_ln, p["w_gcn3_dm"], p["b_gcn3_dm"]))
    emb = (h @ p["w_dm_resize"].T + p["b_dm_resize"])[..., 0]        # (B, D)

    nodes_emb = p["nodes_embedding"][elements]
    nw = (emb @ p["w_coord"] + p["b_coord"]).reshape(B, D, E)
    merged = nodes_emb + nw

    ln = l_norm(adj_mat)
    c = relu(gcn(merged, ln, p["w_gcn1"], p["b_gcn1"]))
    c = relu(gcn(c, ln, p["w_gcn2"], p["b_gcn2"]))
    c = relu(gcn(c, ln, p["w_gcn3"], p["b_gcn3"]))
    c = relu(gcn(c, ln, p["w_gcn4"], p["b_gcn4"]))
    scaled = c @ p["w_resize"] + p["b_resize"]                       # (B, D, D*NBT)
    a4 = scaled.reshape(B, D, D, NBT)
    return a4 + jnp.transpose(a4, (0, 2, 1, 3))


# ---------------------------------------------------------------------------
if __name__ == "__main__":
    # Small shapes consistent with the forward pass:
    #   B=2 molecules, D=16 nodes, E=32 embedding dim, H=128 hidden, 4 bond types.
    B, D, E, H, NBT = 2, 16, 32, 128, 4
    NUM_EMBEDDINGS = 36

    key = jax.random.PRNGKey(0)
    k_el, k_dm, k_adj, k_par = jax.random.split(key, 4)

    elements = jax.random.randint(k_el, (B, D), 0, NUM_EMBEDDINGS, dtype=jnp.int32)
    dist_mat = jnp.abs(jax.random.normal(k_dm, (B, D, D), jnp.float32))
    adj0 = jax.random.bernoulli(k_adj, 0.3, (B, D, D)).astype(jnp.float32)
    adj_mat = jnp.maximum(adj0, jnp.transpose(adj0, (0, 2, 1)))

    params = init_params(k_par, D, E, H, NBT, NUM_EMBEDDINGS)
    ref = reference_forward(elements, dist_mat, adj_mat, params)

    def rel_err(a, b):
        return float(jnp.max(jnp.abs(a - b)) / (jnp.max(jnp.abs(b)) + 1e-6))

    # Tight correctness check with f32 matmul operands.
    fwd_f32 = jax.jit(functools.partial(adj_mat_seer_forward,
                                        compute_dtype=jnp.float32))
    out_f32 = jax.block_until_ready(fwd_f32(elements, dist_mat, adj_mat, params))
    assert out_f32.shape == (B, D, D, NBT), out_f32.shape
    e32 = rel_err(out_f32, ref)
    assert e32 < 1e-3, f"f32 path relative error too large: {e32}"

    # Fast path: bf16 MXU operands with f32 accumulation.
    fwd_bf16 = jax.jit(functools.partial(adj_mat_seer_forward,
                                         compute_dtype=jnp.bfloat16))
    out_bf16 = jax.block_until_ready(fwd_bf16(elements, dist_mat, adj_mat, params))
    assert out_bf16.shape == (B, D, D, NBT), out_bf16.shape
    ebf = rel_err(out_bf16, ref)
    assert ebf < 5e-2, f"bf16 path relative error too large: {ebf}"

    print("KERNEL_OK")
</pallas_src>

<mosaic_0001>
module attributes {stable_mosaic.version = 11 : i64} {
  func.func @_fused_adj_mat_seer_kernel(%arg0: i32, %arg1: memref<128x32xf32, #tpu.memory_space<vmem>>, %arg2: memref<128x32xf32, #tpu.memory_space<vmem>>, %arg3: memref<128x128xf32, #tpu.memory_space<vmem>>, %arg4: memref<128x128xf32, #tpu.memory_space<vmem>>, %arg5: memref<32x128xf32, #tpu.memory_space<vmem>>, %arg6: memref<1x128xf32, #tpu.memory_space<vmem>>, %arg7: memref<128x128xf32, #tpu.memory_space<vmem>>, %arg8: memref<1x128xf32, #tpu.memory_space<vmem>>, %arg9: memref<128x128xf32, #tpu.memory_space<vmem>>, %arg10: memref<1x128xf32, #tpu.memory_space<vmem>>, %arg11: memref<1x128xf32, #tpu.memory_space<vmem>>, %arg12: memref<1x1xf32, #tpu.memory_space<vmem>>, %arg13: memref<8x128xf32, #tpu.memory_space<vmem>>, %arg14: memref<128x16xf32, #tpu.memory_space<vmem>>, %arg15: memref<128x128xf32, #tpu.memory_space<vmem>>, %arg16: memref<16x512xf32, #tpu.memory_space<vmem>>, %arg17: memref<1x512xf32, #tpu.memory_space<vmem>>, %arg18: memref<32x128xf32, #tpu.memory_space<vmem>>, %arg19: memref<1x128xf32, #tpu.memory_space<vmem>>, %arg20: memref<128x128xf32, #tpu.memory_space<vmem>>, %arg21: memref<1x128xf32, #tpu.memory_space<vmem>>, %arg22: memref<128x128xf32, #tpu.memory_space<vmem>>, %arg23: memref<1x128xf32, #tpu.memory_space<vmem>>, %arg24: memref<128x128xf32, #tpu.memory_space<vmem>>, %arg25: memref<1x128xf32, #tpu.memory_space<vmem>>, %arg26: memref<128x128xf32, #tpu.memory_space<vmem>>, %arg27: memref<1x128xf32, #tpu.memory_space<vmem>>, %arg28: memref<128x128xf32, #tpu.memory_space<vmem>>) attributes {dimension_semantics = [#tpu.dimension_semantics<parallel>], iteration_bounds = array<i64: 1>, scalar_prefetch = 0 : i64, scratch_operands = 0 : i64, tpu.core_type = #tpu.core_type<tc>, window_params = [{transform_indices = @transform_0, window_bounds = array<i64: 128, 32>}, {transform_indices = @transform_1, window_bounds = array<i64: 128, 32>}, {transform_indices = @transform_2, window_bounds = array<i64: 128, 128>}, {transform_indices = @transform_3, window_bounds = array<i64: 128, 128>}, {pipeline_mode = #tpu.pipeline_mode<synchronous>, transform_indices = @transform_4, window_bounds = array<i64: 32, 128>}, {pipeline_mode = #tpu.pipeline_mode<synchronous>, transform_indices = @transform_5, window_bounds = array<i64: 1, 128>}, {pipeline_mode = #tpu.pipeline_mode<synchronous>, transform_indices = @transform_6, window_bounds = array<i64: 128, 128>}, {pipeline_mode = #tpu.pipeline_mode<synchronous>, transform_indices = @transform_7, window_bounds = array<i64: 1, 128>}, {pipeline_mode = #tpu.pipeline_mode<synchronous>, transform_indices = @transform_8, window_bounds = array<i64: 128, 128>}, {pipeline_mode = #tpu.pipeline_mode<synchronous>, transform_indices = @transform_9, window_bounds = array<i64: 1, 128>}, {pipeline_mode = #tpu.pipeline_mode<synchronous>, transform_indices = @transform_10, window_bounds = array<i64: 1, 128>}, {pipeline_mode = #tpu.pipeline_mode<synchronous>, transform_indices = @transform_11, window_bounds = array<i64: 1, 1>}, {pipeline_mode = #tpu.pipeline_mode<synchronous>, transform_indices = @transform_12, window_bounds = array<i64: 8, 128>}, {pipeline_mode = #tpu.pipeline_mode<synchronous>, transform_indices = @transform_13, window_bounds = array<i64: 128, 16>}, {pipeline_mode = #tpu.pipeline_mode<synchronous>, transform_indices = @transform_14, window_bounds = array<i64: 128, 128>}, {pipeline_mode = #tpu.pipeline_mode<synchronous>, transform_indices = @transform_15, window_bounds = array<i64: 16, 512>}, {pipeline_mode = #tpu.pipeline_mode<synchronous>, transform_indices = @transform_16, window_bounds = array<i64: 1, 512>}, {pipeline_mode = #tpu.pipeline_mode<synchronous>, transform_indices = @transform_17, window_bounds = array<i64: 32, 128>}, {pipeline_mode = #tpu.pipeline_mode<synchronous>, transform_indices = @transform_18, window_bounds = array<i64: 1, 128>}, {pipeline_mode = #tpu.pipeline_mode<synchronous>, transform_indices = @transform_19, window_bounds = array<i64: 128, 128>}, {pipeline_mode = #tpu.pipeline_mode<synchronous>, transform_indices = @transform_20, window_bounds = array<i64: 1, 128>}, {pipeline_mode = #tpu.pipeline_mode<synchronous>, transform_indices = @transform_21, window_bounds = array<i64: 128, 128>}, {pipeline_mode = #tpu.pipeline_mode<synchronous>, transform_indices = @transform_22, window_bounds = array<i64: 1, 128>}, {pipeline_mode = #tpu.pipeline_mode<synchronous>, transform_indices = @transform_23, window_bounds = array<i64: 128, 128>}, {pipeline_mode = #tpu.pipeline_mode<synchronous>, transform_indices = @transform_24, window_bounds = array<i64: 1, 128>}, {pipeline_mode = #tpu.pipeline_mode<synchronous>, transform_indices = @transform_25, window_bounds = array<i64: 128, 128>}, {pipeline_mode = #tpu.pipeline_mode<synchronous>, transform_indices = @transform_26, window_bounds = array<i64: 1, 128>}, {transform_indices = @transform_27, window_bounds = array<i64: 128, 128>}]} {
    %c0 = arith.constant 0 : index
    %c0_0 = arith.constant 0 : index
    %0 = vector.load %arg3[%c0, %c0_0] : memref<128x128xf32, #tpu.memory_space<vmem>>, vector<128x128xf32>
    %c0_1 = arith.constant 0 : index
    %c0_2 = arith.constant 0 : index
    %1 = vector.load %arg1[%c0_1, %c0_2] : memref<128x32xf32, #tpu.memory_space<vmem>>, vector<128x32xf32>
    %c0_3 = arith.constant 0 : index
    %c0_4 = arith.constant 0 : index
    %2 = vector.load %arg5[%c0_3, %c0_4] : memref<32x128xf32, #tpu.memory_space<vmem>>, vector<32x128xf32>
    %cst = arith.constant dense<0.000000e+00> : vector<128x128xf32>
    %3 = tpu.matmul %1, %2, %cst {dimension_numbers = #tpu.dot_dimension_numbers<[1], [0], [0], [1], [0, 0, 1, 1], [], []>} : vector<128x32xf32>, vector<32x128xf32>, vector<128x128xf32> -> vector<128x128xf32>
    %c0_5 = arith.constant 0 : index
    %c0_6 = arith.constant 0 : index
    %4 = vector.load %arg6[%c0_5, %c0_6] : memref<1x128xf32, #tpu.memory_space<vmem>>, vector<1x128xf32>
    %5 = vector.broadcast %4 : vector<1x128xf32> to vector<128x128xf32>
    %6 = arith.addf %3, %5 : vector<128x128xf32>
    %cst_7 = arith.constant dense<0.000000e+00> : vector<128x128xf32>
    %7 = tpu.matmul %0, %6, %cst_7 {dimension_numbers = #tpu.dot_dimension_numbers<[1], [0], [0], [1], [0, 0, 1, 1], [], []>} : vector<128x128xf32>, vector<128x128xf32>, vector<128x128xf32> -> vector<128x128xf32>
    %cst_8 = arith.constant 0.000000e+00 : f32
    %8 = vector.broadcast %cst_8 : f32 to vector<128x128xf32>
    %9 = arith.maximumf %7, %8 : vector<128x128xf32>
    %c0_9 = arith.constant 0 : index
    %c0_10 = arith.constant 0 : index
    %10 = vector.load %arg7[%c0_9, %c0_10] : memref<128x128xf32, #tpu.memory_space<vmem>>, vector<128x128xf32>
    %cst_11 = arith.constant dense<0.000000e+00> : vector<128x128xf32>
    %11 = tpu.matmul %9, %10, %cst_11 {dimension_numbers = #tpu.dot_dimension_numbers<[1], [0], [0], [1], [0, 0, 1, 1], [], []>} : vector<128x128xf32>, vector<128x128xf32>, vector<128x128xf32> -> vector<128x128xf32>
    %c0_12 = arith.constant 0 : index
    %c0_13 = arith.constant 0 : index
    %12 = vector.load %arg8[%c0_12, %c0_13] : memref<1x128xf32, #tpu.memory_space<vmem>>, vector<1x128xf32>
    %13 = vector.broadcast %12 : vector<1x128xf32> to vector<128x128xf32>
    %14 = arith.addf %11, %13 : vector<128x128xf32>
    %cst_14 = arith.constant dense<0.000000e+00> : vector<128x128xf32>
    %15 = tpu.matmul %0, %14, %cst_14 {dimension_numbers = #tpu.dot_dimension_numbers<[1], [0], [0], [1], [0, 0, 1, 1], [], []>} : vector<128x128xf32>, vector<128x128xf32>, vector<128x128xf32> -> vector<128x128xf32>
    %cst_15 = arith.constant 0.000000e+00 : f32
    %16 = vector.broadcast %cst_15 : f32 to vector<128x128xf32>
    %17 = arith.maximumf %15, %16 : vector<128x128xf32>
    %c0_16 = arith.constant 0 : index
    %c0_17 = arith.constant 0 : index
    %18 = vector.load %arg9[%c0_16, %c0_17] : memref<128x128xf32, #tpu.memory_space<vmem>>, vector<128x128xf32>
    %cst_18 = arith.constant dense<0.000000e+00> : vector<128x128xf32>
    %19 = tpu.matmul %17, %18, %cst_18 {dimension_numbers = #tpu.dot_dimension_numbers<[1], [0], [0], [1], [0, 0, 1, 1], [], []>} : vector<128x128xf32>, vector<128x128xf32>, vector<128x128xf32> -> vector<128x128xf32>
    %c0_19 = arith.constant 0 : index
    %c0_20 = arith.constant 0 : index
    %20 = vector.load %arg10[%c0_19, %c0_20] : memref<1x128xf32, #tpu.memory_space<vmem>>, vector<1x128xf32>
    %21 = vector.broadcast %20 : vector<1x128xf32> to vector<128x128xf32>
    %22 = arith.addf %19, %21 : vector<128x128xf32>
    %cst_21 = arith.constant dense<0.000000e+00> : vector<128x128xf32>
    %23 = tpu.matmul %0, %22, %cst_21 {dimension_numbers = #tpu.dot_dimension_numbers<[1], [0], [0], [1], [0, 0, 1, 1], [], []>} : vector<128x128xf32>, vector<128x128xf32>, vector<128x128xf32> -> vector<128x128xf32>
    %cst_22 = arith.constant 0.000000e+00 : f32
    %24 = vector.broadcast %cst_22 : f32 to vector<128x128xf32>
    %25 = arith.maximumf %23, %24 : vector<128x128xf32>
    %c0_23 = arith.constant 0 : index
    %c0_24 = arith.constant 0 : index
    %26 = vector.load %arg11[%c0_23, %c0_24] : memref<1x128xf32, #tpu.memory_space<vmem>>, vector<1x128xf32>
    %cst_25 = arith.constant dense<0.000000e+00> : vector<1x128xf32>
    %27 = tpu.matmul %26, %25, %cst_25 {dimension_numbers = #tpu.dot_dimension_numbers<[1], [1], [0], [0], [0, 0, 1, 0], [], []>} : vector<1x128xf32>, vector<128x128xf32>, vector<1x128xf32> -> vector<1x128xf32>
    %c0_26 = arith.constant 0 : index
    %c0_27 = arith.constant 0 : index
    %28 = vector.load %arg12[%c0_26, %c0_27] : memref<1x1xf32, #tpu.memory_space<vmem>>, vector<1x1xf32>
    %29 = vector.broadcast %28 : vector<1x1xf32> to vector<1x128xf32>
    %30 = arith.addf %27, %29 : vector<1x128xf32>
    %c0_28 = arith.constant 0 : index
    %c0_29 = arith.constant 0 : index
    %31 = vector.load %arg13[%c0_28, %c0_29] : memref<8x128xf32, #tpu.memory_space<vmem>>, vector<8x128xf32>
    %32 = vector.broadcast %30 : vector<1x128xf32> to vector<8x128xf32>
    %33 = arith.mulf %31, %32 : vector<8x128xf32>
    %c0_30 = arith.constant 0 : index
    %c0_31 = arith.constant 0 : index
    %34 = vector.load %arg14[%c0_30, %c0_31] : memref<128x16xf32, #tpu.memory_space<vmem>>, vector<128x16xf32>
    %cst_32 = arith.constant dense<0.000000e+00> : vector<8x16xf32>
    %35 = tpu.matmul %33, %34, %cst_32 {dimension_numbers = #tpu.dot_dimension_numbers<[1], [0], [0], [1], [0, 0, 1, 1], [], []>} : vector<8x128xf32>, vector<128x16xf32>, vector<8x16xf32> -> vector<8x16xf32>
    %c0_33 = arith.constant 0 : index
    %c0_34 = arith.constant 0 : index
    %36 = vector.load %arg16[%c0_33, %c0_34] : memref<16x512xf32, #tpu.memory_space<vmem>>, vector<16x512xf32>
    %cst_35 = arith.constant dense<0.000000e+00> : vector<8x512xf32>
    %37 = tpu.matmul %35, %36, %cst_35 {dimension_numbers = #tpu.dot_dimension_numbers<[1], [0], [0], [1], [0, 0, 1, 1], [], []>} : vector<8x16xf32>, vector<16x512xf32>, vector<8x512xf32> -> vector<8x512xf32>
    %c0_36 = arith.constant 0 : index
    %c0_37 = arith.constant 0 : index
    %38 = vector.load %arg17[%c0_36, %c0_37] : memref<1x512xf32, #tpu.memory_space<vmem>>, vector<1x512xf32>
    %39 = vector.broadcast %38 : vector<1x512xf32> to vector<8x512xf32>
    %40 = arith.addf %37, %39 : vector<8x512xf32>
    %c0_38 = arith.constant 0 : index
    %c0_39 = arith.constant 0 : index
    %41 = vector.load %arg15[%c0_38, %c0_39] : memref<128x128xf32, #tpu.memory_space<vmem>>, vector<128x128xf32>
    %cst_40 = arith.constant 0.000000e+00 : f32
    %42 = vector.broadcast %cst_40 : f32 to vector<128x32xf32>
    %43 = vector.extract_strided_slice %40 {offsets = [0, 0], sizes = [8, 32], strides = [1, 1]} : vector<8x512xf32> to vector<8x32xf32>
    %44 = vector.extract_strided_slice %41 {offsets = [0, 0], sizes = [128, 8], strides = [1, 1]} : vector<128x128xf32> to vector<128x8xf32>
    %cst_41 = arith.constant dense<0.000000e+00> : vector<128x32xf32>
    %45 = tpu.matmul %44, %43, %cst_41 {dimension_numbers = #tpu.dot_dimension_numbers<[1], [0], [0], [1], [0, 0, 1, 1], [], []>} : vector<128x8xf32>, vector<8x32xf32>, vector<128x32xf32> -> vector<128x32xf32>
    %46 = arith.addf %42, %45 : vector<128x32xf32>
    %47 = vector.extract_strided_slice %40 {offsets = [0, 32], sizes = [8, 32], strides = [1, 1]} : vector<8x512xf32> to vector<8x32xf32>
    %48 = vector.extract_strided_slice %41 {offsets = [0, 8], sizes = [128, 8], strides = [1, 1]} : vector<128x128xf32> to vector<128x8xf32>
    %cst_42 = arith.constant dense<0.000000e+00> : vector<128x32xf32>
    %49 = tpu.matmul %48, %47, %cst_42 {dimension_numbers = #tpu.dot_dimension_numbers<[1], [0], [0], [1], [0, 0, 1, 1], [], []>} : vector<128x8xf32>, vector<8x32xf32>, vector<128x32xf32> -> vector<128x32xf32>
    %50 = arith.addf %46, %49 : vector<128x32xf32>
    %51 = vector.extract_strided_slice %40 {offsets = [0, 64], sizes = [8, 32], strides = [1, 1]} : vector<8x512xf32> to vector<8x32xf32>
    %52 = vector.extract_strided_slice %41 {offsets = [0, 16], sizes = [128, 8], strides = [1, 1]} : vector<128x128xf32> to vector<128x8xf32>
    %cst_43 = arith.constant dense<0.000000e+00> : vector<128x32xf32>
    %53 = tpu.matmul %52, %51, %cst_43 {dimension_numbers = #tpu.dot_dimension_numbers<[1], [0], [0], [1], [0, 0, 1, 1], [], []>} : vector<128x8xf32>, vector<8x32xf32>, vector<128x32xf32> -> vector<128x32xf32>
    %54 = arith.addf %50, %53 : vector<128x32xf32>
    %55 = vector.extract_strided_slice %40 {offsets = [0, 96], sizes = [8, 32], strides = [1, 1]} : vector<8x512xf32> to vector<8x32xf32>
    %56 = vector.extract_strided_slice %41 {offsets = [0, 24], sizes = [128, 8], strides = [1, 1]} : vector<128x128xf32> to vector<128x8xf32>
    %cst_44 = arith.constant dense<0.000000e+00> : vector<128x32xf32>
    %57 = tpu.matmul %56, %55, %cst_44 {dimension_numbers = #tpu.dot_dimension_numbers<[1], [0], [0], [1], [0, 0, 1, 1], [], []>} : vector<128x8xf32>, vector<8x32xf32>, vector<128x32xf32> -> vector<128x32xf32>
    %58 = arith.addf %54, %57 : vector<128x32xf32>
    %59 = vector.extract_strided_slice %40 {offsets = [0, 128], sizes = [8, 32], strides = [1, 1]} : vector<8x512xf32> to vector<8x32xf32>
    %60 = vector.extract_strided_slice %41 {offsets = [0, 32], sizes = [128, 8], strides = [1, 1]} : vector<128x128xf32> to vector<128x8xf32>
    %cst_45 = arith.constant dense<0.000000e+00> : vector<128x32xf32>
    %61 = tpu.matmul %60, %59, %cst_45 {dimension_numbers = #tpu.dot_dimension_numbers<[1], [0], [0], [1], [0, 0, 1, 1], [], []>} : vector<128x8xf32>, vector<8x32xf32>, vector<128x32xf32> -> vector<128x32xf32>
    %62 = arith.addf %58, %61 : vector<128x32xf32>
    %63 = vector.extract_strided_slice %40 {offsets = [0, 160], sizes = [8, 32], strides = [1, 1]} : vector<8x512xf32> to vector<8x32xf32>
    %64 = vector.extract_strided_slice %41 {offsets = [0, 40], sizes = [128, 8], strides = [1, 1]} : vector<128x128xf32> to vector<128x8xf32>
    %cst_46 = arith.constant dense<0.000000e+00> : vector<128x32xf32>
    %65 = tpu.matmul %64, %63, %cst_46 {dimension_numbers = #tpu.dot_dimension_numbers<[1], [0], [0], [1], [0, 0, 1, 1], [], []>} : vector<128x8xf32>, vector<8x32xf32>, vector<128x32xf32> -> vector<128x32xf32>
    %66 = arith.addf %62, %65 : vector<128x32xf32>
    %67 = vector.extract_strided_slice %40 {offsets = [0, 192], sizes = [8, 32], strides = [1, 1]} : vector<8x512xf32> to vector<8x32xf32>
    %68 = vector.extract_strided_slice %41 {offsets = [0, 48], sizes = [128, 8], strides = [1, 1]} : vector<128x128xf32> to vector<128x8xf32>
    %cst_47 = arith.constant dense<0.000000e+00> : vector<128x32xf32>
    %69 = tpu.matmul %68, %67, %cst_47 {dimension_numbers = #tpu.dot_dimension_numbers<[1], [0], [0], [1], [0, 0, 1, 1], [], []>} : vector<128x8xf32>, vector<8x32xf32>, vector<128x32xf32> -> vector<128x32xf32>
    %70 = arith.addf %66, %69 : vector<128x32xf32>
    %71 = vector.extract_strided_slice %40 {offsets = [0, 224], sizes = [8, 32], strides = [1, 1]} : vector<8x512xf32> to vector<8x32xf32>
    %72 = vector.extract_strided_slice %41 {offsets = [0, 56], sizes = [128, 8], strides = [1, 1]} : vector<128x128xf32> to vector<128x8xf32>
    %cst_48 = arith.constant dense<0.000000e+00> : vector<128x32xf32>
    %73 = tpu.matmul %72, %71, %cst_48 {dimension_numbers = #tpu.dot_dimension_numbers<[1], [0], [0], [1], [0, 0, 1, 1], [], []>} : vector<128x8xf32>, vector<8x32xf32>, vector<128x32xf32> -> vector<128x32xf32>
    %74 = arith.addf %70, %73 : vector<128x32xf32>
    %75 = vector.extract_strided_slice %40 {offsets = [0, 256], sizes = [8, 32], strides = [1, 1]} : vector<8x512xf32> to vector<8x32xf32>
    %76 = vector.extract_strided_slice %41 {offsets = [0, 64], sizes = [128, 8], strides = [1, 1]} : vector<128x128xf32> to vector<128x8xf32>
    %cst_49 = arith.constant dense<0.000000e+00> : vector<128x32xf32>
    %77 = tpu.matmul %76, %75, %cst_49 {dimension_numbers = #tpu.dot_dimension_numbers<[1], [0], [0], [1], [0, 0, 1, 1], [], []>} : vector<128x8xf32>, vector<8x32xf32>, vector<128x32xf32> -> vector<128x32xf32>
    %78 = arith.addf %74, %77 : vector<128x32xf32>
    %79 = vector.extract_strided_slice %40 {offsets = [0, 288], sizes = [8, 32], strides = [1, 1]} : vector<8x512xf32> to vector<8x32xf32>
    %80 = vector.extract_strided_slice %41 {offsets = [0, 72], sizes = [128, 8], strides = [1, 1]} : vector<128x128xf32> to vector<128x8xf32>
    %cst_50 = arith.constant dense<0.000000e+00> : vector<128x32xf32>
    %81 = tpu.matmul %80, %79, %cst_50 {dimension_numbers = #tpu.dot_dimension_numbers<[1], [0], [0], [1], [0, 0, 1, 1], [], []>} : vector<128x8xf32>, vector<8x32xf32>, vector<128x32xf32> -> vector<128x32xf32>
    %82 = arith.addf %78, %81 : vector<128x32xf32>
    %83 = vector.extract_strided_slice %40 {offsets = [0, 320], sizes = [8, 32], strides = [1, 1]} : vector<8x512xf32> to vector<8x32xf32>
    %84 = vector.extract_strided_slice %41 {offsets = [0, 80], sizes = [128, 8], strides = [1, 1]} : vector<128x128xf32> to vector<128x8xf32>
    %cst_51 = arith.constant dense<0.000000e+00> : vector<128x32xf32>
    %85 = tpu.matmul %84, %83, %cst_51 {dimension_numbers = #tpu.dot_dimension_numbers<[1], [0], [0], [1], [0, 0, 1, 1], [], []>} : vector<128x8xf32>, vector<8x32xf32>, vector<128x32xf32> -> vector<128x32xf32>
    %86 = arith.addf %82, %85 : vector<128x32xf32>
    %87 = vector.extract_strided_slice %40 {offsets = [0, 352], sizes = [8, 32], strides = [1, 1]} : vector<8x512xf32> to vector<8x32xf32>
    %88 = vector.extract_strided_slice %41 {offsets = [0, 88], sizes = [128, 8], strides = [1, 1]} : vector<128x128xf32> to vector<128x8xf32>
    %cst_52 = arith.constant dense<0.000000e+00> : vector<128x32xf32>
    %89 = tpu.matmul %88, %87, %cst_52 {dimension_numbers = #tpu.dot_dimension_numbers<[1], [0], [0], [1], [0, 0, 1, 1], [], []>} : vector<128x8xf32>, vector<8x32xf32>, vector<128x32xf32> -> vector<128x32xf32>
    %90 = arith.addf %86, %89 : vector<128x32xf32>
    %91 = vector.extract_strided_slice %40 {offsets = [0, 384], sizes = [8, 32], strides = [1, 1]} : vector<8x512xf32> to vector<8x32xf32>
    %92 = vector.extract_strided_slice %41 {offsets = [0, 96], sizes = [128, 8], strides = [1, 1]} : vector<128x128xf32> to vector<128x8xf32>
    %cst_53 = arith.constant dense<0.000000e+00> : vector<128x32xf32>
    %93 = tpu.matmul %92, %91, %cst_53 {dimension_numbers = #tpu.dot_dimension_numbers<[1], [0], [0], [1], [0, 0, 1, 1], [], []>} : vector<128x8xf32>, vector<8x32xf32>, vector<128x32xf32> -> vector<128x32xf32>
    %94 = arith.addf %90, %93 : vector<128x32xf32>
    %95 = vector.extract_strided_slice %40 {offsets = [0, 416], sizes = [8, 32], strides = [1, 1]} : vector<8x512xf32> to vector<8x32xf32>
    %96 = vector.extract_strided_slice %41 {offsets = [0, 104], sizes = [128, 8], strides = [1, 1]} : vector<128x128xf32> to vector<128x8xf32>
    %cst_54 = arith.constant dense<0.000000e+00> : vector<128x32xf32>
    %97 = tpu.matmul %96, %95, %cst_54 {dimension_numbers = #tpu.dot_dimension_numbers<[1], [0], [0], [1], [0, 0, 1, 1], [], []>} : vector<128x8xf32>, vector<8x32xf32>, vector<128x32xf32> -> vector<128x32xf32>
    %98 = arith.addf %94, %97 : vector<128x32xf32>
    %99 = vector.extract_strided_slice %40 {offsets = [0, 448], sizes = [8, 32], strides = [1, 1]} : vector<8x512xf32> to vector<8x32xf32>
    %100 = vector.extract_strided_slice %41 {offsets = [0, 112], sizes = [128, 8], strides = [1, 1]} : vector<128x128xf32> to vector<128x8xf32>
    %cst_55 = arith.constant dense<0.000000e+00> : vector<128x32xf32>
    %101 = tpu.matmul %100, %99, %cst_55 {dimension_numbers = #tpu.dot_dimension_numbers<[1], [0], [0], [1], [0, 0, 1, 1], [], []>} : vector<128x8xf32>, vector<8x32xf32>, vector<128x32xf32> -> vector<128x32xf32>
    %102 = arith.addf %98, %101 : vector<128x32xf32>
    %103 = vector.extract_strided_slice %40 {offsets = [0, 480], sizes = [8, 32], strides = [1, 1]} : vector<8x512xf32> to vector<8x32xf32>
    %104 = vector.extract_strided_slice %41 {offsets = [0, 120], sizes = [128, 8], strides = [1, 1]} : vector<128x128xf32> to vector<128x8xf32>
    %cst_56 = arith.constant dense<0.000000e+00> : vector<128x32xf32>
    %105 = tpu.matmul %104, %103, %cst_56 {dimension_numbers = #tpu.dot_dimension_numbers<[1], [0], [0], [1], [0, 0, 1, 1], [], []>} : vector<128x8xf32>, vector<8x32xf32>, vector<128x32xf32> -> vector<128x32xf32>
    %106 = arith.addf %102, %105 : vector<128x32xf32>
    %c0_57 = arith.constant 0 : index
    %c0_58 = arith.constant 0 : index
    %107 = vector.load %arg2[%c0_57, %c0_58] : memref<128x32xf32, #tpu.memory_space<vmem>>, vector<128x32xf32>
    %108 = arith.addf %107, %106 : vector<128x32xf32>
    %c0_59 = arith.constant 0 : index
    %c0_60 = arith.constant 0 : index
    %109 = vector.load %arg4[%c0_59, %c0_60] : memref<128x128xf32, #tpu.memory_space<vmem>>, vector<128x128xf32>
    %c0_61 = arith.constant 0 : index
    %c0_62 = arith.constant 0 : index
    %110 = vector.load %arg18[%c0_61, %c0_62] : memref<32x128xf32, #tpu.memory_space<vmem>>, vector<32x128xf32>
    %cst_63 = arith.constant dense<0.000000e+00> : vector<128x128xf32>
    %111 = tpu.matmul %108, %110, %cst_63 {dimension_numbers = #tpu.dot_dimension_numbers<[1], [0], [0], [1], [0, 0, 1, 1], [], []>} : vector<128x32xf32>, vector<32x128xf32>, vector<128x128xf32> -> vector<128x128xf32>
    %c0_64 = arith.constant 0 : index
    %c0_65 = arith.constant 0 : index
    %112 = vector.load %arg19[%c0_64, %c0_65] : memref<1x128xf32, #tpu.memory_space<vmem>>, vector<1x128xf32>
    %113 = vector.broadcast %112 : vector<1x128xf32> to vector<128x128xf32>
    %114 = arith.addf %111, %113 : vector<128x128xf32>
    %cst_66 = arith.constant dense<0.000000e+00> : vector<128x128xf32>
    %115 = tpu.matmul %109, %114, %cst_66 {dimension_numbers = #tpu.dot_dimension_numbers<[1], [0], [0], [1], [0, 0, 1, 1], [], []>} : vector<128x128xf32>, vector<128x128xf32>, vector<128x128xf32> -> vector<128x128xf32>
    %cst_67 = arith.constant 0.000000e+00 : f32
    %116 = vector.broadcast %cst_67 : f32 to vector<128x128xf32>
    %117 = arith.maximumf %115, %116 : vector<128x128xf32>
    %c0_68 = arith.constant 0 : index
    %c0_69 = arith.constant 0 : index
    %118 = vector.load %arg20[%c0_68, %c0_69] : memref<128x128xf32, #tpu.memory_space<vmem>>, vector<128x128xf32>
    %cst_70 = arith.constant dense<0.000000e+00> : vector<128x128xf32>
    %119 = tpu.matmul %117, %118, %cst_70 {dimension_numbers = #tpu.dot_dimension_numbers<[1], [0], [0], [1], [0, 0, 1, 1], [], []>} : vector<128x128xf32>, vector<128x128xf32>, vector<128x128xf32> -> vector<128x128xf32>
    %c0_71 = arith.constant 0 : index
    %c0_72 = arith.constant 0 : index
    %120 = vector.load %arg21[%c0_71, %c0_72] : memref<1x128xf32, #tpu.memory_space<vmem>>, vector<1x128xf32>
    %121 = vector.broadcast %120 : vector<1x128xf32> to vector<128x128xf32>
    %122 = arith.addf %119, %121 : vector<128x128xf32>
    %cst_73 = arith.constant dense<0.000000e+00> : vector<128x128xf32>
    %123 = tpu.matmul %109, %122, %cst_73 {dimension_numbers = #tpu.dot_dimension_numbers<[1], [0], [0], [1], [0, 0, 1, 1], [], []>} : vector<128x128xf32>, vector<128x128xf32>, vector<128x128xf32> -> vector<128x128xf32>
    %cst_74 = arith.constant 0.000000e+00 : f32
    %124 = vector.broadcast %cst_74 : f32 to vector<128x128xf32>
    %125 = arith.maximumf %123, %124 : vector<128x128xf32>
    %c0_75 = arith.constant 0 : index
    %c0_76 = arith.constant 0 : index
    %126 = vector.load %arg22[%c0_75, %c0_76] : memref<128x128xf32, #tpu.memory_space<vmem>>, vector<128x128xf32>
    %cst_77 = arith.constant dense<0.000000e+00> : vector<128x128xf32>
    %127 = tpu.matmul %125, %126, %cst_77 {dimension_numbers = #tpu.dot_dimension_numbers<[1], [0], [0], [1], [0, 0, 1, 1], [], []>} : vector<128x128xf32>, vector<128x128xf32>, vector<128x128xf32> -> vector<128x128xf32>
    %c0_78 = arith.constant 0 : index
    %c0_79 = arith.constant 0 : index
    %128 = vector.load %arg23[%c0_78, %c0_79] : memref<1x128xf32, #tpu.memory_space<vmem>>, vector<1x128xf32>
    %129 = vector.broadcast %128 : vector<1x128xf32> to vector<128x128xf32>
    %130 = arith.addf %127, %129 : vector<128x128xf32>
    %cst_80 = arith.constant dense<0.000000e+00> : vector<128x128xf32>
    %131 = tpu.matmul %109, %130, %cst_80 {dimension_numbers = #tpu.dot_dimension_numbers<[1], [0], [0], [1], [0, 0, 1, 1], [], []>} : vector<128x128xf32>, vector<128x128xf32>, vector<128x128xf32> -> vector<128x128xf32>
    %cst_81 = arith.constant 0.000000e+00 : f32
    %132 = vector.broadcast %cst_81 : f32 to vector<128x128xf32>
    %133 = arith.maximumf %131, %132 : vector<128x128xf32>
    %c0_82 = arith.constant 0 : index
    %c0_83 = arith.constant 0 : index
    %134 = vector.load %arg24[%c0_82, %c0_83] : memref<128x128xf32, #tpu.memory_space<vmem>>, vector<128x128xf32>
    %cst_84 = arith.constant dense<0.000000e+00> : vector<128x128xf32>
    %135 = tpu.matmul %133, %134, %cst_84 {dimension_numbers = #tpu.dot_dimension_numbers<[1], [0], [0], [1], [0, 0, 1, 1], [], []>} : vector<128x128xf32>, vector<128x128xf32>, vector<128x128xf32> -> vector<128x128xf32>
    %c0_85 = arith.constant 0 : index
    %c0_86 = arith.constant 0 : index
    %136 = vector.load %arg25[%c0_85, %c0_86] : memref<1x128xf32, #tpu.memory_space<vmem>>, vector<1x128xf32>
    %137 = vector.broadcast %136 : vector<1x128xf32> to vector<128x128xf32>
    %138 = arith.addf %135, %137 : vector<128x128xf32>
    %cst_87 = arith.constant dense<0.000000e+00> : vector<128x128xf32>
    %139 = tpu.matmul %109, %138, %cst_87 {dimension_numbers = #tpu.dot_dimension_numbers<[1], [0], [0], [1], [0, 0, 1, 1], [], []>} : vector<128x128xf32>, vector<128x128xf32>, vector<128x128xf32> -> vector<128x128xf32>
    %cst_88 = arith.constant 0.000000e+00 : f32
    %140 = vector.broadcast %cst_88 : f32 to vector<128x128xf32>
    %141 = arith.maximumf %139, %140 : vector<128x128xf32>
    %c0_89 = arith.constant 0 : index
    %c0_90 = arith.constant 0 : index
    %142 = vector.load %arg26[%c0_89, %c0_90] : memref<128x128xf32, #tpu.memory_space<vmem>>, vector<128x128xf32>
    %cst_91 = arith.constant dense<0.000000e+00> : vector<128x128xf32>
    %143 = tpu.matmul %141, %142, %cst_91 {dimension_numbers = #tpu.dot_dimension_numbers<[1], [0], [0], [1], [0, 0, 1, 1], [], []>} : vector<128x128xf32>, vector<128x128xf32>, vector<128x128xf32> -> vector<128x128xf32>
    %c0_92 = arith.constant 0 : index
    %c0_93 = arith.constant 0 : index
    %144 = vector.load %arg27[%c0_92, %c0_93] : memref<1x128xf32, #tpu.memory_space<vmem>>, vector<1x128xf32>
    %145 = vector.broadcast %144 : vector<1x128xf32> to vector<128x128xf32>
    %146 = arith.addf %143, %145 : vector<128x128xf32>
    %c0_94 = arith.constant 0 : index
    %c0_95 = arith.constant 0 : index
    %147 = vector.load %arg28[%c0_94, %c0_95] : memref<128x128xf32, #tpu.memory_space<vmem>>, vector<128x128xf32>
    tpu.vector_store %arg28[%c0_94, %c0_95], %146 {strides = array<i32>} : memref<128x128xf32, #tpu.memory_space<vmem>>, vector<128x128xf32>,
    return
  }
  func.func @transform_0(%arg0: i32) -> (i32, i32) {
    %c0_i32 = arith.constant 0 : i32
    %c0_i32_0 = arith.constant 0 : i32
    return %arg0, %c0_i32 : i32, i32
  }
  func.func @transform_1(%arg0: i32) -> (i32, i32) {
    %c0_i32 = arith.constant 0 : i32
    %c0_i32_0 = arith.constant 0 : i32
    return %arg0, %c0_i32 : i32, i32
  }
  func.func @transform_2(%arg0: i32) -> (i32, i32) {
    %c0_i32 = arith.constant 0 : i32
    %c0_i32_0 = arith.constant 0 : i32
    return %arg0, %c0_i32 : i32, i32
  }
  func.func @transform_3(%arg0: i32) -> (i32, i32) {
    %c0_i32 = arith.constant 0 : i32
    %c0_i32_0 = arith.constant 0 : i32
    return %arg0, %c0_i32 : i32, i32
  }
  func.func @transform_4(%arg0: i32) -> (i32, i32) {
    %c0_i32 = arith.constant 0 : i32
    %c0_i32_0 = arith.constant 0 : i32
    %c0_i32_1 = arith.constant 0 : i32
    return %c0_i32, %c0_i32_0 : i32, i32
  }
  func.func @transform_5(%arg0: i32) -> (i32, i32) {
    %c0_i32 = arith.constant 0 : i32
    %c0_i32_0 = arith.constant 0 : i32
    %c0_i32_1 = arith.constant 0 : i32
    return %c0_i32, %c0_i32_0 : i32, i32
  }
  func.func @transform_6(%arg0: i32) -> (i32, i32) {
    %c0_i32 = arith.constant 0 : i32
    %c0_i32_0 = arith.constant 0 : i32
    %c0_i32_1 = arith.constant 0 : i32
    return %c0_i32, %c0_i32_0 : i32, i32
  }
  func.func @transform_7(%arg0: i32) -> (i32, i32) {
    %c0_i32 = arith.constant 0 : i32
    %c0_i32_0 = arith.constant 0 : i32
    %c0_i32_1 = arith.constant 0 : i32
    return %c0_i32, %c0_i32_0 : i32, i32
  }
  func.func @transform_8(%arg0: i32) -> (i32, i32) {
    %c0_i32 = arith.constant 0 : i32
    %c0_i32_0 = arith.constant 0 : i32
    %c0_i32_1 = arith.constant 0 : i32
    return %c0_i32, %c0_i32_0 : i32, i32
  }
  func.func @transform_9(%arg0: i32) -> (i32, i32) {
    %c0_i32 = arith.constant 0 : i32
    %c0_i32_0 = arith.constant 0 : i32
    %c0_i32_1 = arith.constant 0 : i32
    return %c0_i32, %c0_i32_0 : i32, i32
  }
  func.func @transform_10(%arg0: i32) -> (i32, i32) {
    %c0_i32 = arith.constant 0 : i32
    %c0_i32_0 = arith.constant 0 : i32
    %c0_i32_1 = arith.constant 0 : i32
    return %c0_i32, %c0_i32_0 : i32, i32
  }
  func.func @transform_11(%arg0: i32) -> (i32, i32) {
    %c0_i32 = arith.constant 0 : i32
    %c0_i32_0 = arith.constant 0 : i32
    %c0_i32_1 = arith.constant 0 : i32
    return %c0_i32, %c0_i32_0 : i32, i32
  }
  func.func @transform_12(%arg0: i32) -> (i32, i32) {
    %c0_i32 = arith.constant 0 : i32
    %c0_i32_0 = arith.constant 0 : i32
    %c0_i32_1 = arith.constant 0 : i32
    return %c0_i32, %c0_i32_0 : i32, i32
  }
  func.func @transform_13(%arg0: i32) -> (i32, i32) {
    %c0_i32 = arith.constant 0 : i32
    %c0_i32_0 = arith.constant 0 : i32
    %c0_i32_1 = arith.constant 0 : i32
    return %c0_i32, %c0_i32_0 : i32, i32
  }
  func.func @transform_14(%arg0: i32) -> (i32, i32) {
    %c0_i32 = arith.constant 0 : i32
    %c0_i32_0 = arith.constant 0 : i32
    %c0_i32_1 = arith.constant 0 : i32
    return %c0_i32, %c0_i32_0 : i32, i32
  }
  func.func @transform_15(%arg0: i32) -> (i32, i32) {
    %c0_i32 = arith.constant 0 : i32
    %c0_i32_0 = arith.constant 0 : i32
    %c0_i32_1 = arith.constant 0 : i32
    return %c0_i32, %c0_i32_0 : i32, i32
  }
  func.func @transform_16(%arg0: i32) -> (i32, i32) {
    %c0_i32 = arith.constant 0 : i32
    %c0_i32_0 = arith.constant 0 : i32
    %c0_i32_1 = arith.constant 0 : i32
    return %c0_i32, %c0_i32_0 : i32, i32
  }
  func.func @transform_17(%arg0: i32) -> (i32, i32) {
    %c0_i32 = arith.constant 0 : i32
    %c0_i32_0 = arith.constant 0 : i32
    %c0_i32_1 = arith.constant 0 : i32
    return %c0_i32, %c0_i32_0 : i32, i32
  }
  func.func @transform_18(%arg0: i32) -> (i32, i32) {
    %c0_i32 = arith.constant 0 : i32
    %c0_i32_0 = arith.constant 0 : i32
    %c0_i32_1 = arith.constant 0 : i32
    return %c0_i32, %c0_i32_0 : i32, i32
  }
  func.func @transform_19(%arg0: i32) -> (i32, i32) {
    %c0_i32 = arith.constant 0 : i32
    %c0_i32_0 = arith.constant 0 : i32
    %c0_i32_1 = arith.constant 0 : i32
    return %c0_i32, %c0_i32_0 : i32, i32
  }
  func.func @transform_20(%arg0: i32) -> (i32, i32) {
    %c0_i32 = arith.constant 0 : i32
    %c0_i32_0 = arith.constant 0 : i32
    %c0_i32_1 = arith.constant 0 : i32
    return %c0_i32, %c0_i32_0 : i32, i32
  }
  func.func @transform_21(%arg0: i32) -> (i32, i32) {
    %c0_i32 = arith.constant 0 : i32
    %c0_i32_0 = arith.constant 0 : i32
    %c0_i32_1 = arith.constant 0 : i32
    return %c0_i32, %c0_i32_0 : i32, i32
  }
  func.func @transform_22(%arg0: i32) -> (i32, i32) {
    %c0_i32 = arith.constant 0 : i32
    %c0_i32_0 = arith.constant 0 : i32
    %c0_i32_1 = arith.constant 0 : i32
    return %c0_i32, %c0_i32_0 : i32, i32
  }
  func.func @transform_23(%arg0: i32) -> (i32, i32) {
    %c0_i32 = arith.constant 0 : i32
    %c0_i32_0 = arith.constant 0 : i32
    %c0_i32_1 = arith.constant 0 : i32
    return %c0_i32, %c0_i32_0 : i32, i32
  }
  func.func @transform_24(%arg0: i32) -> (i32, i32) {
    %c0_i32 = arith.constant 0 : i32
    %c0_i32_0 = arith.constant 0 : i32
    %c0_i32_1 = arith.constant 0 : i32
    return %c0_i32, %c0_i32_0 : i32, i32
  }
  func.func @transform_25(%arg0: i32) -> (i32, i32) {
    %c0_i32 = arith.constant 0 : i32
    %c0_i32_0 = arith.constant 0 : i32
    %c0_i32_1 = arith.constant 0 : i32
    return %c0_i32, %c0_i32_0 : i32, i32
  }
  func.func @transform_26(%arg0: i32) -> (i32, i32) {
    %c0_i32 = arith.constant 0 : i32
    %c0_i32_0 = arith.constant 0 : i32
    %c0_i32_1 = arith.constant 0 : i32
    return %c0_i32, %c0_i32_0 : i32, i32
  }
  func.func @transform_27(%arg0: i32) -> (i32, i32) {
    %c0_i32 = arith.constant 0 : i32
    %c0_i32_0 = arith.constant 0 : i32
    return %arg0, %c0_i32 : i32, i32
  }
}

</mosaic_0001>

<bundles_post_ra>
// kernel: adj_mat_seer_forward.1
= control target key start
LH: loop header
LB: loop body
LE: loop exit
PB: predicated region body
PF: predicated region fallthrough
CT: control target
= control target key end

     0   :  { %vm131_vm0 = vcmask 261120   ;;  %vm9793_vm1 = vmmov 0   ;;  %vm1347_vm2 = vcmask 130048   ;;  %vm1561_vm3 = vcmask 64512   ;;  %s12396_s4 = inlined_call_operand.vmem [shape: f32[32,128], index: 4, kind: input, shape index: {}]   ;;  %s12397_s0 = inlined_call_operand.vmem [shape: f32[128,32], index: 0, kind: input, shape index: {}]   ;;  %s12398_s2 = inlined_call_operand.vmem [shape: f32[128,128], index: 2, kind: input, shape index: {}]   ;;  %s12399_s5 = inlined_call_operand.vmem [shape: f32[1,128], index: 5, kind: input, shape index: {}]   ;;  %s12400_s6 = inlined_call_operand.vmem [shape: f32[128,128], index: 6, kind: input, shape index: {}]   ;;  %s12401_s8 = inlined_call_operand.vmem [shape: f32[128,128], index: 8, kind: input, shape index: {}]   ;;  %s12402_s7 = inlined_call_operand.vmem [shape: f32[1,128], index: 7, kind: input, shape index: {}]   ;;  %s12403_s9 = inlined_call_operand.vmem [shape: f32[1,128], index: 9, kind: input, shape index: {}]   ;;  %s12404_s11 = inlined_call_operand.<no memory space> [shape: f32[1,1], index: 11, kind: input, shape index: {}]   ;;  %s12405_s13 = inlined_call_operand.vmem [shape: f32[128,16], index: 13, kind: input, shape index: {}]   ;;  %s12406_s10 = inlined_call_operand.vmem [shape: f32[1,128], index: 10, kind: input, shape index: {}]   ;;  %s12407_s15 = inlined_call_operand.vmem [shape: f32[16,512], index: 15, kind: input, shape index: {}]   ;;  %s12408_s12 = inlined_call_operand.vmem [shape: f32[8,128], index: 12, kind: input, shape index: {}]   ;;  %s12409_s14 = inlined_call_operand.vmem [shape: f32[128,128], index: 14, kind: input, shape index: {}]   ;;  %s12410_s16 = inlined_call_operand.vmem [shape: f32[1,512], index: 16, kind: input, shape index: {}]   ;;  %s12411_s17 = inlined_call_operand.vmem [shape: f32[32,128], index: 17, kind: input, shape index: {}]   ;;  %s12412_s1 = inlined_call_operand.vmem [shape: f32[128,32], index: 1, kind: input, shape index: {}]   ;;  %s12413_s3 = inlined_call_operand.vmem [shape: f32[128,128], index: 3, kind: input, shape index: {}]   ;;  %s12414_s18 = inlined_call_operand.vmem [shape: f32[1,128], index: 18, kind: input, shape index: {}]   ;;  %s12415_s19 = inlined_call_operand.vmem [shape: f32[128,128], index: 19, kind: input, shape index: {}]   ;;  %s12416_s20 = inlined_call_operand.vmem [shape: f32[1,128], index: 20, kind: input, shape index: {}]   ;;  %s12417_s21 = inlined_call_operand.vmem [shape: f32[128,128], index: 21, kind: input, shape index: {}]   ;;  %s12418_s22 = inlined_call_operand.vmem [shape: f32[1,128], index: 22, kind: input, shape index: {}]   ;;  %s12419_s23 = inlined_call_operand.vmem [shape: f32[128,128], index: 23, kind: input, shape index: {}]   ;;  %s12420_s24 = inlined_call_operand.vmem [shape: f32[1,128], index: 24, kind: input, shape index: {}]   ;;  %s12421_s25 = inlined_call_operand.vmem [shape: f32[128,128], index: 25, kind: input, shape index: {}]   ;;  %s12422_s26 = inlined_call_operand.vmem [shape: f32[1,128], index: 26, kind: input, shape index: {}]   ;;  %s12423_s27 = inlined_call_operand.vmem [shape: f32[128,128], index: 27, kind: output, shape index: {}]  }
   0x1   :  { %12432 = sst [smem:[#allocation14_spill]] %s12396_s4  ;;  %s9807_s4 = smov 24  }
   0x2   :  { %12433 = sst [smem:[#allocation15_spill]] %s12397_s0  ;;  %s9804_s0 = smov 56  }
   0x3   :  { %12434 = sst [smem:[#allocation16_spill]] %s12398_s2 }
   0x4   :  { %12435 = sst [smem:[#allocation17_spill]] %s12399_s5 }
   0x5   :  { %12436 = sst [smem:[#allocation18_spill]] %s12400_s6  ;;  %s12446_s6 = sld [smem:[#allocation16_spill]] }
   0x6   :  { %12437 = sst [smem:[#allocation19_spill]] %s12401_s8  ;;  %s12448_s28 = sld [smem:[#allocation18_spill]] }
   0x7   :  { %12438 = sst [smem:[#allocation20_spill]] %s12402_s7  ;;  %s12445_s7 = sld [smem:[#allocation15_spill]] }
   0x8   :  { %12439 = sst [smem:[#allocation21_spill]] %s12403_s9  ;;  %s12450_s30 = sld [smem:[#allocation20_spill]] }
   0x9   :  { %12440 = sst [smem:[#allocation22_spill]] %s12404_s11  ;;  %s12451_s29 = sld [smem:[#allocation21_spill]] }
   0xa   :  { %12441 = sst [smem:[#allocation23_spill]] %s12405_s13  ;;  %s12444_s11 = sld [smem:[#allocation14_spill]] }
   0xb   :  { %12442 = sst [smem:[#allocation24_spill]] %s12406_s10  ;;  %v10030_v22 = vld [vmem:[%s12446_s6] sm:$0xff]  ;;  %s12447_s13 = sld [smem:[#allocation17_spill]] }
   0xc   :  { %12443 = sst [smem:[#allocation25_spill]] %s12407_s15  ;;  %7814 = vmatprep.mubr.f32.mxu1 %v10030_v22  ;;  %v486_v62 = vld [vmem:[%s12448_s28] sm:$0xff]  ;;  %v487_v63 = vld [vmem:[%s12448_s28 + $0x8] sm:$0xff]  ;;  %s12452_s2 = sld [smem:[#allocation22_spill]] }
   0xd   :  { %v104_v5 = vld [vmem:[%s12445_s7] sm:$0xff]  ;;  %v105_v7 = vld [vmem:[%s12445_s7 + $0x8] sm:$0xff]  ;;  %v106_v8 = vld [vmem:[%s12445_s7 + $0x10] sm:$0xff]  ;;  %s12454_s8 = sld [smem:[#allocation24_spill]]  ;;  %s12455_s10 = sld [smem:[#allocation25_spill]] }
   0xe   :  { %7758 = vmatprep.mubr.msk.f32.mxu0 %vm131_vm0, %v104_v5  ;;  %v107_v9 = vld [vmem:[%s12445_s7 + $0x18] sm:$0xff]  ;;  %v108_v10 = vld [vmem:[%s12445_s7 + $0x20] sm:$0xff]  ;;  %v109_v11 = vld [vmem:[%s12445_s7 + $0x28] sm:$0xff]  ;;  %s9799_s15 = smov 88  }
   0xf   :  { %v110_v12 = vld [vmem:[%s12445_s7 + $0x30] sm:$0xff]  ;;  %v111_v13 = vld [vmem:[%s12445_s7 + $0x38] sm:$0xff]  ;;  %v112_v14 = vld [vmem:[%s12445_s7 + $0x40] sm:$0xff] }
  0x10   :  { %v120_v0 = vld [vmem:[%s12444_s11] sm:$0xff]  ;;  %v121_v1 = vld [vmem:[%s12444_s11 + $0x8] sm:$0xff]  ;;  %v122_v2 = vld [vmem:[%s12444_s11 + $0x10] sm:$0xff] }
  0x11   :  { %v9028_v3 = vpack.c.bf16 %v121_v1, %v120_v0  ;;  %v123_v4 = vld [vmem:[%s12444_s11 + $0x18] sm:$0xff]  ;;  %v113_v15 = vld [vmem:[%s12445_s7 + $0x48] sm:$0xff]  ;;  %v114_v16 = vld [vmem:[%s12445_s7 + $0x50] sm:$0xff]  ;;  %s12449_s11 = sld [smem:[#allocation19_spill]] }
  0x12   :  { %v9032_v6 = vpack.c.bf16 %v123_v4, %v122_v2  ;;  %v115_v17 = vld [vmem:[%s12445_s7 + $0x58] sm:$0xff]  ;;  %v116_v18 = vld [vmem:[%s12445_s7 + $0x60] sm:$0xff]  ;;  %v117_v19 = vld [vmem:[%s12445_s7 + $0x68] sm:$0xff]  ;;  %v9068_v2 = vpack.c.bf16 %v487_v63, %v486_v62 }
  0x13   :  { %9029 = vmatprep.subr.bf16.mxu0 %v9028_v3  ;;  %v118_v20 = vld [vmem:[%s12445_s7 + $0x70] sm:$0xff]  ;;  %v119_v21 = vld [vmem:[%s12445_s7 + $0x78] sm:$0xff]  ;;  %v6690_v23 = vld [vmem:[%s12447_s13] ss:$0 sm:$0xff]  ;;  %s9801_s7 = smov 64  }
  0x14   :  { %9031 = vmatpush3.bf16.msra.mxu0 %v9028_v3  ;;  %v488_v3 = vld [vmem:[%s12448_s28 + $0x10] sm:$0xff]  ;;  %v489_v4 = vld [vmem:[%s12448_s28 + $0x18] sm:$0xff]  ;;  %v10051_v5 = vld [vmem:[%s12446_s6 + $0x8] sm:$0xff] }
  0x15   :  { %9033 = vmatprep.subr.bf16.mxu0 %v9032_v6 }
  0x18   :  { %9035 = vmatpush3.bf16.msra.mxu0 %v9032_v6  ;;  %v10056_v6 = vld [vmem:[%s12446_s6 + $0x10] sm:$0xff] }
  0x1b   :  { %7759 = vmatmul.mubr.msk.f32.vlgmr.msra.gmra.mrb[0].mxu0 %vm131_vm0, %v105_v7  ;;  %v9072_v7 = vpack.c.bf16 %v489_v4, %v488_v3 }
  0x1c   :  { %7761 = vmatprep.mubr.msk.f32.mxu0 %vm131_vm0, %v106_v8  ;;  %v490_v8 = vld [vmem:[%s12448_s28 + $0x20] sm:$0xff] }
  0x1f   :  { %7762 = vmatmul.mubr.msk.f32.gmra.mrb[2].mxu0 %vm131_vm0, %v107_v9  ;;  %v491_v9 = vld [vmem:[%s12448_s28 + $0x28] sm:$0xff] }
  0x20   :  { %7764 = vmatprep.mubr.msk.f32.mxu0 %vm131_vm0, %v108_v10  ;;  %v10069_v10 = vld [vmem:[%s12446_s6 + $0x18] sm:$0xff] }
  0x23   :  { %7765 = vmatmul.mubr.msk.f32.gmra.mrb[4].mxu0 %vm131_vm0, %v109_v11  ;;  %v10074_v11 = vld [vmem:[%s12446_s6 + $0x20] sm:$0xff] }
  0x24   :  { %7767 = vmatprep.mubr.msk.f32.mxu0 %vm131_vm0, %v110_v12  ;;  %v9076_v12 = vpack.c.bf16 %v491_v9, %v490_v8 }
  0x27   :  { %7768 = vmatmul.mubr.msk.f32.gmra.mrb[6].mxu0 %vm131_vm0, %v111_v13  ;;  %v492_v13 = vld [vmem:[%s12448_s28 + $0x30] sm:$0xff] }
  0x28   :  { %7770 = vmatprep.mubr.msk.f32.mxu0 %vm131_vm0, %v112_v14  ;;  %v493_v14 = vld [vmem:[%s12448_s28 + $0x38] sm:$0xff] }
  0x2b   :  { %7771 = vmatmul.mubr.msk.f32.gmra.mrb[8].mxu0 %vm131_vm0, %v113_v15  ;;  %v10087_v15 = vld [vmem:[%s12446_s6 + $0x28] sm:$0xff] }
  0x2c   :  { %7773 = vmatprep.mubr.msk.f32.mxu0 %vm131_vm0, %v114_v16  ;;  %v10092_v16 = vld [vmem:[%s12446_s6 + $0x30] sm:$0xff] }
  0x2f   :  { %7774 = vmatmul.mubr.msk.f32.gmra.mrb[10].mxu0 %vm131_vm0, %v115_v17  ;;  %v9080_v17 = vpack.c.bf16 %v493_v14, %v492_v13  ;;  %v816_v13 = vld [vmem:[%s12449_s11 + $0x8] sm:$0xff]  ;;  %v817_v14 = vld [vmem:[%s12449_s11 + $0x10] sm:$0xff] }
  0x30   :  { %7776 = vmatprep.mubr.msk.f32.mxu0 %vm131_vm0, %v116_v18  ;;  %v494_v18 = vld [vmem:[%s12448_s28 + $0x40] sm:$0xff] }
  0x33   :  { %7777 = vmatmul.mubr.msk.f32.gmra.mrb[12].mxu0 %vm131_vm0, %v117_v19  ;;  %v495_v19 = vld [vmem:[%s12448_s28 + $0x48] sm:$0xff] }
  0x34   :  { %7779 = vmatprep.mubr.msk.f32.mxu0 %vm131_vm0, %v118_v20  ;;  %v10105_v20 = vld [vmem:[%s12446_s6 + $0x38] sm:$0xff] }
  0x37   :  { %7780 = vmatmul.mubr.msk.f32.gmra.mrb[14].mxu0 %vm131_vm0, %v119_v21  ;;  %v10110_v21 = vld [vmem:[%s12446_s6 + $0x40] sm:$0xff] }
  0xee   :  { %v7760_v24 = vpop.f32.mrb[0].mxu0 }
  0xef   :  { %v252_v25 = vadd.f32 %v7760_v24, %v6690_v23  ;;  %v246_v26 = vpop.f32.mrb[1].mxu0  ;;  %v496_v24 = vld [vmem:[%s12448_s28 + $0x50] sm:$0xff] }
  0xf0   :  { %v247_v27 = vadd.f32 %v6690_v23, %v246_v26  ;;  %v10123_v26 = vld [vmem:[%s12446_s6 + $0x48] sm:$0xff] }
  0xf2   :  { %v7763_v28 = vpop.f32.mrb[2].mxu0  ;;  %v9036_v29 = vpack.c.bf16 %v252_v25, %v247_v27  ;;  %v497_v25 = vld [vmem:[%s12448_s28 + $0x58] sm:$0xff]  ;;  %v10128_v27 = vld [vmem:[%s12446_s6 + $0x50] sm:$0xff] }
  0xf3   :  { %v262_v30 = vadd.f32 %v7763_v28, %v6690_v23  ;;  %v256_v31 = vpop.f32.mrb[3].mxu0  ;;  %v9088_v28 = vpack.c.bf16 %v497_v25, %v496_v24  ;;  %v820_v24 = vld [vmem:[%s12449_s11 + $0x28] sm:$0xff] }
  0xf4   :  { %v257_v32 = vadd.f32 %v6690_v23, %v256_v31  ;;  %9037 = vmatprep.subr.bf16.mxu1 %v9036_v29  ;;  %v10141_v31 = vld [vmem:[%s12446_s6 + $0x58] sm:$0xff] }
  0xf5   :  { %9039 = vmatpush3.bf16.msra.mxu1 %v9036_v29  ;;  %v498_v29 = vld [vmem:[%s12448_s28 + $0x60] sm:$0xff] }
  0xf6   :  { %v9040_v33 = vpack.c.bf16 %v262_v30, %v257_v32  ;;  %v7766_v34 = vpop.f32.mrb[4].mxu0  ;;  %v499_v30 = vld [vmem:[%s12448_s28 + $0x68] sm:$0xff]  ;;  %v10146_v32 = vld [vmem:[%s12446_s6 + $0x60] sm:$0xff] }
  0xf7   :  { %v272_v35 = vadd.f32 %v7766_v34, %v6690_v23  ;;  %v266_v36 = vpop.f32.mrb[5].mxu0  ;;  %v10153_v34 = vld [vmem:[%s12446_s6 + $0x68] sm:$0xff] }
  0xf8   :  { %v267_v37 = vadd.f32 %v6690_v23, %v266_v36  ;;  %9041 = vmatprep.subr.bf16.mxu1 %v9040_v33  ;;  %v10165_v36 = vld [vmem:[%s12446_s6 + $0x78] sm:$0xff] }
  0xf9   :  { %9043 = vmatpush3.bf16.msra.mxu1 %v9040_v33  ;;  %v9092_v33 = vpack.c.bf16 %v499_v30, %v498_v29  ;;  %v822_v29 = vld [vmem:[%s12449_s11 + $0x38] sm:$0xff] }
  0xfa   :  { %v9044_v38 = vpack.c.bf16 %v272_v35, %v267_v37  ;;  %v7769_v39 = vpop.f32.mrb[6].mxu0  ;;  %v10158_v35 = vld [vmem:[%s12446_s6 + $0x70] sm:$0xff]  ;;  %s12453_s6 = sld [smem:[#allocation23_spill]] }
  0xfb   :  { %v282_v40 = vadd.f32 %v7769_v39, %v6690_v23  ;;  %v276_v41 = vpop.f32.mrb[7].mxu0  ;;  %v500_v37 = vld [vmem:[%s12448_s28 + $0x70] sm:$0xff] }
  0xfc   :  { %v277_v42 = vadd.f32 %v6690_v23, %v276_v41  ;;  %9045 = vmatprep.subr.bf16.mxu1 %v9044_v38 }
  0xfd   :  { %9047 = vmatpush3.bf16.msra.mxu1 %v9044_v38  ;;  %v501_v38 = vld [vmem:[%s12448_s28 + $0x78] sm:$0xff] }
  0xfe   :  { %v9048_v43 = vpack.c.bf16 %v282_v40, %v277_v42  ;;  %v7772_v44 = vpop.f32.mrb[8].mxu0  ;;  %v9096_v39 = vpack.c.bf16 %v501_v38, %v500_v37  ;;  %v824_v37 = vld [vmem:[%s12449_s11 + $0x48] sm:$0xff] }
  0xff   :  { %v292_v45 = vadd.f32 %v7772_v44, %v6690_v23  ;;  %v286_v46 = vpop.f32.mrb[9].mxu0 }
 0x100   :  { %v287_v47 = vadd.f32 %v6690_v23, %v286_v46  ;;  %9049 = vmatprep.subr.bf16.mxu1 %v9048_v43 }
 0x101   :  { %9051 = vmatpush3.bf16.msra.mxu1 %v9048_v43 }
 0x102   :  { %v9052_v48 = vpack.c.bf16 %v292_v45, %v287_v47  ;;  %v7775_v49 = vpop.f32.mrb[10].mxu0 }
 0x103   :  { %v302_v50 = vadd.f32 %v7775_v49, %v6690_v23  ;;  %v296_v51 = vpop.f32.mrb[11].mxu0 }
 0x104   :  { %v297_v52 = vadd.f32 %v6690_v23, %v296_v51  ;;  %9053 = vmatprep.subr.bf16.mxu1 %v9052_v48 }
 0x105   :  { %9055 = vmatpush3.bf16.msra.mxu1 %v9052_v48 }
 0x106   :  { %v9056_v53 = vpack.c.bf16 %v302_v50, %v297_v52  ;;  %v7778_v54 = vpop.f32.mrb[12].mxu0 }
 0x107   :  { %v312_v55 = vadd.f32 %v7778_v54, %v6690_v23  ;;  %v306_v56 = vpop.f32.mrb[13].mxu0 }
 0x108   :  { %v307_v57 = vadd.f32 %v6690_v23, %v306_v56  ;;  %9057 = vmatprep.subr.bf16.mxu1 %v9056_v53 }
 0x109   :  { %9059 = vmatpush3.bf16.msra.mxu1 %v9056_v53 }
 0x10a   :  { %v9060_v58 = vpack.c.bf16 %v312_v55, %v307_v57  ;;  %v7781_v59 = vpop.f32.mrb[14].mxu0 }
 0x10b   :  { %v322_v60 = vadd.f32 %v7781_v59, %v6690_v23  ;;  %v316_v61 = vpop.f32.mrb[15].mxu0 }
 0x10c   :  { %v317_v0 = vadd.f32 %v6690_v23, %v316_v61  ;;  %9061 = vmatprep.subr.bf16.mxu1 %v9060_v58  ;;  %v9084_v23 = vpack.c.bf16 %v495_v19, %v494_v18  ;;  %v818_v18 = vld [vmem:[%s12449_s11 + $0x18] sm:$0xff] }
 0x10d   :  { %9063 = vmatpush3.bf16.msra.mxu1 %v9060_v58  ;;  %v9136_v19 = vpack.c.bf16 %v818_v18, %v817_v14 }
 0x10e   :  { %v9064_v1 = vpack.c.bf16 %v322_v60, %v317_v0 }
 0x110   :  { %9065 = vmatprep.subr.bf16.mxu1 %v9064_v1 }
 0x111   :  { %9067 = vmatpush3.bf16.msra.mxu1 %v9064_v1 }
 0x112   :  { %9069 = vmatprep.subr.bf16.mxu1 %v9068_v2 }
 0x114   :  { %7815 = vmatmul.mubr.f32.vlgmr.msra.gmra.mrb[0].mxu1 %v10051_v5 }
 0x115   :  { %7817 = vmatprep.mubr.f32.mxu1 %v10056_v6  ;;  %9071 = vmatpush3.bf16.msra.mxu1 %v9068_v2 }
 0x116   :  { %9073 = vmatprep.subr.bf16.mxu1 %v9072_v7 }
 0x118   :  { %7818 = vmatmul.mubr.f32.gmra.mrb[2].mxu1 %v10069_v10 }
 0x119   :  { %7820 = vmatprep.mubr.f32.mxu1 %v10074_v11  ;;  %9075 = vmatpush3.bf16.msra.mxu1 %v9072_v7 }
 0x11a   :  { %9077 = vmatprep.subr.bf16.mxu1 %v9076_v12 }
 0x11c   :  { %7821 = vmatmul.mubr.f32.gmra.mrb[4].mxu1 %v10087_v15 }
 0x11d   :  { %7823 = vmatprep.mubr.f32.mxu1 %v10092_v16  ;;  %9079 = vmatpush3.bf16.msra.mxu1 %v9076_v12  ;;  %v815_v12 = vld [vmem:[%s12449_s11] sm:$0xff] }
 0x11e   :  { %9081 = vmatprep.subr.bf16.mxu1 %v9080_v17 }
 0x120   :  { %7824 = vmatmul.mubr.f32.gmra.mrb[6].mxu1 %v10105_v20 }
 0x121   :  { %7826 = vmatprep.mubr.f32.mxu1 %v10110_v21  ;;  %9083 = vmatpush3.bf16.msra.mxu1 %v9080_v17  ;;  %v9132_v17 = vpack.c.bf16 %v816_v13, %v815_v12 }
 0x122   :  { %9085 = vmatprep.subr.bf16.mxu1 %v9084_v23 }
 0x123   :  { %9133 = vmatprep.subr.bf16.mxu0 %v9132_v17 }
 0x124   :  { %7827 = vmatmul.mubr.f32.gmra.mrb[8].mxu1 %v10123_v26  ;;  %9135 = vmatpush3.bf16.msra.mxu0 %v9132_v17 }
 0x125   :  { %7829 = vmatprep.mubr.f32.mxu1 %v10128_v27  ;;  %9087 = vmatpush3.bf16.msra.mxu1 %v9084_v23  ;;  %v819_v23 = vld [vmem:[%s12449_s11 + $0x20] sm:$0xff] }
 0x126   :  { %9089 = vmatprep.subr.bf16.mxu1 %v9088_v28  ;;  %9137 = vmatprep.subr.bf16.mxu0 %v9136_v19  ;;  %v9140_v25 = vpack.c.bf16 %v820_v24, %v819_v23 }
 0x128   :  { %7830 = vmatmul.mubr.f32.gmra.mrb[10].mxu1 %v10141_v31  ;;  %9139 = vmatpush3.bf16.msra.mxu0 %v9136_v19 }
 0x129   :  { %7832 = vmatprep.mubr.f32.mxu1 %v10146_v32  ;;  %9091 = vmatpush3.bf16.msra.mxu1 %v9088_v28  ;;  %v821_v28 = vld [vmem:[%s12449_s11 + $0x30] sm:$0xff] }
 0x12a   :  { %9093 = vmatprep.subr.bf16.mxu1 %v9092_v33  ;;  %9141 = vmatprep.subr.bf16.mxu0 %v9140_v25  ;;  %v9144_v30 = vpack.c.bf16 %v822_v29, %v821_v28 }
 0x12c   :  { %7833 = vmatmul.mubr.f32.gmra.mrb[12].mxu1 %v10153_v34  ;;  %9143 = vmatpush3.bf16.msra.mxu0 %v9140_v25 }
 0x12d   :  { %7835 = vmatprep.mubr.f32.mxu1 %v10158_v35  ;;  %9095 = vmatpush3.bf16.msra.mxu1 %v9092_v33  ;;  %v823_v33 = vld [vmem:[%s12449_s11 + $0x40] sm:$0xff] }
 0x12e   :  { %9097 = vmatprep.subr.bf16.mxu1 %v9096_v39  ;;  %9145 = vmatprep.subr.bf16.mxu0 %v9144_v30  ;;  %v9148_v38 = vpack.c.bf16 %v824_v37, %v823_v33 }
 0x130   :  { %7836 = vmatmul.mubr.f32.gmra.mrb[14].mxu1 %v10165_v36  ;;  %9147 = vmatpush3.bf16.msra.mxu0 %v9144_v30 }
 0x131   :  { %9099 = vmatpush3.bf16.msra.mxu1 %v9096_v39  ;;  %v825_v39 = vld [vmem:[%s12449_s11 + $0x50] sm:$0xff]  ;;  %9149 = vmatprep.subr.bf16.mxu0 %v9148_v38 }
 0x134   :  { %9151 = vmatpush3.bf16.msra.mxu0 %v9148_v38  ;;  %v829_v38 = vld [vmem:[%s12449_s11 + $0x70] sm:$0xff] }
 0x1e7   :  { %v7816_v40 = vpop.f32.mrb[0].mxu1 }
 0x1e8   :  { %v391_v41 = vpop.f32.mrb[1].mxu1  ;;  %v471_v43 = vmax.f32 %v7816_v40, 0.0  ;;  %v826_v40 = vld [vmem:[%s12449_s11 + $0x58] sm:$0xff] }
 0x1e9   :  { %v470_v42 = vmax.f32 %v391_v41, 0.0  ;;  %v9152_v41 = vpack.c.bf16 %v826_v40, %v825_v39  ;;  %v830_v39 = vld [vmem:[%s12449_s11 + $0x78] sm:$0xff] }
 0x1ea   :  { %v9160_v40 = vpack.c.bf16 %v830_v39, %v829_v38 }
 0x1eb   :  { %v7819_v44 = vpop.f32.mrb[2].mxu1  ;;  %7870 = vmatprep.mubr.f32.mxu1 %v470_v42  ;;  %v827_v42 = vld [vmem:[%s12449_s11 + $0x60] sm:$0xff]  ;;  %9153 = vmatprep.subr.bf16.mxu0 %v9152_v41 }
 0x1ec   :  { %v401_v45 = vpop.f32.mrb[3].mxu1  ;;  %7871 = vmatmul.mubr.f32.vlgmr.msra.gmra.mrb[16].mxu1 %v471_v43  ;;  %v473_v47 = vmax.f32 %v7819_v44, 0.0  ;;  %v828_v43 = vld [vmem:[%s12449_s11 + $0x68] sm:$0xff]  ;;  %9155 = vmatpush3.bf16.msra.mxu0 %v9152_v41  ;;  %s9796_s11 = smov 112  }
 0x1ed   :  { %v472_v46 = vmax.f32 %v401_v45, 0.0  ;;  %v9156_v44 = vpack.c.bf16 %v828_v43, %v827_v42  ;;  %v6707_v45 = vld [vmem:[%s12450_s30] ss:$0 sm:$0xff] }
 0x1ef   :  { %v7822_v48 = vpop.f32.mrb[4].mxu1  ;;  %7873 = vmatprep.mubr.f32.mxu1 %v472_v46  ;;  %9157 = vmatprep.subr.bf16.mxu0 %v9156_v44 }
 0x1f0   :  { %v411_v49 = vpop.f32.mrb[5].mxu1  ;;  %7874 = vmatmul.mubr.f32.gmra.mrb[18].mxu1 %v473_v47  ;;  %v475_v51 = vmax.f32 %v7822_v48, 0.0  ;;  %9159 = vmatpush3.bf16.msra.mxu0 %v9156_v44 }
 0x1f1   :  { %v474_v50 = vmax.f32 %v411_v49, 0.0  ;;  %9161 = vmatprep.subr.bf16.mxu0 %v9160_v40 }
 0x1f3   :  { %v7825_v52 = vpop.f32.mrb[6].mxu1  ;;  %7876 = vmatprep.mubr.f32.mxu1 %v474_v50 }
 0x1f4   :  { %v421_v53 = vpop.f32.mrb[7].mxu1  ;;  %7877 = vmatmul.mubr.f32.gmra.mrb[20].mxu1 %v475_v51  ;;  %v477_v55 = vmax.f32 %v7825_v52, 0.0  ;;  %9163 = vmatpush3.bf16.msra.mxu0 %v9160_v40 }
 0x1f5   :  { %v476_v54 = vmax.f32 %v421_v53, 0.0 }
 0x1f7   :  { %v7828_v56 = vpop.f32.mrb[8].mxu1  ;;  %7879 = vmatprep.mubr.f32.mxu1 %v476_v54 }
 0x1f8   :  { %v431_v57 = vpop.f32.mrb[9].mxu1  ;;  %7880 = vmatmul.mubr.f32.gmra.mrb[22].mxu1 %v477_v55  ;;  %v479_v59 = vmax.f32 %v7828_v56, 0.0 }
 0x1f9   :  { %v478_v58 = vmax.f32 %v431_v57, 0.0 }
 0x1fb   :  { %v7831_v60 = vpop.f32.mrb[10].mxu1  ;;  %7882 = vmatprep.mubr.f32.mxu1 %v478_v58 }
 0x1fc   :  { %v441_v61 = vpop.f32.mrb[11].mxu1  ;;  %7883 = vmatmul.mubr.f32.gmra.mrb[24].mxu1 %v479_v59  ;;  %v481_v63 = vmax.f32 %v7831_v60, 0.0 }
 0x1fd   :  { %v480_v62 = vmax.f32 %v441_v61, 0.0 }
 0x1ff   :  { %v7834_v0 = vpop.f32.mrb[12].mxu1  ;;  %7885 = vmatprep.mubr.f32.mxu1 %v480_v62 }
 0x200   :  { %v451_v1 = vpop.f32.mrb[13].mxu1  ;;  %7886 = vmatmul.mubr.f32.gmra.mrb[26].mxu1 %v481_v63  ;;  %v483_v3 = vmax.f32 %v7834_v0, 0.0 }
 0x201   :  { %v482_v2 = vmax.f32 %v451_v1, 0.0 }
 0x203   :  { %v7837_v4 = vpop.f32.mrb[14].mxu1  ;;  %7888 = vmatprep.mubr.f32.mxu1 %v482_v2 }
 0x204   :  { %v461_v7 = vpop.f32.mrb[15].mxu1  ;;  %7889 = vmatmul.mubr.f32.gmra.mrb[28].mxu1 %v483_v3  ;;  %v485_v9 = vmax.f32 %v7837_v4, 0.0 }
 0x205   :  { %v484_v8 = vmax.f32 %v461_v7, 0.0 }
 0x207   :  { %7891 = vmatprep.mubr.f32.mxu1 %v484_v8 }
 0x208   :  { %7892 = vmatmul.mubr.f32.gmra.mrb[30].mxu1 %v485_v9 }
 0x209   :  { %7926 = vmatprep.mubr.f32.mxu1 %v10030_v22 }
 0x2bf   :  { %v7872_v46 = vpop.f32.mrb[16].mxu1 }
 0x2c0   :  { %v581_v47 = vadd.f32 %v7872_v46, %v6707_v45  ;;  %v575_v48 = vpop.f32.mrb[17].mxu1 }
 0x2c1   :  { %v576_v49 = vadd.f32 %v6707_v45, %v575_v48 }
 0x2c3   :  { %v9100_v50 = vpack.c.bf16 %v581_v47, %v576_v49  ;;  %v7875_v51 = vpop.f32.mrb[18].mxu1 }
 0x2c4   :  { %v591_v52 = vadd.f32 %v7875_v51, %v6707_v45  ;;  %v585_v53 = vpop.f32.mrb[19].mxu1 }
 0x2c5   :  { %v586_v54 = vadd.f32 %v6707_v45, %v585_v53  ;;  %9101 = vmatprep.subr.bf16.mxu1 %v9100_v50 }
 0x2c6   :  { %9103 = vmatpush3.bf16.msra.mxu1 %v9100_v50 }
 0x2c7   :  { %v9104_v55 = vpack.c.bf16 %v591_v52, %v586_v54  ;;  %v7878_v56 = vpop.f32.mrb[20].mxu1 }
 0x2c8   :  { %v601_v57 = vadd.f32 %v7878_v56, %v6707_v45  ;;  %v595_v58 = vpop.f32.mrb[21].mxu1 }
 0x2c9   :  { %v596_v59 = vadd.f32 %v6707_v45, %v595_v58  ;;  %9105 = vmatprep.subr.bf16.mxu1 %v9104_v55 }
 0x2ca   :  { %9107 = vmatpush3.bf16.msra.mxu1 %v9104_v55 }
 0x2cb   :  { %v9108_v60 = vpack.c.bf16 %v601_v57, %v596_v59  ;;  %v7881_v61 = vpop.f32.mrb[22].mxu1 }
 0x2cc   :  { %v611_v62 = vadd.f32 %v7881_v61, %v6707_v45  ;;  %v605_v63 = vpop.f32.mrb[23].mxu1 }
 0x2cd   :  { %v606_v0 = vadd.f32 %v6707_v45, %v605_v63  ;;  %9109 = vmatprep.subr.bf16.mxu1 %v9108_v60 }
 0x2ce   :  { %9111 = vmatpush3.bf16.msra.mxu1 %v9108_v60 }
 0x2cf   :  { %v9112_v1 = vpack.c.bf16 %v611_v62, %v606_v0  ;;  %v7884_v2 = vpop.f32.mrb[24].mxu1 }
 0x2d0   :  { %v621_v3 = vadd.f32 %v7884_v2, %v6707_v45  ;;  %v615_v4 = vpop.f32.mrb[25].mxu1 }
 0x2d1   :  { %v616_v7 = vadd.f32 %v6707_v45, %v615_v4  ;;  %9113 = vmatprep.subr.bf16.mxu1 %v9112_v1 }
 0x2d2   :  { %9115 = vmatpush3.bf16.msra.mxu1 %v9112_v1 }
 0x2d3   :  { %v9116_v8 = vpack.c.bf16 %v621_v3, %v616_v7  ;;  %v7887_v9 = vpop.f32.mrb[26].mxu1 }
 0x2d4   :  { %v631_v12 = vadd.f32 %v7887_v9, %v6707_v45  ;;  %v625_v13 = vpop.f32.mrb[27].mxu1 }
 0x2d5   :  { %v626_v14 = vadd.f32 %v6707_v45, %v625_v13  ;;  %9117 = vmatprep.subr.bf16.mxu1 %v9116_v8 }
 0x2d6   :  { %9119 = vmatpush3.bf16.msra.mxu1 %v9116_v8 }
 0x2d7   :  { %v9120_v17 = vpack.c.bf16 %v631_v12, %v626_v14  ;;  %v7890_v18 = vpop.f32.mrb[28].mxu1  ;;  %v6708_v12 = vld [vmem:[%s12451_s29] ss:$0 sm:$0xff]  ;;  %s9806_s29 = smov 40  }
 0x2d8   :  { %v641_v19 = vadd.f32 %v7890_v18, %v6707_v45  ;;  %v635_v23 = vpop.f32.mrb[29].mxu1 }
 0x2d9   :  { %v636_v24 = vadd.f32 %v6707_v45, %v635_v23  ;;  %9121 = vmatprep.subr.bf16.mxu1 %v9120_v17 }
 0x2da   :  { %9123 = vmatpush3.bf16.msra.mxu1 %v9120_v17 }
 0x2db   :  { %v9124_v25 = vpack.c.bf16 %v641_v19, %v636_v24  ;;  %v7893_v28 = vpop.f32.mrb[30].mxu1 }
 0x2dc   :  { %v651_v29 = vadd.f32 %v7893_v28, %v6707_v45  ;;  %v645_v30 = vpop.f32.mrb[31].mxu1 }
 0x2dd   :  { %v646_v33 = vadd.f32 %v6707_v45, %v645_v30  ;;  %9125 = vmatprep.subr.bf16.mxu1 %v9124_v25 }
 0x2de   :  { %9127 = vmatpush3.bf16.msra.mxu1 %v9124_v25 }
 0x2df   :  { %v9128_v37 = vpack.c.bf16 %v651_v29, %v646_v33 }
 0x2e1   :  { %9129 = vmatprep.subr.bf16.mxu1 %v9128_v37 }
 0x2e2   :  { %9131 = vmatpush3.bf16.msra.mxu1 %v9128_v37 }
 0x2e5   :  { %7927 = vmatmul.mubr.f32.vlgmr.msra.gmra.mrb[32].mxu1 %v10051_v5 }
 0x2e6   :  { %7929 = vmatprep.mubr.f32.mxu1 %v10056_v6 }
 0x2e9   :  { %7930 = vmatmul.mubr.f32.gmra.mrb[34].mxu1 %v10069_v10 }
 0x2ea   :  { %7932 = vmatprep.mubr.f32.mxu1 %v10074_v11 }
 0x2ed   :  { %7933 = vmatmul.mubr.f32.gmra.mrb[36].mxu1 %v10087_v15 }
 0x2ee   :  { %7935 = vmatprep.mubr.f32.mxu1 %v10092_v16 }
 0x2f1   :  { %7936 = vmatmul.mubr.f32.gmra.mrb[38].mxu1 %v10105_v20 }
 0x2f2   :  { %7938 = vmatprep.mubr.f32.mxu1 %v10110_v21 }
 0x2f5   :  { %7939 = vmatmul.mubr.f32.gmra.mrb[40].mxu1 %v10123_v26 }
 0x2f6   :  { %7941 = vmatprep.mubr.f32.mxu1 %v10128_v27 }
 0x2f9   :  { %7942 = vmatmul.mubr.f32.gmra.mrb[42].mxu1 %v10141_v31 }
 0x2fa   :  { %7944 = vmatprep.mubr.f32.mxu1 %v10146_v32 }
 0x2fd   :  { %7945 = vmatmul.mubr.f32.gmra.mrb[44].mxu1 %v10153_v34 }
 0x2fe   :  { %7947 = vmatprep.mubr.f32.mxu1 %v10158_v35 }
 0x301   :  { %7948 = vmatmul.mubr.f32.gmra.mrb[46].mxu1 %v10165_v36 }
 0x302   :  { %8038 = vmatprep.mubr.f32.mxu1 %v10030_v22 }
 0x3b8   :  { %v7928_v41 = vpop.f32.mrb[32].mxu1 }
 0x3b9   :  { %v720_v42 = vpop.f32.mrb[33].mxu1  ;;  %v800_v44 = vmax.f32 %v7928_v41, 0.0 }
 0x3ba   :  { %v799_v43 = vmax.f32 %v720_v42, 0.0 }
 0x3bc   :  { %v7931_v45 = vpop.f32.mrb[34].mxu1  ;;  %7982 = vmatprep.mubr.f32.mxu0 %v799_v43 }
 0x3bd   :  { %v730_v46 = vpop.f32.mrb[35].mxu1  ;;  %7983 = vmatmul.mubr.f32.vlgmr.msra.gmra.mrb[16].mxu0 %v800_v44  ;;  %v802_v47 = vmax.f32 %v7931_v45, 0.0 }
 0x3be   :  { %v801_v22 = vmax.f32 %v730_v46, 0.0 }
 0x3c0   :  { %v7934_v48 = vpop.f32.mrb[36].mxu1  ;;  %7985 = vmatprep.mubr.f32.mxu0 %v801_v22 }
 0x3c1   :  { %v740_v49 = vpop.f32.mrb[37].mxu1  ;;  %7986 = vmatmul.mubr.f32.gmra.mrb[18].mxu0 %v802_v47  ;;  %v804_v51 = vmax.f32 %v7934_v48, 0.0 }
 0x3c2   :  { %v803_v50 = vmax.f32 %v740_v49, 0.0 }
 0x3c4   :  { %v7937_v52 = vpop.f32.mrb[38].mxu1  ;;  %7988 = vmatprep.mubr.f32.mxu0 %v803_v50 }
 0x3c5   :  { %v750_v53 = vpop.f32.mrb[39].mxu1  ;;  %7989 = vmatmul.mubr.f32.gmra.mrb[20].mxu0 %v804_v51  ;;  %v806_v55 = vmax.f32 %v7937_v52, 0.0 }
 0x3c6   :  { %v805_v54 = vmax.f32 %v750_v53, 0.0 }
 0x3c8   :  { %v7940_v56 = vpop.f32.mrb[40].mxu1  ;;  %7991 = vmatprep.mubr.f32.mxu0 %v805_v54 }
 0x3c9   :  { %v760_v57 = vpop.f32.mrb[41].mxu1  ;;  %7992 = vmatmul.mubr.f32.gmra.mrb[22].mxu0 %v806_v55  ;;  %v808_v59 = vmax.f32 %v7940_v56, 0.0 }
 0x3ca   :  { %v807_v58 = vmax.f32 %v760_v57, 0.0 }
 0x3cc   :  { %v7943_v60 = vpop.f32.mrb[42].mxu1  ;;  %7994 = vmatprep.mubr.f32.mxu0 %v807_v58 }
 0x3cd   :  { %v770_v61 = vpop.f32.mrb[43].mxu1  ;;  %7995 = vmatmul.mubr.f32.gmra.mrb[24].mxu0 %v808_v59  ;;  %v810_v63 = vmax.f32 %v7943_v60, 0.0 }
 0x3ce   :  { %v809_v62 = vmax.f32 %v770_v61, 0.0 }
 0x3d0   :  { %v7946_v0 = vpop.f32.mrb[44].mxu1  ;;  %7997 = vmatprep.mubr.f32.mxu0 %v809_v62 }
 0x3d1   :  { %v780_v1 = vpop.f32.mrb[45].mxu1  ;;  %7998 = vmatmul.mubr.f32.gmra.mrb[26].mxu0 %v810_v63  ;;  %v812_v3 = vmax.f32 %v7946_v0, 0.0 }
 0x3d2   :  { %v811_v2 = vmax.f32 %v780_v1, 0.0 }
 0x3d4   :  { %v7949_v4 = vpop.f32.mrb[46].mxu1  ;;  %8000 = vmatprep.mubr.f32.mxu0 %v811_v2 }
 0x3d5   :  { %v790_v7 = vpop.f32.mrb[47].mxu1  ;;  %8001 = vmatmul.mubr.f32.gmra.mrb[28].mxu0 %v812_v3  ;;  %v814_v9 = vmax.f32 %v7949_v4, 0.0 }
 0x3d6   :  { %v813_v8 = vmax.f32 %v790_v7, 0.0 }
 0x3d8   :  { %8003 = vmatprep.mubr.f32.mxu0 %v813_v8 }
 0x3d9   :  { %8004 = vmatmul.mubr.f32.gmra.mrb[30].mxu0 %v814_v9 }
 0x490   :  { %v7984_v13 = vpop.f32.mrb[16].mxu0 }
 0x491   :  { %v910_v14 = vadd.f32 %v7984_v13, %v6708_v12  ;;  %v904_v17 = vpop.f32.mrb[17].mxu0 }
 0x492   :  { %v905_v18 = vadd.f32 %v6708_v12, %v904_v17 }
 0x494   :  { %v9164_v19 = vpack.c.bf16 %v910_v14, %v905_v18  ;;  %v7987_v23 = vpop.f32.mrb[18].mxu0 }
 0x495   :  { %v920_v24 = vadd.f32 %v7987_v23, %v6708_v12  ;;  %v914_v25 = vpop.f32.mrb[19].mxu0 }
 0x496   :  { %v915_v28 = vadd.f32 %v6708_v12, %v914_v25  ;;  %9165 = vmatprep.subr.bf16.mxu1 %v9164_v19 }
 0x497   :  { %9167 = vmatpush3.bf16.msra.mxu1 %v9164_v19 }
 0x498   :  { %v9168_v29 = vpack.c.bf16 %v920_v24, %v915_v28  ;;  %v7990_v30 = vpop.f32.mrb[20].mxu0 }
 0x499   :  { %v930_v33 = vadd.f32 %v7990_v30, %v6708_v12  ;;  %v924_v37 = vpop.f32.mrb[21].mxu0 }
 0x49a   :  { %v925_v38 = vadd.f32 %v6708_v12, %v924_v37  ;;  %9169 = vmatprep.subr.bf16.mxu1 %v9168_v29 }
 0x49b   :  { %9171 = vmatpush3.bf16.msra.mxu1 %v9168_v29 }
 0x49c   :  { %v9172_v39 = vpack.c.bf16 %v930_v33, %v925_v38  ;;  %v7993_v40 = vpop.f32.mrb[22].mxu0 }
 0x49d   :  { %v940_v41 = vadd.f32 %v7993_v40, %v6708_v12  ;;  %v934_v42 = vpop.f32.mrb[23].mxu0 }
 0x49e   :  { %v935_v43 = vadd.f32 %v6708_v12, %v934_v42  ;;  %9173 = vmatprep.subr.bf16.mxu1 %v9172_v39 }
 0x49f   :  { %9175 = vmatpush3.bf16.msra.mxu1 %v9172_v39 }
 0x4a0   :  { %v9176_v44 = vpack.c.bf16 %v940_v41, %v935_v43  ;;  %v7996_v45 = vpop.f32.mrb[24].mxu0 }
 0x4a1   :  { %v950_v46 = vadd.f32 %v7996_v45, %v6708_v12  ;;  %v944_v22 = vpop.f32.mrb[25].mxu0 }
 0x4a2   :  { %v945_v47 = vadd.f32 %v6708_v12, %v944_v22  ;;  %9177 = vmatprep.subr.bf16.mxu1 %v9176_v44  ;;  %v1232_v22 = vld [vmem:[%s12453_s6 + $0x8] sm:$0xff] }
 0x4a3   :  { %9179 = vmatpush3.bf16.msra.mxu1 %v9176_v44 }
 0x4a4   :  { %v9180_v48 = vpack.c.bf16 %v950_v46, %v945_v47  ;;  %v7999_v49 = vpop.f32.mrb[26].mxu0  ;;  %v1231_v46 = vld [vmem:[%s12453_s6] sm:$0xff] }
 0x4a5   :  { %v960_v50 = vadd.f32 %v7999_v49, %v6708_v12  ;;  %v954_v51 = vpop.f32.mrb[27].mxu0  ;;  %v1144_v47 = vld [vmem:[%s12454_s8] sm:$0x1]  ;;  %v1233_v49 = vld [vmem:[%s12453_s6 + $0x10] sm:$0xff]  ;;  %s9803_s8 = smov 32  }
 0x4a6   :  { %v955_v52 = vadd.f32 %v6708_v12, %v954_v51  ;;  %9181 = vmatprep.subr.bf16.mxu1 %v9180_v48 }
 0x4a7   :  { %9183 = vmatpush3.bf16.msra.mxu1 %v9180_v48  ;;  %v9221_v48 = vpack.c.bf16 %v1232_v22, %v1231_v46 }
 0x4a8   :  { %v9184_v53 = vpack.c.bf16 %v960_v50, %v955_v52  ;;  %v8002_v54 = vpop.f32.mrb[28].mxu0  ;;  %v1234_v50 = vld [vmem:[%s12453_s6 + $0x18] sm:$0xff]  ;;  %v1235_v52 = vld [vmem:[%s12453_s6 + $0x20] sm:$0xff] }
 0x4a9   :  { %v970_v55 = vadd.f32 %v8002_v54, %v6708_v12  ;;  %v964_v56 = vpop.f32.mrb[29].mxu0  ;;  %v9224_v51 = vpack.c.bf16 %v1234_v50, %v1233_v49 }
 0x4aa   :  { %v965_v57 = vadd.f32 %v6708_v12, %v964_v56  ;;  %9185 = vmatprep.subr.bf16.mxu1 %v9184_v53  ;;  %v1238_v56 = vld [vmem:[%s12453_s6 + $0x38] sm:$0xff] }
 0x4ab   :  { %9187 = vmatpush3.bf16.msra.mxu1 %v9184_v53  ;;  %v1236_v53 = vld [vmem:[%s12453_s6 + $0x28] sm:$0xff] }
 0x4ac   :  { %v9188_v58 = vpack.c.bf16 %v970_v55, %v965_v57  ;;  %v8005_v59 = vpop.f32.mrb[30].mxu0  ;;  %v9227_v54 = vpack.c.bf16 %v1236_v53, %v1235_v52  ;;  %v1237_v55 = vld [vmem:[%s12453_s6 + $0x30] sm:$0xff] }
 0x4ad   :  { %v980_v60 = vadd.f32 %v8005_v59, %v6708_v12  ;;  %v974_v61 = vpop.f32.mrb[31].mxu0  ;;  %v9230_v57 = vpack.c.bf16 %v1238_v56, %v1237_v55  ;;  %v1240_v59 = vld [vmem:[%s12453_s6 + $0x48] sm:$0xff] }
 0x4ae   :  { %v975_v62 = vadd.f32 %v6708_v12, %v974_v61  ;;  %9189 = vmatprep.subr.bf16.mxu1 %v9188_v58  ;;  %v1241_v61 = vld [vmem:[%s12453_s6 + $0x50] sm:$0xff] }
 0x4af   :  { %9191 = vmatpush3.bf16.msra.mxu1 %v9188_v58  ;;  %v1239_v58 = vld [vmem:[%s12453_s6 + $0x40] sm:$0xff] }
 0x4b0   :  { %v9192_v63 = vpack.c.bf16 %v980_v60, %v975_v62  ;;  %v9233_v60 = vpack.c.bf16 %v1240_v59, %v1239_v58  ;;  %v1242_v62 = vld [vmem:[%s12453_s6 + $0x58] sm:$0xff] }
 0x4b2   :  { %9193 = vmatprep.subr.bf16.mxu1 %v9192_v63 }
 0x4b3   :  { %9195 = vmatpush3.bf16.msra.mxu1 %v9192_v63  ;;  %v9236_v63 = vpack.c.bf16 %v1242_v62, %v1241_v61 }
 0x4b6   :  { %8039 = vmatmul.mubr.f32.vlgmr.msra.gmra.mrb[48].mxu1 %v10051_v5  ;;  %v9792_v5 = vmov 0.0|0.0  }
 0x4b7   :  { %8041 = vmatprep.mubr.f32.mxu1 %v10056_v6  ;;  %9196 = vmatprep.subr.bf16.mxu1 %v9792_v5  ;;  %v9794_v6 = vmov 0.0  }
 0x4ba   :  { %8042 = vmatmul.mubr.f32.gmra.mrb[50].mxu1 %v10069_v10  ;;  %v9795_v10 = vmov 0  }
 0x4bb   :  { %8044 = vmatprep.mubr.f32.mxu1 %v10074_v11  ;;  %9775 = vset.pattern.permute.xlu0 %v9795_v10  ;;  %v32_v11 = vstv %s12452_s2  ;;  %v1243_v10 = vld [vmem:[%s12453_s6 + $0x60] sm:$0xff] }
 0x4bc   :  { %33 = vst [vmem:[#allocation2] sm:$0x1] %v32_v11  ;;  %v1244_v11 = vld [vmem:[%s12453_s6 + $0x68] sm:$0xff] }
 0x4be   :  { %8045 = vmatmul.mubr.f32.gmra.mrb[52].mxu1 %v10087_v15 }
 0x4bf   :  { %8047 = vmatprep.mubr.f32.mxu1 %v10092_v16 }
 0x4c2   :  { %8048 = vmatmul.mubr.f32.gmra.mrb[54].mxu1 %v10105_v20 }
 0x4c3   :  { %8050 = vmatprep.mubr.f32.mxu1 %v10110_v21  ;;  %v1145_v15 = vld [vmem:[#allocation2] sm:$0x1] }
 0x4c4   :  { %1148 = vperm.xlu0 %9775, %v1145_v15   ;;  %v9239_v15 = vpack.c.bf16 %v1244_v11, %v1243_v10  ;;  %v10589_v10 = vld [vmem:[%s12410_s16] sm:$0xf]  ;;  %s9802_s16 = smov 72  }
 0x4c6   :  { %8051 = vmatmul.mubr.f32.gmra.mrb[56].mxu1 %v10123_v26 }
 0x4c7   :  { %8053 = vmatprep.mubr.f32.mxu1 %v10128_v27 }
 0x4ca   :  { %8054 = vmatmul.mubr.f32.gmra.mrb[58].mxu1 %v10141_v31 }
 0x4cb   :  { %8056 = vmatprep.mubr.f32.mxu1 %v10146_v32 }
 0x4ce   :  { %8057 = vmatmul.mubr.f32.gmra.mrb[60].mxu1 %v10153_v34 }
 0x4cf   :  { %8059 = vmatprep.mubr.f32.mxu1 %v10158_v35 }
 0x4d2   :  { %8060 = vmatmul.mubr.f32.gmra.mrb[62].mxu1 %v10165_v36 }
 0x4d3   :  { %8094 = vmatprep.mubr.msk.f32.mxu1 %vm9793_vm1, %v9794_v6 }
 0x589   :  { %v8040_v16 = vpop.f32.mrb[48].mxu1 }
 0x58a   :  { %v1129_v20 = vmax.f32 %v8040_v16, 0.0  ;;  %v1049_v21 = vpop.f32.mrb[49].mxu1  ;;  %v1245_v16 = vld [vmem:[%s12453_s6 + $0x70] sm:$0xff] }
 0x58b   :  { %v1128_v26 = vmax.f32 %v1049_v21, 0.0 }
 0x58d   :  { %v9197_v27 = vpack.c.bf16 %v1129_v20, %v1128_v26  ;;  %v8043_v31 = vpop.f32.mrb[50].mxu1  ;;  %v1246_v20 = vld [vmem:[%s12453_s6 + $0x78] sm:$0xff]  ;;  %v1318_v26 = vld [vmem:[%s12455_s10 + $0x8] sm:$0xff]  ;;  %s9797_s6 = smov 104  }
 0x58e   :  { %v1131_v32 = vmax.f32 %v8043_v31, 0.0  ;;  %v1059_v34 = vpop.f32.mrb[51].mxu1  ;;  %v9242_v21 = vpack.c.bf16 %v1246_v20, %v1245_v16 }
 0x58f   :  { %9198 = vmatpush3.bf16.xpose.msra.mxu1 %v9197_v27  ;;  %v1130_v35 = vmax.f32 %v1059_v34, 0.0  ;;  %v1322_v27 = vld [vmem:[%s12455_s10 + $0x28] sm:$0xff] }
 0x590   :  { %9199 = vmatprep.subr.bf16.mxu1 %v9792_v5  ;;  %v9244_v31 = vpack.c.bf16 %v1322_v27, %v1318_v26 }
 0x591   :  { %v9200_v36 = vpack.c.bf16 %v1131_v32, %v1130_v35  ;;  %v8046_v0 = vpop.f32.mrb[52].mxu1  ;;  %v1149_v35 = vpop.permute.xlu0 %1148 }
 0x592   :  { %v1133_v1 = vmax.f32 %v8046_v0, 0.0  ;;  %v1069_v2 = vpop.f32.mrb[53].mxu1 }
 0x593   :  { %v1132_v3 = vmax.f32 %v1069_v2, 0.0 }
 0x595   :  { %v9203_v4 = vpack.c.bf16 %v1133_v1, %v1132_v3  ;;  %v8049_v7 = vpop.f32.mrb[54].mxu1  ;;  %v1317_v3 = vld [vmem:[%s12455_s10] sm:$0xff] }
 0x596   :  { %v1135_v8 = vmax.f32 %v8049_v7, 0.0  ;;  %v1079_v9 = vpop.f32.mrb[55].mxu1  ;;  %v1225_v7 = vld [vmem:[%s12408_s12] sm:$0xff]  ;;  %s9805_s12 = smov 48  }
 0x597   :  { %9201 = vmatpush3.bf16.xpose.msra.mxu1 %v9200_v36  ;;  %v1134_v12 = vmax.f32 %v1079_v9, 0.0 }
 0x598   :  { %9202 = vmatprep.subr.bf16.mxu1 %v9792_v5 }
 0x599   :  { %v9206_v13 = vpack.c.bf16 %v1135_v8, %v1134_v12  ;;  %v8052_v14 = vpop.f32.mrb[56].mxu1 }
 0x59a   :  { %v1137_v17 = vmax.f32 %v8052_v14, 0.0  ;;  %v1089_v18 = vpop.f32.mrb[57].mxu1  ;;  %v1324_v14 = vld [vmem:[%s12455_s10 + $0x38] sm:$0xff] }
 0x59b   :  { %v1136_v19 = vmax.f32 %v1089_v18, 0.0  ;;  %v10366_v18 = vld [vmem:[%s12409_s14] sm:$0xff] }
 0x59c   :  { %1916 = vrot.lane.b32.xlu1 %v10366_v18, %s9796_s11  ;;  %8160 = vmatprep.mubr.msk.f32.mxu0 %vm1561_vm3, %v10366_v18 }
 0x59d   :  { %v9209_v23 = vpack.c.bf16 %v1137_v17, %v1136_v19  ;;  %v8055_v24 = vpop.f32.mrb[58].mxu1  ;;  %v10373_v19 = vld [vmem:[%s12409_s14 + $0x8] sm:$0xff] }
 0x59e   :  { %v1139_v25 = vmax.f32 %v8055_v24, 0.0  ;;  %v1099_v28 = vpop.f32.mrb[59].mxu1  ;;  %v10387_v24 = vld [vmem:[%s12409_s14 + $0x18] sm:$0xff] }
 0x59f   :  { %9204 = vmatpush3.bf16.xpose.msra.mxu1 %v9203_v4  ;;  %v1138_v29 = vmax.f32 %v1099_v28, 0.0  ;;  %v1321_v4 = vld [vmem:[%s12455_s10 + $0x20] sm:$0xff]  ;;  %v10401_v28 = vld [vmem:[%s12409_s14 + $0x28] sm:$0xff] }
 0x5a0   :  { %9205 = vmatprep.subr.bf16.mxu1 %v9792_v5  ;;  %v9246_v9 = vpack.c.bf16 %v1321_v4, %v1317_v3  ;;  %1918 = vrot.lane.b32.xlu1 %v10373_v19, %s9796_s11 }
 0x5a1   :  { %v9212_v30 = vpack.c.bf16 %v1139_v25, %v1138_v29  ;;  %v8058_v33 = vpop.f32.mrb[60].mxu1  ;;  %v10392_v25 = vld [vmem:[%s12409_s14 + $0x20] sm:$0xff]  ;;  %v10406_v29 = vld [vmem:[%s12409_s14 + $0x30] sm:$0xff] }
 0x5a2   :  { %v1141_v37 = vmax.f32 %v8058_v33, 0.0  ;;  %v1109_v38 = vpop.f32.mrb[61].mxu1  ;;  %v10420_v33 = vld [vmem:[%s12409_s14 + $0x40] sm:$0xff] }
 0x5a3   :  { %v1140_v39 = vmax.f32 %v1109_v38, 0.0  ;;  %v10434_v38 = vld [vmem:[%s12409_s14 + $0x50] sm:$0xff] }
 0x5a4   :  { %1922 = vrot.lane.b32.xlu1 %v10387_v24, %s9796_s11 }
 0x5a5   :  { %v9215_v40 = vpack.c.bf16 %v1141_v37, %v1140_v39  ;;  %v8061_v41 = vpop.f32.mrb[62].mxu1  ;;  %v10429_v37 = vld [vmem:[%s12409_s14 + $0x48] sm:$0xff]  ;;  %v10443_v39 = vld [vmem:[%s12409_s14 + $0x58] sm:$0xff] }
 0x5a6   :  { %v1143_v42 = vmax.f32 %v8061_v41, 0.0  ;;  %v1119_v43 = vpop.f32.mrb[63].mxu1  ;;  %v10457_v41 = vld [vmem:[%s12409_s14 + $0x68] sm:$0xff] }
 0x5a7   :  { %9207 = vmatpush3.bf16.xpose.msra.mxu1 %v9206_v13  ;;  %v1142_v44 = vmax.f32 %v1119_v43, 0.0  ;;  %v1320_v13 = vld [vmem:[%s12455_s10 + $0x18] sm:$0xff] }
 0x5a8   :  { %9208 = vmatprep.subr.bf16.mxu1 %v9792_v5  ;;  %v9248_v17 = vpack.c.bf16 %v1324_v14, %v1320_v13  ;;  %1926 = vrot.lane.b32.xlu1 %v10401_v28, %s9796_s11  ;;  %v10471_v43 = vld [vmem:[%s12409_s14 + $0x78] sm:$0xff] }
 0x5a9   :  { %v9218_v45 = vpack.c.bf16 %v1143_v42, %v1142_v44  ;;  %v10462_v42 = vld [vmem:[%s12409_s14 + $0x70] sm:$0xff] }
 0x5aa   :  { %v1319_v44 = vld [vmem:[%s12455_s10 + $0x10] sm:$0xff] }
 0x5af   :  { %9210 = vmatpush3.bf16.xpose.msra.mxu1 %v9209_v23  ;;  %v10378_v23 = vld [vmem:[%s12409_s14 + $0x10] sm:$0xff] }
 0x5b0   :  { %9211 = vmatprep.subr.bf16.mxu1 %v9792_v5  ;;  %1920 = vrot.lane.b32.xlu0 %v10378_v23, %s9796_s11 }
 0x5b4   :  { %1924 = vrot.lane.b32.xlu0 %v10392_v25, %s9796_s11 }
 0x5b7   :  { %9213 = vmatpush3.bf16.xpose.msra.mxu1 %v9212_v30  ;;  %v10415_v30 = vld [vmem:[%s12409_s14 + $0x38] sm:$0xff] }
 0x5b8   :  { %9214 = vmatprep.subr.bf16.mxu1 %v9792_v5  ;;  %1928 = vrot.lane.b32.xlu0 %v10406_v29, %s9796_s11 }
 0x5b9   :  { %1930 = vrot.lane.b32.xlu1 %v10415_v30, %s9796_s11 }
 0x5bc   :  { %1932 = vrot.lane.b32.xlu0 %v10420_v33, %s9796_s11 }
 0x5bd   :  { %1934 = vrot.lane.b32.xlu1 %v10429_v37, %s9796_s11 }
 0x5bf   :  { %9216 = vmatpush3.bf16.xpose.msra.mxu1 %v9215_v40  ;;  %v10448_v40 = vld [vmem:[%s12409_s14 + $0x60] sm:$0xff] }
 0x5c0   :  { %9217 = vmatprep.subr.bf16.mxu1 %v9792_v5  ;;  %1936 = vrot.lane.b32.xlu0 %v10434_v38, %s9796_s11 }
 0x5c1   :  { %1938 = vrot.lane.b32.xlu1 %v10443_v39, %s9796_s11 }
 0x5c4   :  { %1940 = vrot.lane.b32.xlu0 %v10448_v40, %s9796_s11 }
 0x5c5   :  { %1942 = vrot.lane.b32.xlu1 %v10457_v41, %s9796_s11 }
 0x5c7   :  { %9219 = vmatpush3.bf16.xpose.msra.mxu1 %v9218_v45  ;;  %v1323_v45 = vld [vmem:[%s12455_s10 + $0x30] sm:$0xff]  ;;  %s9800_s10 = smov 80  }
 0x5c8   :  { %9220 = vmatprep.subr.bf16.mxu1 %v9792_v5  ;;  %1944 = vrot.lane.b32.xlu0 %v10462_v42, %s9796_s11  ;;  %v9250_v46 = vpack.c.bf16 %v1323_v45, %v1319_v44 }
 0x5c9   :  { %1946 = vrot.lane.b32.xlu1 %v10471_v43, %s9796_s11  ;;  %s9798_s11 = smov 96  }
 0x5cc   :  { %2146 = vrot.lane.b32.xlu0 %v10373_v19, %s9797_s6 }
 0x5cd   :  { %2144 = vrot.lane.b32.xlu1 %v10366_v18, %s9797_s6 }
 0x5ce   :  { %8095 = vmatmul.mubr.f32.vlgmr.msra.gmra.mrb[64].mxu1 %v1144_v47 }
 0x5cf   :  { %9222 = vmatpush3.bf16.msra.mxu1 %v9221_v48  ;;  %8129 = vmatprep.mubr.msk.f32.mxu1 %vm9793_vm1, %v9794_v6 }
 0x5d0   :  { %9223 = vmatprep.subr.bf16.mxu1 %v9792_v5  ;;  %2150 = vrot.lane.b32.xlu0 %v10387_v24, %s9797_s6 }
 0x5d1   :  { %2148 = vrot.lane.b32.xlu1 %v10378_v23, %s9797_s6 }
 0x5d3   :  { %9225 = vmatpush3.bf16.msra.mxu1 %v9224_v51 }
 0x5d4   :  { %9226 = vmatprep.subr.bf16.mxu1 %v9792_v5  ;;  %2154 = vrot.lane.b32.xlu0 %v10401_v28, %s9797_s6 }
 0x5d5   :  { %2152 = vrot.lane.b32.xlu1 %v10392_v25, %s9797_s6 }
 0x5d7   :  { %9228 = vmatpush3.bf16.msra.mxu1 %v9227_v54 }
 0x5d8   :  { %9229 = vmatprep.subr.bf16.mxu1 %v9792_v5  ;;  %2158 = vrot.lane.b32.xlu0 %v10415_v30, %s9797_s6 }
 0x5d9   :  { %2156 = vrot.lane.b32.xlu1 %v10406_v29, %s9797_s6 }
 0x5db   :  { %9231 = vmatpush3.bf16.msra.mxu1 %v9230_v57 }
 0x5dc   :  { %9232 = vmatprep.subr.bf16.mxu1 %v9792_v5  ;;  %2162 = vrot.lane.b32.xlu0 %v10429_v37, %s9797_s6 }
 0x5dd   :  { %2160 = vrot.lane.b32.xlu1 %v10420_v33, %s9797_s6 }
 0x5df   :  { %9234 = vmatpush3.bf16.msra.mxu1 %v9233_v60 }
 0x5e0   :  { %9235 = vmatprep.subr.bf16.mxu1 %v9792_v5  ;;  %2166 = vrot.lane.b32.xlu0 %v10443_v39, %s9797_s6 }
 0x5e1   :  { %2164 = vrot.lane.b32.xlu1 %v10434_v38, %s9797_s6 }
 0x5e3   :  { %9237 = vmatpush3.bf16.msra.mxu1 %v9236_v63 }
 0x5e4   :  { %9238 = vmatprep.subr.bf16.mxu1 %v9792_v5 }
 0x5e5   :  { %2168 = vrot.lane.b32.xlu1 %v10448_v40, %s9797_s6 }
 0x5e7   :  { %9240 = vmatpush3.bf16.msra.mxu1 %v9239_v15 }
 0x5e8   :  { %9241 = vmatprep.subr.bf16.mxu1 %v9792_v5  ;;  %v1151_v5 = vlaneseq }
 0x5e9   :  { %2172 = vrot.lane.b32.xlu1 %v10462_v42, %s9797_s6 }
 0x5ea   :  { %v10340_v32 = vshrl.u32 %v1151_v5, 7 }
 0x5eb   :  { %9243 = vmatpush3.bf16.msra.mxu1 %v9242_v21 }
 0x5ec   :  { %9245 = vmatprep.subr.bf16.mxu1 %v9244_v31  ;;  %v10343_v34 = vsub.s32 0, %v10340_v32  ;;  %v1333_v11 = vsub.s32 1, %v10340_v32 }
 0x5ed   :  { %2372 = vrot.lane.b32.xlu1 %v10366_v18, %s9798_s11 }
 0x5ee   :  { %v1154_v36 = vrot.slane %v1149_v35, %v10343_v34  ;;  %v1330_v15 = vrot.slane %v10589_v10, %v10343_v34  ;;  %v1334_v16 = vrot.slane %v10589_v10, %v1333_v11 }
 0x5f1   :  { %2376 = vrot.lane.b32.xlu1 %v10378_v23, %s9798_s11 }
 0x5f5   :  { %2380 = vrot.lane.b32.xlu1 %v10392_v25, %s9798_s11 }
 0x5f9   :  { %2384 = vrot.lane.b32.xlu1 %v10406_v29, %s9798_s11 }
 0x5fd   :  { %2388 = vrot.lane.b32.xlu1 %v10420_v33, %s9798_s11 }
 0x601   :  { %2392 = vrot.lane.b32.xlu1 %v10434_v38, %s9798_s11 }
 0x605   :  { %2396 = vrot.lane.b32.xlu1 %v10448_v40, %s9798_s11 }
 0x609   :  { %2400 = vrot.lane.b32.xlu1 %v10462_v42, %s9798_s11 }
 0x60d   :  { %2599 = vrot.lane.b32.xlu1 %v10373_v19, %s9799_s15 }
 0x611   :  { %2603 = vrot.lane.b32.xlu1 %v10387_v24, %s9799_s15 }
 0x615   :  { %2607 = vrot.lane.b32.xlu1 %v10401_v28, %s9799_s15 }
 0x619   :  { %2611 = vrot.lane.b32.xlu1 %v10415_v30, %s9799_s15 }
 0x61d   :  { %2615 = vrot.lane.b32.xlu1 %v10429_v37, %s9799_s15 }
 0x621   :  { %2619 = vrot.lane.b32.xlu1 %v10443_v39, %s9799_s15 }
 0x622   :  { %v10689_v4 = vpop.permute.xlu0 %1920 }
 0x625   :  { %2623 = vrot.lane.b32.xlu1 %v10457_v41, %s9799_s15 }
 0x629   :  { %2627 = vrot.lane.b32.xlu1 %v10471_v43, %s9799_s15 }
 0x62d   :  { %2826 = vrot.lane.b32.xlu1 %v10366_v18, %s9800_s10 }
 0x631   :  { %2830 = vrot.lane.b32.xlu1 %v10378_v23, %s9800_s10 }
 0x635   :  { %2834 = vrot.lane.b32.xlu1 %v10392_v25, %s9800_s10 }
 0x639   :  { %2838 = vrot.lane.b32.xlu1 %v10406_v29, %s9800_s10 }
 0x6a1   :  { %v1221_v0 = vpop.f32.mrb[64].mxu1 }
 0x6a2   :  { %v1222_v1 = vadd.f32 %v1221_v0, %v1154_v36  ;;  %v8096_v2 = vpop.f32.mrb[65].mxu1 }
 0x6a4   :  { %v1229_v8 = vrot.slane %v1222_v1, %v10343_v34 }
 0x6a6   :  { %v1230_v12 = vmul.f32 %v1229_v8, %v1225_v7  ;;  %v10699_v8 = vpop.permute.xlu0 %1924 }
 0x6a8   :  { %8130 = vmatmul.mubr.f32.vlgmr.msra.gmra.mrb[66].mxu1 %v1230_v12 }
 0x6a9   :  { %9247 = vmatpush1.bf16.msra.mxu1 %v9246_v9  ;;  %1415 = vmatprep.mubr.f32.mxu1 %v9794_v6 }
 0x6aa   :  { %9249 = vmatprep.subr.bf16.mxu1 %v9248_v17  ;;  %v10709_v12 = vpop.permute.xlu0 %1928 }
 0x6ae   :  { %v10719_v14 = vpop.permute.xlu0 %1932 }
 0x6b2   :  { %v10729_v44 = vpop.permute.xlu0 %1936 }
 0x77b   :  { %v1313_v22 = vpop.f32.mrb[66].mxu1 }
 0x77c   :  { %v8131_v47 = vpop.f32.mrb[67].mxu1  ;;  %6709 = vmatmul.mubr.msk.f32.vlgmr.msra.gmra.mrb[68].mxu1 %vm1347_vm2, %v1313_v22 }
 0x77d   :  { %9251 = vmatpush1.bf16.msra.mxu1 %v9250_v46  ;;  %1486 = vmatprep.mubr.f32.mxu1 %v9794_v6  ;;  %v10550_v6 = vpop.permute.xlu1 %1916  ;;  %v10739_v46 = vpop.permute.xlu0 %1940 }
 0x780   :  { %6710 = vmatmul.mubr.msk.f32.vlgmr.msra.gmra.mrb[70].mxu1 %vm1347_vm2, %v1313_v22 }
 0x781   :  { %v10552_v48 = vpop.permute.xlu1 %1918  ;;  %v10749_v47 = vpop.permute.xlu0 %1944 }
 0x785   :  { %v10554_v49 = vpop.permute.xlu1 %1922  ;;  %v10759_v11 = vpop.permute.xlu0 %2146 }
 0x789   :  { %v10558_v50 = vpop.permute.xlu1 %1926 }
 0x78d   :  { %v10560_v51 = vpop.permute.xlu1 %1930 }
 0x791   :  { %v10562_v52 = vpop.permute.xlu1 %1934 }
 0x795   :  { %v10564_v53 = vpop.permute.xlu1 %1938 }
 0x799   :  { %v10566_v54 = vpop.permute.xlu1 %1942 }
 0x79d   :  { %v10568_v55 = vpop.permute.xlu1 %1946 }
 0x7a1   :  { %v10570_v56 = vpop.permute.xlu1 %2144 }
 0x7a5   :  { %v10572_v57 = vpop.permute.xlu1 %2148 }
 0x7a9   :  { %v10574_v58 = vpop.permute.xlu1 %2152 }
 0x7ad   :  { %v10576_v59 = vpop.permute.xlu1 %2156 }
 0x7b1   :  { %v10578_v60 = vpop.permute.xlu1 %2160 }
 0x7b5   :  { %v10580_v61 = vpop.permute.xlu1 %2164 }
 0x7b9   :  { %v10582_v62 = vpop.permute.xlu1 %2168 }
 0x7bd   :  { %v10584_v63 = vpop.permute.xlu1 %2172 }
 0x7c1   :  { %v10595_v20 = vpop.permute.xlu1 %2372 }
 0x7c5   :  { %v10609_v34 = vpop.permute.xlu1 %2376 }
 0x7c9   :  { %v10625_v36 = vpop.permute.xlu1 %2380 }
 0x7cd   :  { %v10639_v0 = vpop.permute.xlu1 %2384 }
 0x7d1   :  { %v10651_v1 = vpop.permute.xlu1 %2388 }
 0x7d5   :  { %v10667_v2 = vpop.permute.xlu1 %2392 }
 0x7d9   :  { %v10679_v3 = vpop.permute.xlu1 %2396 }
 0x7dd   :  { %v10693_v7 = vpop.permute.xlu1 %2400 }
 0x7e1   :  { %v10701_v9 = vpop.permute.xlu1 %2599 }
 0x7e5   :  { %v10713_v13 = vpop.permute.xlu1 %2603 }
 0x7e9   :  { %v10721_v17 = vpop.permute.xlu1 %2607 }
 0x7ed   :  { %v10733_v45 = vpop.permute.xlu1 %2611 }
 0x7ee   :  { %12458 = vst [vmem:[#allocation5_spill] sm:$0xff] %v10733_v45 }
 0x7f1   :  { %v10741_v22 = vpop.permute.xlu1 %2615 }
 0x7f2   :  { %12459 = vst [vmem:[#allocation6_spill] sm:$0xff] %v10741_v22 }
 0x84f   :  { %v1417_v21 = vpop.f32.mrb[68].mxu1 }
 0x850   :  { %v10597_v26 = vadd.f32 %v1417_v21, %v1330_v15  ;;  %v1419_v27 = vpop.f32.mrb[69].mxu1 }
 0x851   :  { %v10599_v31 = vadd.f32 %v1419_v27, %v1334_v16  ;;  %v10769_v16 = vpop.permute.xlu0 %2150 }
 0x852   :  { %12456 = vst [vmem:[#allocation3_spill] sm:$0xff] %v10597_v26  ;;  %1948 = vrot.lane.b32.xlu0 %v10597_v26, %s9801_s7  ;;  %8158 = vmatprep.subr.mxu0 %v10597_v26 }
 0x853   :  { %v10604_v5 = vpop.f32.mrb[70].mxu1  ;;  %2630 = vrot.lane.b32.xlu1 %v10599_v31, %s9798_s11  ;;  %8159 = vmatpush3.msra.mxu0 %v10597_v26 }
 0x854   :  { %v10611_v35 = vpop.f32.mrb[71].mxu1  ;;  %8161 = vmatmul.mubr.msk.f32.vlgmr.msra.gmra.mrb[32].mxu0 %vm1561_vm3, %v10373_v19 }
 0x855   :  { %12457 = vst [vmem:[#allocation4_spill] sm:$0xff] %v10611_v35  ;;  %8163 = vmatprep.mubr.msk.f32.mxu0 %vm1561_vm3, %v10378_v23  ;;  %v10779_v27 = vpop.permute.xlu0 %2154 }
 0x856   :  { %2170 = vrot.lane.b32.xlu0 %v10457_v41, %s9797_s6 }
 0x857   :  { %2842 = vrot.lane.b32.xlu1 %v10420_v33, %s9800_s10 }
 0x858   :  { %8164 = vmatmul.mubr.msk.f32.gmra.mrb[34].mxu0 %vm1561_vm3, %v10387_v24 }
 0x859   :  { %8166 = vmatprep.mubr.msk.f32.mxu0 %vm1561_vm3, %v10392_v25  ;;  %v10789_v35 = vpop.permute.xlu0 %2158 }
 0x85a   :  { %2174 = vrot.lane.b32.xlu0 %v10471_v43, %s9797_s6  ;;  %s9808_s6 = smov 16  }
 0x85b   :  { %2846 = vrot.lane.b32.xlu1 %v10434_v38, %s9800_s10 }
 0x85c   :  { %8167 = vmatmul.mubr.msk.f32.gmra.mrb[36].mxu0 %vm1561_vm3, %v10401_v28 }
 0x85d   :  { %8169 = vmatprep.mubr.msk.f32.mxu0 %vm1561_vm3, %v10406_v29 }
 0x85e   :  { %2374 = vrot.lane.b32.xlu0 %v10373_v19, %s9798_s11 }
 0x85f   :  { %2850 = vrot.lane.b32.xlu1 %v10448_v40, %s9800_s10 }
 0x860   :  { %8170 = vmatmul.mubr.msk.f32.gmra.mrb[38].mxu0 %vm1561_vm3, %v10415_v30 }
 0x861   :  { %8172 = vmatprep.mubr.msk.f32.mxu0 %vm1561_vm3, %v10420_v33 }
 0x862   :  { %2378 = vrot.lane.b32.xlu0 %v10387_v24, %s9798_s11 }
 0x863   :  { %2854 = vrot.lane.b32.xlu1 %v10462_v42, %s9800_s10 }
 0x864   :  { %8173 = vmatmul.mubr.msk.f32.gmra.mrb[40].mxu0 %vm1561_vm3, %v10429_v37 }
 0x865   :  { %8175 = vmatprep.mubr.msk.f32.mxu0 %vm1561_vm3, %v10434_v38 }
 0x866   :  { %2382 = vrot.lane.b32.xlu0 %v10401_v28, %s9798_s11 }
 0x867   :  { %3056 = vrot.lane.b32.xlu1 %v10373_v19, %s9802_s16 }
 0x868   :  { %8176 = vmatmul.mubr.msk.f32.gmra.mrb[42].mxu0 %vm1561_vm3, %v10443_v39 }
 0x869   :  { %8178 = vmatprep.mubr.msk.f32.mxu0 %vm1561_vm3, %v10448_v40 }
 0x86a   :  { %2386 = vrot.lane.b32.xlu0 %v10415_v30, %s9798_s11 }
 0x86b   :  { %3060 = vrot.lane.b32.xlu1 %v10387_v24, %s9802_s16 }
 0x86c   :  { %8179 = vmatmul.mubr.msk.f32.gmra.mrb[44].mxu0 %vm1561_vm3, %v10457_v41 }
 0x86d   :  { %8181 = vmatprep.mubr.msk.f32.mxu0 %vm1561_vm3, %v10462_v42 }
 0x86e   :  { %2390 = vrot.lane.b32.xlu0 %v10429_v37, %s9798_s11 }
 0x86f   :  { %3064 = vrot.lane.b32.xlu1 %v10401_v28, %s9802_s16 }
 0x870   :  { %8182 = vmatmul.mubr.msk.f32.gmra.mrb[46].mxu0 %vm1561_vm3, %v10471_v43 }
 0x871   :  { %8186 = vmatprep.mubr.msk.f32.mxu0 %vm1561_vm3, %v10550_v6  ;;  %v10753_v6 = vpop.permute.xlu1 %2619 }
 0x872   :  { %2176 = vrot.lane.b32.xlu0 %v10597_v26, %s9803_s8  ;;  %12460 = vst [vmem:[#allocation7_spill] sm:$0xff] %v10753_v6 }
 0x873   :  { %3068 = vrot.lane.b32.xlu1 %v10415_v30, %s9802_s16 }
 0x875   :  { %v10761_v15 = vpop.permute.xlu1 %2623 }
 0x876   :  { %2394 = vrot.lane.b32.xlu0 %v10443_v39, %s9798_s11  ;;  %12461 = vst [vmem:[#allocation8_spill] sm:$0xff] %v10761_v15 }
 0x877   :  { %3072 = vrot.lane.b32.xlu1 %v10429_v37, %s9802_s16 }
 0x879   :  { %v10773_v21 = vpop.permute.xlu1 %2627 }
 0x87a   :  { %2398 = vrot.lane.b32.xlu0 %v10457_v41, %s9798_s11  ;;  %12462 = vst [vmem:[#allocation9_spill] sm:$0xff] %v10773_v21 }
 0x87b   :  { %3076 = vrot.lane.b32.xlu1 %v10443_v39, %s9802_s16 }
 0x87d   :  { %v10781_v26 = vpop.permute.xlu1 %2826 }
 0x87e   :  { %2402 = vrot.lane.b32.xlu0 %v10471_v43, %s9798_s11  ;;  %12463 = vst [vmem:[#allocation10_spill] sm:$0xff] %v10781_v26  ;;  %v10799_v26 = vpop.permute.xlu0 %2162 }
 0x87f   :  { %3080 = vrot.lane.b32.xlu1 %v10457_v41, %s9802_s16 }
 0x881   :  { %v10793_v21 = vpop.permute.xlu1 %2830 }
 0x882   :  { %2597 = vrot.lane.b32.xlu0 %v10366_v18, %s9799_s15  ;;  %12464 = vst [vmem:[#allocation11_spill] sm:$0xff] %v10793_v21  ;;  %v10809_v21 = vpop.permute.xlu0 %2166 }
 0x883   :  { %3084 = vrot.lane.b32.xlu1 %v10471_v43, %s9802_s16 }
 0x885   :  { %v10801_v15 = vpop.permute.xlu1 %2834 }
 0x886   :  { %2601 = vrot.lane.b32.xlu0 %v10378_v23, %s9799_s15  ;;  %12465 = vst [vmem:[#allocation12_spill] sm:$0xff] %v10801_v15 }
 0x887   :  { %3284 = vrot.lane.b32.xlu1 %v10373_v19, %s9801_s7 }
 0x889   :  { %v10813_v6 = vpop.permute.xlu1 %2838 }
 0x88a   :  { %2605 = vrot.lane.b32.xlu0 %v10392_v25, %s9799_s15  ;;  %12466 = vst [vmem:[#allocation13_spill] sm:$0xff] %v10813_v6 }
 0x88b   :  { %3288 = vrot.lane.b32.xlu1 %v10387_v24, %s9801_s7 }
 0x88e   :  { %2609 = vrot.lane.b32.xlu0 %v10406_v29, %s9799_s15 }
 0x88f   :  { %3292 = vrot.lane.b32.xlu1 %v10401_v28, %s9801_s7 }
 0x892   :  { %2613 = vrot.lane.b32.xlu0 %v10420_v33, %s9799_s15 }
 0x893   :  { %3086 = vrot.lane.b32.xlu1 %v10599_v31, %s9803_s8 }
 0x896   :  { %2617 = vrot.lane.b32.xlu0 %v10434_v38, %s9799_s15 }
 0x897   :  { %3296 = vrot.lane.b32.xlu1 %v10415_v30, %s9801_s7 }
 0x89a   :  { %2621 = vrot.lane.b32.xlu0 %v10448_v40, %s9799_s15 }
 0x89b   :  { %3300 = vrot.lane.b32.xlu1 %v10429_v37, %s9801_s7 }
 0x89e   :  { %2625 = vrot.lane.b32.xlu0 %v10462_v42, %s9799_s15 }
 0x89f   :  { %3304 = vrot.lane.b32.xlu1 %v10443_v39, %s9801_s7 }
 0x8a2   :  { %2828 = vrot.lane.b32.xlu0 %v10373_v19, %s9800_s10 }
 0x8a3   :  { %3308 = vrot.lane.b32.xlu1 %v10457_v41, %s9801_s7 }
 0x8a6   :  { %2832 = vrot.lane.b32.xlu0 %v10387_v24, %s9800_s10 }
 0x8a7   :  { %3312 = vrot.lane.b32.xlu1 %v10471_v43, %s9801_s7 }
 0x8aa   :  { %2836 = vrot.lane.b32.xlu0 %v10401_v28, %s9800_s10 }
 0x8ab   :  { %3507 = vrot.lane.b32.xlu1 %v10366_v18, %s9804_s0 }
 0x8ae   :  { %2840 = vrot.lane.b32.xlu0 %v10415_v30, %s9800_s10 }
 0x8af   :  { %3511 = vrot.lane.b32.xlu1 %v10378_v23, %s9804_s0 }
 0x8b2   :  { %2844 = vrot.lane.b32.xlu0 %v10429_v37, %s9800_s10 }
 0x8b3   :  { %3515 = vrot.lane.b32.xlu1 %v10392_v25, %s9804_s0 }
 0x8b6   :  { %2848 = vrot.lane.b32.xlu0 %v10443_v39, %s9800_s10 }
 0x8b7   :  { %3519 = vrot.lane.b32.xlu1 %v10406_v29, %s9804_s0 }
 0x8ba   :  { %2852 = vrot.lane.b32.xlu0 %v10457_v41, %s9800_s10 }
 0x8bb   :  { %3523 = vrot.lane.b32.xlu1 %v10420_v33, %s9804_s0 }
 0x8be   :  { %2856 = vrot.lane.b32.xlu0 %v10471_v43, %s9800_s10 }
 0x8bf   :  { %3527 = vrot.lane.b32.xlu1 %v10434_v38, %s9804_s0 }
 0x8c2   :  { %3054 = vrot.lane.b32.xlu0 %v10366_v18, %s9802_s16 }
 0x8c3   :  { %3531 = vrot.lane.b32.xlu1 %v10448_v40, %s9804_s0 }
 0x8c4   :  { %v1949_v15 = vpop.permute.xlu0 %1948 }
 0x8c5   :  { %v10819_v22 = vpop.permute.xlu1 %2630  ;;  %8184 = vmatprep.subr.mxu0 %v1949_v15 }
 0x8c6   :  { %3058 = vrot.lane.b32.xlu0 %v10378_v23, %s9802_s16  ;;  %8185 = vmatpush3.msra.mxu0 %v1949_v15 }
 0x8c7   :  { %3535 = vrot.lane.b32.xlu1 %v10462_v42, %s9804_s0  ;;  %8187 = vmatmul.mubr.msk.f32.vlgmr.msra.gmra.mrb[32].mxu0 %vm1561_vm3, %v10552_v48 }
 0x8c8   :  { %v10827_v6 = vpop.permute.xlu0 %2170  ;;  %8189 = vmatprep.mubr.msk.f32.mxu0 %vm1561_vm3, %v10689_v4 }
 0x8c9   :  { %v10831_v45 = vpop.permute.xlu1 %2842 }
 0x8ca   :  { %3062 = vrot.lane.b32.xlu0 %v10392_v25, %s9802_s16 }
 0x8cb   :  { %3738 = vrot.lane.b32.xlu1 %v10373_v19, %s9805_s12  ;;  %8190 = vmatmul.mubr.msk.f32.gmra.mrb[34].mxu0 %vm1561_vm3, %v10554_v49 }
 0x8cc   :  { %v10839_v15 = vpop.permute.xlu0 %2174  ;;  %8192 = vmatprep.mubr.msk.f32.mxu0 %vm1561_vm3, %v10699_v8 }
 0x8cd   :  { %v10843_v48 = vpop.permute.xlu1 %2846 }
 0x8ce   :  { %3066 = vrot.lane.b32.xlu0 %v10406_v29, %s9802_s16 }
 0x8cf   :  { %3742 = vrot.lane.b32.xlu1 %v10387_v24, %s9805_s12  ;;  %8193 = vmatmul.mubr.msk.f32.gmra.mrb[36].mxu0 %vm1561_vm3, %v10558_v50 }
 0x8d0   :  { %v10851_v4 = vpop.permute.xlu0 %2374  ;;  %8195 = vmatprep.mubr.msk.f32.mxu0 %vm1561_vm3, %v10709_v12 }
 0x8d1   :  { %v10855_v49 = vpop.permute.xlu1 %2850 }
 0x8d2   :  { %2858 = vrot.lane.b32.xlu0 %v10599_v31, %s9801_s7 }
 0x8d3   :  { %3746 = vrot.lane.b32.xlu1 %v10401_v28, %s9805_s12  ;;  %8196 = vmatmul.mubr.msk.f32.gmra.mrb[38].mxu0 %vm1561_vm3, %v10560_v51 }
 0x8d4   :  { %v10863_v8 = vpop.permute.xlu0 %2378  ;;  %8198 = vmatprep.mubr.msk.f32.mxu0 %vm1561_vm3, %v10719_v14 }
 0x8d5   :  { %v10867_v50 = vpop.permute.xlu1 %2854 }
 0x8d6   :  { %3070 = vrot.lane.b32.xlu0 %v10420_v33, %s9802_s16 }
 0x8d7   :  { %3750 = vrot.lane.b32.xlu1 %v10415_v30, %s9805_s12  ;;  %8199 = vmatmul.mubr.msk.f32.gmra.mrb[40].mxu0 %vm1561_vm3, %v10562_v52 }
 0x8d8   :  { %v10875_v12 = vpop.permute.xlu0 %2382  ;;  %8201 = vmatprep.mubr.msk.f32.mxu0 %vm1561_vm3, %v10729_v44 }
 0x8d9   :  { %v10879_v51 = vpop.permute.xlu1 %3056 }
 0x8da   :  { %3074 = vrot.lane.b32.xlu0 %v10434_v38, %s9802_s16 }
 0x8db   :  { %3754 = vrot.lane.b32.xlu1 %v10429_v37, %s9805_s12  ;;  %8202 = vmatmul.mubr.msk.f32.gmra.mrb[42].mxu0 %vm1561_vm3, %v10564_v53 }
 0x8dc   :  { %v10887_v14 = vpop.permute.xlu0 %2386  ;;  %8204 = vmatprep.mubr.msk.f32.mxu0 %vm1561_vm3, %v10739_v46 }
 0x8dd   :  { %v10891_v52 = vpop.permute.xlu1 %3060 }
 0x8de   :  { %3078 = vrot.lane.b32.xlu0 %v10448_v40, %s9802_s16 }
 0x8df   :  { %3758 = vrot.lane.b32.xlu1 %v10443_v39, %s9805_s12  ;;  %8205 = vmatmul.mubr.msk.f32.gmra.mrb[44].mxu0 %vm1561_vm3, %v10566_v54 }
 0x8e0   :  { %v10899_v44 = vpop.permute.xlu0 %2390  ;;  %8207 = vmatprep.mubr.msk.f32.mxu0 %vm1561_vm3, %v10749_v47 }
 0x8e1   :  { %v10903_v53 = vpop.permute.xlu1 %3064 }
 0x8e2   :  { %3082 = vrot.lane.b32.xlu0 %v10462_v42, %s9802_s16 }
 0x8e3   :  { %3762 = vrot.lane.b32.xlu1 %v10457_v41, %s9805_s12  ;;  %8208 = vmatmul.mubr.msk.f32.gmra.mrb[46].mxu0 %vm1561_vm3, %v10568_v55 }
 0x8e4   :  { %v2177_v46 = vpop.permute.xlu0 %2176  ;;  %8212 = vmatprep.mubr.msk.f32.mxu0 %vm1561_vm3, %v10570_v56  ;;  %v1337_v56 = vsub.s32 2, %v10340_v32 }
 0x8e5   :  { %v10913_v54 = vpop.permute.xlu1 %3068  ;;  %8210 = vmatprep.subr.mxu0 %v2177_v46 }
 0x8e6   :  { %3282 = vrot.lane.b32.xlu0 %v10366_v18, %s9801_s7  ;;  %8211 = vmatpush3.msra.mxu0 %v2177_v46 }
 0x8e7   :  { %3766 = vrot.lane.b32.xlu1 %v10471_v43, %s9805_s12  ;;  %8213 = vmatmul.mubr.msk.f32.vlgmr.msra.gmra.mrb[32].mxu0 %vm1561_vm3, %v10759_v11 }
 0x8e8   :  { %8236 = vmatprep.subr.mxu0 %v10599_v31  ;;  %v10922_v55 = vpop.permute.xlu0 %2394  ;;  %8215 = vmatprep.mubr.msk.f32.mxu0 %vm1561_vm3, %v10572_v57  ;;  %v1338_v57 = vrot.slane %v10589_v10, %v1337_v56 }
 0x8e9   :  { %8237 = vmatpush3.msra.mxu0 %v10599_v31  ;;  %v10928_v47 = vpop.permute.xlu1 %3072 }
 0x8ea   :  { %8262 = vmatprep.subr.mxu0 %v10819_v22  ;;  %3286 = vrot.lane.b32.xlu0 %v10378_v23, %s9801_s7 }
 0x8eb   :  { %3964 = vrot.lane.b32.xlu1 %v10366_v18, %s9806_s29  ;;  %8216 = vmatmul.mubr.msk.f32.gmra.mrb[34].mxu0 %vm1561_vm3, %v10769_v16 }
 0x8ec   :  { %v10937_v11 = vpop.permute.xlu0 %2398  ;;  %8218 = vmatprep.mubr.msk.f32.mxu0 %vm1561_vm3, %v10574_v58  ;;  %v10955_v58 = vadd.f32 %v10604_v5, %v1338_v57 }
 0x8ed   :  { %v10942_v31 = vpop.permute.xlu1 %3076 }
 0x8ee   :  { %3290 = vrot.lane.b32.xlu0 %v10392_v25, %s9801_s7 }
 0x8ef   :  { %3968 = vrot.lane.b32.xlu1 %v10378_v23, %s9806_s29  ;;  %8219 = vmatmul.mubr.msk.f32.gmra.mrb[36].mxu0 %vm1561_vm3, %v10779_v27 }
 0x8f0   :  { %v10950_v46 = vpop.permute.xlu0 %2402  ;;  %8221 = vmatprep.mubr.msk.f32.mxu0 %vm1561_vm3, %v10576_v59 }
 0x8f1   :  { %v10957_v16 = vpop.permute.xlu1 %3080 }
 0x8f2   :  { %3294 = vrot.lane.b32.xlu0 %v10406_v29, %s9801_s7 }
 0x8f3   :  { %3768 = vrot.lane.b32.xlu1 %v10955_v58, %s9801_s7  ;;  %8222 = vmatmul.mubr.msk.f32.gmra.mrb[38].mxu0 %vm1561_vm3, %v10789_v35 }
 0x8f4   :  { %v10965_v27 = vpop.permute.xlu0 %2597  ;;  %8224 = vmatprep.mubr.msk.f32.mxu0 %vm1561_vm3, %v10578_v60 }
 0x8f5   :  { %v10969_v59 = vpop.permute.xlu1 %3084 }
 0x8f6   :  { %3298 = vrot.lane.b32.xlu0 %v10420_v33, %s9801_s7 }
 0x8f7   :  { %3972 = vrot.lane.b32.xlu1 %v10392_v25, %s9806_s29  ;;  %8225 = vmatmul.mubr.msk.f32.gmra.mrb[40].mxu0 %vm1561_vm3, %v10799_v26 }
 0x8f8   :  { %v10977_v5 = vpop.permute.xlu0 %2601  ;;  %8227 = vmatprep.mubr.msk.f32.mxu0 %vm1561_vm3, %v10580_v61 }
 0x8f9   :  { %v10981_v35 = vpop.permute.xlu1 %3284 }
 0x8fa   :  { %3302 = vrot.lane.b32.xlu0 %v10434_v38, %s9801_s7 }
 0x8fb   :  { %3976 = vrot.lane.b32.xlu1 %v10406_v29, %s9806_s29  ;;  %8228 = vmatmul.mubr.msk.f32.gmra.mrb[42].mxu0 %vm1561_vm3, %v10809_v21 }
 0x8fc   :  { %v10989_v60 = vpop.permute.xlu0 %2605  ;;  %8230 = vmatprep.mubr.msk.f32.mxu0 %vm1561_vm3, %v10582_v62 }
 0x8fd   :  { %v10993_v26 = vpop.permute.xlu1 %3288 }
 0x8fe   :  { %3306 = vrot.lane.b32.xlu0 %v10448_v40, %s9801_s7 }
 0x8ff   :  { %3980 = vrot.lane.b32.xlu1 %v10420_v33, %s9806_s29  ;;  %8231 = vmatmul.mubr.msk.f32.gmra.mrb[44].mxu0 %vm1561_vm3, %v10827_v6 }
 0x900   :  { %v11001_v61 = vpop.permute.xlu0 %2609  ;;  %8233 = vmatprep.mubr.msk.f32.mxu0 %vm1561_vm3, %v10584_v63 }
 0x901   :  { %v11005_v21 = vpop.permute.xlu1 %3292 }
 0x902   :  { %3310 = vrot.lane.b32.xlu0 %v10462_v42, %s9801_s7 }
 0x903   :  { %3984 = vrot.lane.b32.xlu1 %v10434_v38, %s9806_s29  ;;  %8234 = vmatmul.mubr.msk.f32.gmra.mrb[46].mxu0 %vm1561_vm3, %v10839_v15 }
 0x904   :  { %v11013_v62 = vpop.permute.xlu0 %2613  ;;  %8238 = vmatprep.mubr.msk.f32.mxu0 %vm1561_vm3, %v10595_v20 }
 0x905   :  { %v11017_v6 = vpop.permute.xlu1 %3086 }
 0x906   :  { %3509 = vrot.lane.b32.xlu0 %v10373_v19, %s9804_s0 }
 0x907   :  { %3988 = vrot.lane.b32.xlu1 %v10448_v40, %s9806_s29  ;;  %8239 = vmatmul.mubr.msk.f32.vlgmr.msra.gmra.mrb[32].mxu0 %vm1561_vm3, %v10851_v4 }
 0x908   :  { %8263 = vmatpush3.msra.mxu0 %v10819_v22  ;;  %v11026_v63 = vpop.permute.xlu0 %2617  ;;  %8241 = vmatprep.mubr.msk.f32.mxu0 %vm1561_vm3, %v10609_v34 }
 0x909   :  { %v11030_v15 = vpop.permute.xlu1 %3296 }
 0x90a   :  { %3513 = vrot.lane.b32.xlu0 %v10387_v24, %s9804_s0 }
 0x90b   :  { %3992 = vrot.lane.b32.xlu1 %v10462_v42, %s9806_s29  ;;  %8242 = vmatmul.mubr.msk.f32.gmra.mrb[34].mxu0 %vm1561_vm3, %v10863_v8 }
 0x90c   :  { %v11038_v20 = vpop.permute.xlu0 %2621  ;;  %8244 = vmatprep.mubr.msk.f32.mxu0 %vm1561_vm3, %v10625_v36 }
 0x90d   :  { %v11042_v22 = vpop.permute.xlu1 %3300 }
 0x90e   :  { %3517 = vrot.lane.b32.xlu0 %v10401_v28, %s9804_s0 }
 0x90f   :  { %4192 = vrot.lane.b32.xlu1 %v10366_v18, %s9803_s8  ;;  %8245 = vmatmul.mubr.msk.f32.gmra.mrb[36].mxu0 %vm1561_vm3, %v10875_v12 }
 0x910   :  { %v11050_v34 = vpop.permute.xlu0 %2625  ;;  %8247 = vmatprep.mubr.msk.f32.mxu0 %vm1561_vm3, %v10639_v0 }
 0x911   :  { %v11054_v4 = vpop.permute.xlu1 %3304 }
 0x912   :  { %3521 = vrot.lane.b32.xlu0 %v10415_v30, %s9804_s0 }
 0x913   :  { %4196 = vrot.lane.b32.xlu1 %v10378_v23, %s9803_s8  ;;  %8248 = vmatmul.mubr.msk.f32.gmra.mrb[38].mxu0 %vm1561_vm3, %v10887_v14 }
 0x914   :  { %v11062_v36 = vpop.permute.xlu0 %2828  ;;  %8250 = vmatprep.mubr.msk.f32.mxu0 %vm1561_vm3, %v10651_v1 }
 0x915   :  { %v11066_v8 = vpop.permute.xlu1 %3308 }
 0x916   :  { %3525 = vrot.lane.b32.xlu0 %v10429_v37, %s9804_s0 }
 0x917   :  { %4200 = vrot.lane.b32.xlu1 %v10392_v25, %s9803_s8  ;;  %8251 = vmatmul.mubr.msk.f32.gmra.mrb[40].mxu0 %vm1561_vm3, %v10899_v44 }
 0x918   :  { %v11074_v0 = vpop.permute.xlu0 %2832  ;;  %8253 = vmatprep.mubr.msk.f32.mxu0 %vm1561_vm3, %v10667_v2 }
 0x919   :  { %v11078_v12 = vpop.permute.xlu1 %3312 }
 0x91a   :  { %3529 = vrot.lane.b32.xlu0 %v10443_v39, %s9804_s0 }
 0x91b   :  { %4204 = vrot.lane.b32.xlu1 %v10406_v29, %s9803_s8  ;;  %8254 = vmatmul.mubr.msk.f32.gmra.mrb[42].mxu0 %vm1561_vm3, %v10922_v55 }
 0x91c   :  { %v11086_v1 = vpop.permute.xlu0 %2836  ;;  %8256 = vmatprep.mubr.msk.f32.mxu0 %vm1561_vm3, %v10679_v3 }
 0x91d   :  { %v11090_v14 = vpop.permute.xlu1 %3507 }
 0x91e   :  { %3533 = vrot.lane.b32.xlu0 %v10457_v41, %s9804_s0 }
 0x91f   :  { %4208 = vrot.lane.b32.xlu1 %v10420_v33, %s9803_s8  ;;  %8257 = vmatmul.mubr.msk.f32.gmra.mrb[44].mxu0 %vm1561_vm3, %v10937_v11 }
 0x920   :  { %v11098_v2 = vpop.permute.xlu0 %2840  ;;  %8259 = vmatprep.mubr.msk.f32.mxu0 %vm1561_vm3, %v10693_v7 }
 0x921   :  { %v11102_v44 = vpop.permute.xlu1 %3511 }
 0x922   :  { %3537 = vrot.lane.b32.xlu0 %v10471_v43, %s9804_s0 }
 0x923   :  { %4212 = vrot.lane.b32.xlu1 %v10434_v38, %s9803_s8  ;;  %8260 = vmatmul.mubr.msk.f32.gmra.mrb[46].mxu0 %vm1561_vm3, %v10950_v46  ;;  %v12467_v46 = vld [vmem:[#allocation5_spill] sm:$0xff] }
 0x924   :  { %v11110_v3 = vpop.permute.xlu0 %2844  ;;  %8264 = vmatprep.mubr.msk.f32.mxu0 %vm1561_vm3, %v10965_v27 }
 0x925   :  { %v11114_v55 = vpop.permute.xlu1 %3515 }
 0x926   :  { %3736 = vrot.lane.b32.xlu0 %v10366_v18, %s9805_s12 }
 0x927   :  { %4216 = vrot.lane.b32.xlu1 %v10448_v40, %s9803_s8  ;;  %8265 = vmatmul.mubr.msk.f32.vlgmr.msra.gmra.mrb[32].mxu0 %vm1561_vm3, %v10701_v9 }
 0x928   :  { %v11122_v7 = vpop.permute.xlu0 %2848  ;;  %8267 = vmatprep.mubr.msk.f32.mxu0 %vm1561_vm3, %v10977_v5  ;;  %v12469_v5 = vld [vmem:[#allocation6_spill] sm:$0xff] }
 0x929   :  { %v11126_v56 = vpop.permute.xlu1 %3519 }
 0x92a   :  { %3740 = vrot.lane.b32.xlu0 %v10378_v23, %s9805_s12 }
 0x92b   :  { %4220 = vrot.lane.b32.xlu1 %v10462_v42, %s9803_s8  ;;  %8268 = vmatmul.mubr.msk.f32.gmra.mrb[34].mxu0 %vm1561_vm3, %v10713_v13 }
 0x92c   :  { %v11134_v11 = vpop.permute.xlu0 %2852  ;;  %8270 = vmatprep.mubr.msk.f32.mxu0 %vm1561_vm3, %v10989_v60 }
 0x92d   :  { %v11138_v9 = vpop.permute.xlu1 %3523 }
 0x92e   :  { %3744 = vrot.lane.b32.xlu0 %v10392_v25, %s9805_s12 }
 0x92f   :  { %4419 = vrot.lane.b32.xlu1 %v10373_v19, %s9807_s4  ;;  %8271 = vmatmul.mubr.msk.f32.gmra.mrb[36].mxu0 %vm1561_vm3, %v10721_v17 }
 0x930   :  { %v11146_v57 = vpop.permute.xlu0 %2856  ;;  %8273 = vmatprep.mubr.msk.f32.mxu0 %vm1561_vm3, %v11001_v61 }
 0x931   :  { %v11150_v13 = vpop.permute.xlu1 %3527 }
 0x932   :  { %3540 = vrot.lane.b32.xlu0 %v10955_v58, %s9798_s11 }
 0x933   :  { %4423 = vrot.lane.b32.xlu1 %v10387_v24, %s9807_s4  ;;  %8274 = vmatmul.mubr.msk.f32.gmra.mrb[38].mxu0 %vm1561_vm3, %v12467_v46 }
 0x934   :  { %v11158_v27 = vpop.permute.xlu0 %3054  ;;  %8276 = vmatprep.mubr.msk.f32.mxu0 %vm1561_vm3, %v11013_v62  ;;  %v12471_v62 = vld [vmem:[#allocation7_spill] sm:$0xff] }
 0x935   :  { %v11162_v17 = vpop.permute.xlu1 %3531 }
 0x936   :  { %12468 = vst [vmem:[#allocation5_spill] sm:$0xff] %v11162_v17  ;;  %3748 = vrot.lane.b32.xlu0 %v10406_v29, %s9805_s12  ;;  %v12475_v17 = vld [vmem:[#allocation10_spill] sm:$0xff] }
 0x937   :  { %4427 = vrot.lane.b32.xlu1 %v10401_v28, %s9807_s4  ;;  %8277 = vmatmul.mubr.msk.f32.gmra.mrb[40].mxu0 %vm1561_vm3, %v12469_v5 }
 0x938   :  { %v11170_v60 = vpop.permute.xlu0 %3058  ;;  %8279 = vmatprep.mubr.msk.f32.mxu0 %vm1561_vm3, %v11026_v63  ;;  %v12473_v63 = vld [vmem:[#allocation8_spill] sm:$0xff] }
 0x939   :  { %v11174_v61 = vpop.permute.xlu1 %3535 }
 0x93a   :  { %12470 = vst [vmem:[#allocation6_spill] sm:$0xff] %v11174_v61  ;;  %3752 = vrot.lane.b32.xlu0 %v10420_v33, %s9805_s12 }
 0x93b   :  { %4431 = vrot.lane.b32.xlu1 %v10415_v30, %s9807_s4  ;;  %8280 = vmatmul.mubr.msk.f32.gmra.mrb[42].mxu0 %vm1561_vm3, %v12471_v62 }
 0x93c   :  { %v11182_v46 = vpop.permute.xlu0 %3062  ;;  %8282 = vmatprep.mubr.msk.f32.mxu0 %vm1561_vm3, %v11038_v20  ;;  %v12474_v20 = vld [vmem:[#allocation9_spill] sm:$0xff] }
 0x93d   :  { %v11186_v5 = vpop.permute.xlu1 %3738 }
 0x93e   :  { %12472 = vst [vmem:[#allocation7_spill] sm:$0xff] %v11186_v5  ;;  %3756 = vrot.lane.b32.xlu0 %v10434_v38, %s9805_s12 }
 0x93f   :  { %4435 = vrot.lane.b32.xlu1 %v10429_v37, %s9807_s4  ;;  %8283 = vmatmul.mubr.msk.f32.gmra.mrb[44].mxu0 %vm1561_vm3, %v12473_v63 }
 0x940   :  { %v11194_v61 = vpop.permute.xlu0 %3066  ;;  %8285 = vmatprep.mubr.msk.f32.mxu0 %vm1561_vm3, %v11050_v34 }
 0x941   :  { %v11198_v62 = vpop.permute.xlu1 %3742 }
 0x942   :  { %3760 = vrot.lane.b32.xlu0 %v10448_v40, %s9805_s12 }
 0x943   :  { %4439 = vrot.lane.b32.xlu1 %v10443_v39, %s9807_s4  ;;  %8286 = vmatmul.mubr.msk.f32.gmra.mrb[46].mxu0 %vm1561_vm3, %v12474_v20  ;;  %v12477_v20 = vld [vmem:[#allocation11_spill] sm:$0xff] }
 0x944   :  { %v2859_v5 = vpop.permute.xlu0 %2858  ;;  %8290 = vmatprep.mubr.msk.f32.mxu0 %vm1561_vm3, %v12475_v17  ;;  %v1341_v17 = vsub.s32 3, %v10340_v32 }
 0x945   :  { %v11208_v63 = vpop.permute.xlu1 %3746  ;;  %8288 = vmatprep.subr.mxu0 %v2859_v5 }
 0x946   :  { %12476 = vst [vmem:[#allocation8_spill] sm:$0xff] %v11208_v63  ;;  %3764 = vrot.lane.b32.xlu0 %v10462_v42, %s9805_s12  ;;  %8289 = vmatpush3.msra.mxu0 %v2859_v5  ;;  %v12479_v5 = vld [vmem:[#allocation12_spill] sm:$0xff]  ;;  %v1342_v32 = vrot.slane %v10589_v10, %v1341_v17 }
 0x947   :  { %4443 = vrot.lane.b32.xlu1 %v10457_v41, %s9807_s4  ;;  %8291 = vmatmul.mubr.msk.f32.vlgmr.msra.gmra.mrb[32].mxu0 %vm1561_vm3, %v11062_v36 }
 0x948   :  { %8314 = vmatprep.subr.mxu0 %v11017_v6  ;;  %v11217_v34 = vpop.permute.xlu0 %3070  ;;  %8293 = vmatprep.mubr.msk.f32.mxu0 %vm1561_vm3, %v12477_v20  ;;  %v12480_v20 = vld [vmem:[#allocation13_spill] sm:$0xff] }
 0x949   :  { %8315 = vmatpush3.msra.mxu0 %v11017_v6  ;;  %v11223_v63 = vpop.permute.xlu1 %3750 }
 0x94a   :  { %12478 = vst [vmem:[#allocation9_spill] sm:$0xff] %v11223_v63  ;;  %8340 = vmatprep.subr.mxu0 %v10955_v58  ;;  %3966 = vrot.lane.b32.xlu0 %v10373_v19, %s9806_s29 }
 0x94b   :  { %4447 = vrot.lane.b32.xlu1 %v10471_v43, %s9807_s4  ;;  %8294 = vmatmul.mubr.msk.f32.gmra.mrb[34].mxu0 %vm1561_vm3, %v11074_v0 }
 0x94c   :  { %v11232_v36 = vpop.permute.xlu0 %3074  ;;  %8296 = vmatprep.mubr.msk.f32.mxu0 %vm1561_vm3, %v12479_v5  ;;  %v12481_v5 = vld [vmem:[#allocation4_spill] sm:$0xff] }
 0x94d   :  { %v11237_v6 = vpop.permute.xlu1 %3754  ;;  %v11250_v63 = vadd.f32 %v12481_v5, %v1342_v32 }
 0x94e   :  { %3970 = vrot.lane.b32.xlu0 %v10387_v24, %s9806_s29 }
 0x94f   :  { %4646 = vrot.lane.b32.xlu1 %v10366_v18, %s9808_s6  ;;  %8297 = vmatmul.mubr.msk.f32.gmra.mrb[36].mxu0 %vm1561_vm3, %v11086_v1 }
 0x950   :  { %v11245_v0 = vpop.permute.xlu0 %3078  ;;  %8299 = vmatprep.mubr.msk.f32.mxu0 %vm1561_vm3, %v12480_v20 }
 0x951   :  { %v11252_v10 = vpop.permute.xlu1 %3758 }
 0x952   :  { %3974 = vrot.lane.b32.xlu0 %v10401_v28, %s9806_s29 }
 0x953   :  { %4450 = vrot.lane.b32.xlu1 %v11250_v63, %s9798_s11  ;;  %8300 = vmatmul.mubr.msk.f32.gmra.mrb[38].mxu0 %vm1561_vm3, %v11098_v2 }
 0x954   :  { %v11260_v18 = vpop.permute.xlu0 %3082  ;;  %8302 = vmatprep.mubr.msk.f32.mxu0 %vm1561_vm3, %v10831_v45 }
 0x955   :  { %v11264_v1 = vpop.permute.xlu1 %3762 }
 0x956   :  { %3978 = vrot.lane.b32.xlu0 %v10415_v30, %s9806_s29 }
 0x957   :  { %4650 = vrot.lane.b32.xlu1 %v10378_v23, %s9808_s6  ;;  %8303 = vmatmul.mubr.msk.f32.gmra.mrb[40].mxu0 %vm1561_vm3, %v11110_v3 }
 0x958   :  { %v11272_v17 = vpop.permute.xlu0 %3282  ;;  %8305 = vmatprep.mubr.msk.f32.mxu0 %vm1561_vm3, %v10843_v48 }
 0x959   :  { %v11276_v2 = vpop.permute.xlu1 %3766 }
 0x95a   :  { %3982 = vrot.lane.b32.xlu0 %v10429_v37, %s9806_s29 }
 0x95b   :  { %4654 = vrot.lane.b32.xlu1 %v10392_v25, %s9808_s6  ;;  %8306 = vmatmul.mubr.msk.f32.gmra.mrb[42].mxu0 %vm1561_vm3, %v11122_v7 }
 0x95c   :  { %v11284_v23 = vpop.permute.xlu0 %3286  ;;  %8308 = vmatprep.mubr.msk.f32.mxu0 %vm1561_vm3, %v10855_v49 }
 0x95d   :  { %v11288_v45 = vpop.permute.xlu1 %3964 }
 0x95e   :  { %3986 = vrot.lane.b32.xlu0 %v10443_v39, %s9806_s29 }
 0x95f   :  { %4658 = vrot.lane.b32.xlu1 %v10406_v29, %s9808_s6  ;;  %8309 = vmatmul.mubr.msk.f32.gmra.mrb[44].mxu0 %vm1561_vm3, %v11134_v11 }
 0x960   :  { %v11296_v25 = vpop.permute.xlu0 %3290  ;;  %8311 = vmatprep.mubr.msk.f32.mxu0 %vm1561_vm3, %v10867_v50  ;;  %v12482_v50 = vld [vmem:[#allocation3_spill] sm:$0xff] }
 0x961   :  { %v11300_v48 = vpop.permute.xlu1 %3968 }
 0x962   :  { %3990 = vrot.lane.b32.xlu0 %v10457_v41, %s9806_s29 }
 0x963   :  { %4662 = vrot.lane.b32.xlu1 %v10420_v33, %s9808_s6  ;;  %8312 = vmatmul.mubr.msk.f32.gmra.mrb[46].mxu0 %vm1561_vm3, %v11146_v57  ;;  %v11456_v57 = vld [vmem:[%s12409_s14 + $0x78] sm:$0xff] }
 0x964   :  { %v11308_v29 = vpop.permute.xlu0 %3294  ;;  %8316 = vmatprep.mubr.msk.f32.mxu0 %vm1561_vm3, %v11158_v27 }
 0x965   :  { %v11312_v49 = vpop.permute.xlu1 %3768 }
 0x966   :  { %3994 = vrot.lane.b32.xlu0 %v10471_v43, %s9806_s29 }
 0x967   :  { %4666 = vrot.lane.b32.xlu1 %v10434_v38, %s9808_s6  ;;  %8317 = vmatmul.mubr.msk.f32.vlgmr.msra.gmra.mrb[32].mxu0 %vm1561_vm3, %v10879_v51  ;;  %v11370_v51 = vld [vmem:[%s12409_s14] sm:$0xff] }
 0x968   :  { %8341 = vmatpush3.msra.mxu0 %v10955_v58  ;;  %v11321_v33 = vpop.permute.xlu0 %3298  ;;  %8319 = vmatprep.mubr.msk.f32.mxu0 %vm1561_vm3, %v11170_v60 }
 0x969   :  { %v11325_v41 = vpop.permute.xlu1 %3972 }
 0x96a   :  { %4194 = vrot.lane.b32.xlu0 %v10373_v19, %s9803_s8 }
 0x96b   :  { %4670 = vrot.lane.b32.xlu1 %v10448_v40, %s9808_s6  ;;  %8320 = vmatmul.mubr.msk.f32.gmra.mrb[34].mxu0 %vm1561_vm3, %v10891_v52 }
 0x96c   :  { %v11333_v38 = vpop.permute.xlu0 %3302  ;;  %8322 = vmatprep.mubr.msk.f32.mxu0 %vm1561_vm3, %v11182_v46 }
 0x96d   :  { %v11337_v43 = vpop.permute.xlu1 %3976 }
 0x96e   :  { %4198 = vrot.lane.b32.xlu0 %v10387_v24, %s9803_s8 }
 0x96f   :  { %4674 = vrot.lane.b32.xlu1 %v10462_v42, %s9808_s6  ;;  %8323 = vmatmul.mubr.msk.f32.gmra.mrb[36].mxu0 %vm1561_vm3, %v10903_v53 }
 0x970   :  { %v11345_v19 = vpop.permute.xlu0 %3306  ;;  %8325 = vmatprep.mubr.msk.f32.mxu0 %vm1561_vm3, %v11194_v61 }
 0x971   :  { %v11349_v40 = vpop.permute.xlu1 %3980 }
 0x972   :  { %3996 = vrot.lane.b32.xlu0 %v10955_v58, %s9803_s8 }
 0x973   :  { %1558 = vrot.lane.b32.xlu1 %v12482_v50, %s9798_s11  ;;  %8326 = vmatmul.mubr.msk.f32.gmra.mrb[38].mxu0 %vm1561_vm3, %v10913_v54  ;;  %s9809_s11 = smov 120  }
 0x974   :  { %v11357_v24 = vpop.permute.xlu0 %3310  ;;  %8328 = vmatprep.mubr.msk.f32.mxu0 %vm1561_vm3, %v11217_v34 }
 0x975   :  { %v11361_v42 = vpop.permute.xlu1 %3984 }
 0x976   :  { %4202 = vrot.lane.b32.xlu0 %v10401_v28, %s9803_s8  ;;  %v11387_v28 = vld [vmem:[%s12409_s14 + $0x8] sm:$0xff] }
 0x977   :  { %8329 = vmatmul.mubr.msk.f32.gmra.mrb[40].mxu0 %vm1561_vm3, %v10928_v47  ;;  %1525 = vrot.lane.b32.xlu1 %v11370_v51, %s9809_s11 }
 0x978   :  { %v11374_v52 = vpop.permute.xlu0 %3509  ;;  %8331 = vmatprep.mubr.msk.f32.mxu0 %vm1561_vm3, %v11232_v36 }
 0x979   :  { %v11378_v53 = vpop.permute.xlu1 %3988 }
 0x97a   :  { %4206 = vrot.lane.b32.xlu0 %v10415_v30, %s9803_s8  ;;  %v11404_v30 = vld [vmem:[%s12409_s14 + $0x10] sm:$0xff] }
 0x97b   :  { %8332 = vmatmul.mubr.msk.f32.gmra.mrb[42].mxu0 %vm1561_vm3, %v10942_v31  ;;  %1527 = vrot.lane.b32.xlu1 %v11387_v28, %s9809_s11 }
 0x97c   :  { %v11391_v54 = vpop.permute.xlu0 %3513  ;;  %8334 = vmatprep.mubr.msk.f32.mxu0 %vm1561_vm3, %v11245_v0 }
 0x97d   :  { %v11395_v47 = vpop.permute.xlu1 %3992 }
 0x97e   :  { %4210 = vrot.lane.b32.xlu0 %v10429_v37, %s9803_s8  ;;  %v11421_v37 = vld [vmem:[%s12409_s14 + $0x18] sm:$0xff] }
 0x97f   :  { %8335 = vmatmul.mubr.msk.f32.gmra.mrb[44].mxu0 %vm1561_vm3, %v10957_v16  ;;  %1529 = vrot.lane.b32.xlu1 %v11404_v30, %s9809_s11 }
 0x980   :  { %v11408_v31 = vpop.permute.xlu0 %3517  ;;  %8337 = vmatprep.mubr.msk.f32.mxu0 %vm1561_vm3, %v11260_v18 }
 0x981   :  { %v11412_v58 = vpop.permute.xlu1 %4192 }
 0x982   :  { %4214 = vrot.lane.b32.xlu0 %v10443_v39, %s9803_s8  ;;  %v11434_v39 = vld [vmem:[%s12409_s14 + $0x68] sm:$0xff] }
 0x983   :  { %8338 = vmatmul.mubr.msk.f32.gmra.mrb[46].mxu0 %vm1561_vm3, %v10969_v59  ;;  %1531 = vrot.lane.b32.xlu1 %v11421_v37, %s9809_s11  ;;  %v11443_v59 = vld [vmem:[%s12409_s14 + $0x20] sm:$0xff] }
 0x984   :  { %v11425_v16 = vpop.permute.xlu0 %3521  ;;  %8342 = vmatprep.mubr.msk.f32.mxu0 %vm1561_vm3, %v11272_v17 }
 0x985   :  { %v11429_v3 = vpop.permute.xlu1 %4196 }
 0x986   :  { %4218 = vrot.lane.b32.xlu0 %v11434_v39, %s9803_s8 }
 0x987   :  { %8343 = vmatmul.mubr.msk.f32.vlgmr.msra.gmra.mrb[32].mxu0 %vm1561_vm3, %v10981_v35  ;;  %1533 = vrot.lane.b32.xlu1 %v11443_v59, %s9809_s11  ;;  %v11465_v35 = vld [vmem:[%s12409_s14 + $0x28] sm:$0xff] }
 0x988   :  { %v11447_v7 = vpop.permute.xlu0 %3525  ;;  %8345 = vmatprep.mubr.msk.f32.mxu0 %vm1561_vm3, %v11284_v23 }
 0x989   :  { %v11451_v11 = vpop.permute.xlu1 %4200 }
 0x98a   :  { %4222 = vrot.lane.b32.xlu0 %v11456_v57, %s9803_s8 }
 0x98b   :  { %8346 = vmatmul.mubr.msk.f32.gmra.mrb[34].mxu0 %vm1561_vm3, %v10993_v26  ;;  %1535 = vrot.lane.b32.xlu1 %v11465_v35, %s9809_s11  ;;  %v11482_v26 = vld [vmem:[%s12409_s14 + $0x30] sm:$0xff] }
 0x98c   :  { %v11469_v27 = vpop.permute.xlu0 %3529  ;;  %8348 = vmatprep.mubr.msk.f32.mxu0 %vm1561_vm3, %v11296_v25 }
 0x98d   :  { %v11473_v60 = vpop.permute.xlu1 %4204 }
 0x98e   :  { %4417 = vrot.lane.b32.xlu0 %v11370_v51, %s9807_s4 }
 0x98f   :  { %8349 = vmatmul.mubr.msk.f32.gmra.mrb[36].mxu0 %vm1561_vm3, %v11005_v21  ;;  %1537 = vrot.lane.b32.xlu1 %v11482_v26, %s9809_s11  ;;  %v11499_v21 = vld [vmem:[%s12409_s14 + $0x38] sm:$0xff] }
 0x990   :  { %v11486_v61 = vpop.permute.xlu0 %3533  ;;  %8351 = vmatprep.mubr.msk.f32.mxu0 %vm1561_vm3, %v11308_v29  ;;  %v11578_v29 = vld [vmem:[%s12409_s14 + $0x60] sm:$0xff] }
 0x991   :  { %v11490_v46 = vpop.permute.xlu1 %4208 }
 0x992   :  { %4421 = vrot.lane.b32.xlu0 %v11404_v30, %s9807_s4 }
 0x993   :  { %8352 = vmatmul.mubr.msk.f32.gmra.mrb[38].mxu0 %vm1561_vm3, %v11030_v15  ;;  %1539 = vrot.lane.b32.xlu1 %v11499_v21, %s9809_s11  ;;  %v11516_v15 = vld [vmem:[%s12409_s14 + $0x40] sm:$0xff] }
 0x994   :  { %v11503_v34 = vpop.permute.xlu0 %3537  ;;  %8354 = vmatprep.mubr.msk.f32.mxu0 %vm1561_vm3, %v11321_v33  ;;  %v11595_v33 = vld [vmem:[%s12409_s14 + $0x70] sm:$0xff] }
 0x995   :  { %v11507_v36 = vpop.permute.xlu1 %4212 }
 0x996   :  { %4425 = vrot.lane.b32.xlu0 %v11443_v59, %s9807_s4 }
 0x997   :  { %8355 = vmatmul.mubr.msk.f32.gmra.mrb[40].mxu0 %vm1561_vm3, %v11042_v22  ;;  %1541 = vrot.lane.b32.xlu1 %v11516_v15, %s9809_s11  ;;  %v11533_v22 = vld [vmem:[%s12409_s14 + $0x48] sm:$0xff] }
 0x998   :  { %v11520_v32 = vpop.permute.xlu0 %3736  ;;  %8357 = vmatprep.mubr.msk.f32.mxu0 %vm1561_vm3, %v11333_v38 }
 0x999   :  { %v11524_v0 = vpop.permute.xlu1 %4216 }
 0x99a   :  { %4429 = vrot.lane.b32.xlu0 %v11482_v26, %s9807_s4 }
 0x99b   :  { %8358 = vmatmul.mubr.msk.f32.gmra.mrb[42].mxu0 %vm1561_vm3, %v11054_v4  ;;  %1543 = vrot.lane.b32.xlu1 %v11533_v22, %s9809_s11  ;;  %v11550_v4 = vld [vmem:[%s12409_s14 + $0x50] sm:$0xff] }
 0x99c   :  { %v11537_v20 = vpop.permute.xlu0 %3740  ;;  %8360 = vmatprep.mubr.msk.f32.mxu0 %vm1561_vm3, %v11345_v19 }
 0x99d   :  { %v11541_v5 = vpop.permute.xlu1 %4220 }
 0x99e   :  { %4433 = vrot.lane.b32.xlu0 %v11516_v15, %s9807_s4 }
 0x99f   :  { %8361 = vmatmul.mubr.msk.f32.gmra.mrb[44].mxu0 %vm1561_vm3, %v11066_v8  ;;  %1545 = vrot.lane.b32.xlu1 %v11550_v4, %s9809_s11  ;;  %v11567_v8 = vld [vmem:[%s12409_s14 + $0x58] sm:$0xff]  ;;  %s9810_s14 = smov 8  }
 0x9a0   :  { %v11554_v18 = vpop.permute.xlu0 %3744  ;;  %8363 = vmatprep.mubr.msk.f32.mxu0 %vm1561_vm3, %v11357_v24 }
 0x9a1   :  { %v11558_v17 = vpop.permute.xlu1 %4419 }
 0x9a2   :  { %4437 = vrot.lane.b32.xlu0 %v11550_v4, %s9807_s4 }
 0x9a3   :  { %8364 = vmatmul.mubr.msk.f32.gmra.mrb[46].mxu0 %vm1561_vm3, %v11078_v12  ;;  %1547 = vrot.lane.b32.xlu1 %v11567_v8, %s9809_s11 }
 0x9a4   :  { %v3541_v23 = vpop.permute.xlu0 %3540  ;;  %8368 = vmatprep.mubr.msk.f32.mxu0 %vm1561_vm3, %v11090_v14 }
 0x9a5   :  { %v11573_v25 = vpop.permute.xlu1 %4423  ;;  %8366 = vmatprep.subr.mxu0 %v3541_v23 }
 0x9a6   :  { %4441 = vrot.lane.b32.xlu0 %v11578_v29, %s9807_s4  ;;  %8367 = vmatpush3.msra.mxu0 %v3541_v23 }
 0x9a7   :  { %8369 = vmatmul.mubr.msk.f32.vlgmr.msra.gmra.mrb[32].mxu0 %vm1561_vm3, %v11374_v52  ;;  %8392 = vmatprep.subr.mxu0 %v11312_v49  ;;  %v12483_v52 = vld [vmem:[#allocation5_spill] sm:$0xff] }
 0x9a8   :  { %v3749_v12 = vpop.permute.xlu0 %3748  ;;  %8371 = vmatprep.mubr.msk.f32.mxu0 %vm1561_vm3, %v11102_v44  ;;  %8393 = vmatpush3.msra.mxu0 %v11312_v49 }
 0x9a9   :  { %v11588_v14 = vpop.permute.xlu1 %4427  ;;  %1549 = vrot.lane.b32.xlu1 %v11578_v29, %s9809_s11 }
 0x9aa   :  { %4445 = vrot.lane.b32.xlu0 %v11595_v33, %s9807_s4 }
 0x9ab   :  { %8372 = vmatmul.mubr.msk.f32.gmra.mrb[34].mxu0 %vm1561_vm3, %v11391_v54 }
 0x9ac   :  { %v3753_v38 = vpop.permute.xlu0 %3752  ;;  %8374 = vmatprep.mubr.msk.f32.mxu0 %vm1561_vm3, %v11114_v55 }
 0x9ad   :  { %v11603_v44 = vpop.permute.xlu1 %4431  ;;  %1551 = vrot.lane.b32.xlu1 %v11434_v39, %s9809_s11 }
 0x9ae   :  { %4648 = vrot.lane.b32.xlu0 %v11387_v28, %s9808_s6 }
 0x9af   :  { %8375 = vmatmul.mubr.msk.f32.gmra.mrb[36].mxu0 %vm1561_vm3, %v11408_v31  ;;  %v12484_v31 = vld [vmem:[#allocation6_spill] sm:$0xff] }
 0x9b0   :  { %v3757_v49 = vpop.permute.xlu0 %3756  ;;  %8377 = vmatprep.mubr.msk.f32.mxu0 %vm1561_vm3, %v11126_v56 }
 0x9b1   :  { %v11613_v19 = vpop.permute.xlu1 %4435  ;;  %1553 = vrot.lane.b32.xlu1 %v11595_v33, %s9809_s11 }
 0x9b2   :  { %4652 = vrot.lane.b32.xlu0 %v11421_v37, %s9808_s6 }
 0x9b3   :  { %8378 = vmatmul.mubr.msk.f32.gmra.mrb[38].mxu0 %vm1561_vm3, %v11425_v16 }
 0x9b4   :  { %v3761_v55 = vpop.permute.xlu0 %3760  ;;  %8380 = vmatprep.mubr.msk.f32.mxu0 %vm1561_vm3, %v11138_v9 }
 0x9b5   :  { %v11623_v50 = vpop.permute.xlu1 %4439  ;;  %1555 = vrot.lane.b32.xlu1 %v11456_v57, %s9809_s11 }
 0x9b6   :  { %4656 = vrot.lane.b32.xlu0 %v11465_v35, %s9808_s6 }
 0x9b7   :  { %8381 = vmatmul.mubr.msk.f32.gmra.mrb[40].mxu0 %vm1561_vm3, %v11447_v7 }
 0x9b8   :  { %v3765_v56 = vpop.permute.xlu0 %3764  ;;  %8383 = vmatprep.mubr.msk.f32.mxu0 %vm1561_vm3, %v11150_v13 }
 0x9b9   :  { %v11633_v24 = vpop.permute.xlu1 %4443 }
 0x9ba   :  { %4660 = vrot.lane.b32.xlu0 %v11499_v21, %s9808_s6 }
 0x9bb   :  { %8384 = vmatmul.mubr.msk.f32.gmra.mrb[42].mxu0 %vm1561_vm3, %v11469_v27 }
 0x9bc   :  { %v3967_v9 = vpop.permute.xlu0 %3966  ;;  %8386 = vmatprep.mubr.msk.f32.mxu0 %vm1561_vm3, %v12483_v52 }
 0x9bd   :  { %v11641_v54 = vpop.permute.xlu1 %4447 }
 0x9be   :  { %4664 = vrot.lane.b32.xlu0 %v11533_v22, %s9808_s6 }
 0x9bf   :  { %8387 = vmatmul.mubr.msk.f32.gmra.mrb[44].mxu0 %vm1561_vm3, %v11486_v61  ;;  %v12485_v61 = vld [vmem:[#allocation7_spill] sm:$0xff] }
 0x9c0   :  { %v11647_v13 = vpop.permute.xlu0 %3970  ;;  %8389 = vmatprep.mubr.msk.f32.mxu0 %vm1561_vm3, %v12484_v31 }
 0x9c1   :  { %v11651_v16 = vpop.permute.xlu1 %4646 }
 0x9c2   :  { %4668 = vrot.lane.b32.xlu0 %v11567_v8, %s9808_s6 }
 0x9c3   :  { %8390 = vmatmul.mubr.msk.f32.gmra.mrb[46].mxu0 %vm1561_vm3, %v11503_v34 }
 0x9c4   :  { %v11657_v7 = vpop.permute.xlu0 %3974  ;;  %8394 = vmatprep.mubr.msk.f32.mxu0 %vm1561_vm3, %v11520_v32 }
 0x9c5   :  { %v11661_v27 = vpop.permute.xlu1 %4450 }
 0x9c6   :  { %4672 = vrot.lane.b32.xlu0 %v11434_v39, %s9808_s6 }
 0x9c7   :  { %8395 = vmatmul.mubr.msk.f32.vlgmr.msra.gmra.mrb[32].mxu0 %vm1561_vm3, %v12485_v61 }
 0x9c8   :  { %v11667_v23 = vpop.permute.xlu0 %3978  ;;  %8397 = vmatprep.mubr.msk.f32.mxu0 %vm1561_vm3, %v11537_v20  ;;  %v12486_v20 = vld [vmem:[#allocation8_spill] sm:$0xff] }
 0x9c9   :  { %v11671_v52 = vpop.permute.xlu1 %4650 }
 0x9ca   :  { %4676 = vrot.lane.b32.xlu0 %v11456_v57, %s9808_s6 }
 0x9cb   :  { %8398 = vmatmul.mubr.msk.f32.gmra.mrb[34].mxu0 %vm1561_vm3, %v11198_v62  ;;  %v12487_v62 = vld [vmem:[#allocation9_spill] sm:$0xff] }
 0x9cc   :  { %v11677_v34 = vpop.permute.xlu0 %3982  ;;  %8400 = vmatprep.mubr.msk.f32.mxu0 %vm1561_vm3, %v11554_v18 }
 0x9cd   :  { %v11681_v32 = vpop.permute.xlu1 %4654 }
 0x9ce   :  { %4874 = vrot.lane.b32.xlu0 %v11370_v51, %s9810_s14 }
 0x9cf   :  { %8401 = vmatmul.mubr.msk.f32.gmra.mrb[36].mxu0 %vm1561_vm3, %v12486_v20 }
 0x9d0   :  { %v11687_v31 = vpop.permute.xlu0 %3986  ;;  %8403 = vmatprep.mubr.msk.f32.mxu0 %vm1561_vm3, %v3749_v12 }
 0x9d1   :  { %v11690_v61 = vpop.permute.xlu1 %4658 }
 0x9d2   :  { %4678 = vrot.lane.b32.xlu0 %v11250_v63, %s9801_s7 }
 0x9d3   :  { %8404 = vmatmul.mubr.msk.f32.gmra.mrb[38].mxu0 %vm1561_vm3, %v12487_v62 }
 0x9d4   :  { %v11696_v18 = vpop.permute.xlu0 %3990  ;;  %8406 = vmatprep.mubr.msk.f32.mxu0 %vm1561_vm3, %v3753_v38 }
 0x9d5   :  { %v11699_v51 = vpop.permute.xlu1 %4662 }
 0x9d6   :  { %4876 = vrot.lane.b32.xlu0 %v11387_v28, %s9810_s14 }
 0x9d7   :  { %8407 = vmatmul.mubr.msk.f32.gmra.mrb[40].mxu0 %vm1561_vm3, %v11237_v6 }
 0x9d8   :  { %v11705_v12 = vpop.permute.xlu0 %3994  ;;  %8409 = vmatprep.mubr.msk.f32.mxu0 %vm1561_vm3, %v3757_v49 }
 0x9d9   :  { %v11708_v20 = vpop.permute.xlu1 %4666 }
 0x9da   :  { %4878 = vrot.lane.b32.xlu0 %v11404_v30, %s9810_s14 }
 0x9db   :  { %8410 = vmatmul.mubr.msk.f32.gmra.mrb[42].mxu0 %vm1561_vm3, %v11252_v10 }
 0x9dc   :  { %v11714_v38 = vpop.permute.xlu0 %4194  ;;  %8412 = vmatprep.mubr.msk.f32.mxu0 %vm1561_vm3, %v3761_v55 }
 0x9dd   :  { %v11717_v28 = vpop.permute.xlu1 %4670 }
 0x9de   :  { %4880 = vrot.lane.b32.xlu0 %v11421_v37, %s9810_s14 }
 0x9df   :  { %8413 = vmatmul.mubr.msk.f32.gmra.mrb[44].mxu0 %vm1561_vm3, %v11264_v1 }
 0x9e0   :  { %v11723_v6 = vpop.permute.xlu0 %4198  ;;  %8415 = vmatprep.mubr.msk.f32.mxu0 %vm1561_vm3, %v3765_v56 }
 0x9e1   :  { %v11726_v30 = vpop.permute.xlu1 %4674 }
 0x9e2   :  { %4882 = vrot.lane.b32.xlu0 %v11443_v59, %s9810_s14 }
 0x9e3   :  { %8416 = vmatmul.mubr.msk.f32.gmra.mrb[46].mxu0 %vm1561_vm3, %v11276_v2 }
 0x9e4   :  { %v3997_v10 = vpop.permute.xlu0 %3996  ;;  %8420 = vmatprep.mubr.msk.f32.mxu0 %vm1561_vm3, %v11288_v45 }
 0x9e5   :  { %v1559_v37 = vpop.permute.xlu1 %1558  ;;  %8418 = vmatprep.subr.mxu0 %v3997_v10 }
 0x9e6   :  { %8132 = vmatprep.subr.mxu1 %v1559_v37  ;;  %4884 = vrot.lane.b32.xlu0 %v11465_v35, %s9810_s14 }
 0x9e7   :  { %8419 = vmatpush3.msra.mxu0 %v3997_v10  ;;  %8133 = vmatpush3.msra.mxu1 %v1559_v37 }
 0x9e8   :  { %8421 = vmatmul.mubr.msk.f32.vlgmr.msra.gmra.mrb[32].mxu0 %vm1561_vm3, %v3967_v9  ;;  %8444 = vmatprep.subr.mxu0 %v11250_v63  ;;  %v11738_v1 = vpop.permute.xlu0 %4202 }
 0x9e9   :  { %8423 = vmatprep.mubr.msk.f32.mxu0 %vm1561_vm3, %v11300_v48  ;;  %8445 = vmatpush3.msra.mxu0 %v11250_v63  ;;  %v1526_v2 = vpop.permute.xlu1 %1525 }
 0x9ea   :  { %8470 = vmatprep.subr.mxu0 %v11661_v27  ;;  %4886 = vrot.lane.b32.xlu0 %v11482_v26, %s9810_s14 }
 0x9eb   :  { %8134 = vmatprep.mubr.msk.f32.mxu1 %vm1561_vm3, %v1526_v2 }
 0x9ec   :  { %8424 = vmatmul.mubr.msk.f32.gmra.mrb[34].mxu0 %vm1561_vm3, %v11647_v13  ;;  %v11749_v45 = vpop.permute.xlu0 %4206 }
 0x9ed   :  { %8426 = vmatprep.mubr.msk.f32.mxu0 %vm1561_vm3, %v11325_v41  ;;  %v1528_v59 = vpop.permute.xlu1 %1527 }
 0x9ee   :  { %4888 = vrot.lane.b32.xlu0 %v11499_v21, %s9810_s14  ;;  %8135 = vmatmul.mubr.msk.f32.vlgmr.msra.gmra.mrb[72].mxu1 %vm1561_vm3, %v1528_v59 }
 0x9f0   :  { %8427 = vmatmul.mubr.msk.f32.gmra.mrb[36].mxu0 %vm1561_vm3, %v11657_v7  ;;  %v11758_v48 = vpop.permute.xlu0 %4210 }
 0x9f1   :  { %8429 = vmatprep.mubr.msk.f32.mxu0 %vm1561_vm3, %v11337_v43  ;;  %v1530_v35 = vpop.permute.xlu1 %1529 }
 0x9f2   :  { %4906 = vrot.lane.b32.xlu0 %v11250_v63, %s9803_s8  ;;  %8137 = vmatprep.mubr.msk.f32.mxu1 %vm1561_vm3, %v1530_v35 }
 0x9f4   :  { %8430 = vmatmul.mubr.msk.f32.gmra.mrb[38].mxu0 %vm1561_vm3, %v11667_v23  ;;  %v11767_v41 = vpop.permute.xlu0 %4214 }
 0x9f5   :  { %8432 = vmatprep.mubr.msk.f32.mxu0 %vm1561_vm3, %v11349_v40  ;;  %v1532_v26 = vpop.permute.xlu1 %1531 }
 0x9f6   :  { %4890 = vrot.lane.b32.xlu0 %v11516_v15, %s9810_s14  ;;  %8138 = vmatmul.mubr.msk.f32.gmra.mrb[74].mxu1 %vm1561_vm3, %v1532_v26 }
 0x9f8   :  { %8433 = vmatmul.mubr.msk.f32.gmra.mrb[40].mxu0 %vm1561_vm3, %v11677_v34  ;;  %v4219_v63 = vpop.permute.xlu0 %4218 }
 0x9f9   :  { %8435 = vmatprep.mubr.msk.f32.mxu0 %vm1561_vm3, %v11361_v42  ;;  %v1534_v43 = vpop.permute.xlu1 %1533 }
 0x9fa   :  { %4892 = vrot.lane.b32.xlu0 %v11533_v22, %s9810_s14  ;;  %8140 = vmatprep.mubr.msk.f32.mxu1 %vm1561_vm3, %v1534_v43 }
 0x9fc   :  { %8436 = vmatmul.mubr.msk.f32.gmra.mrb[42].mxu0 %vm1561_vm3, %v11687_v31  ;;  %v4223_v40 = vpop.permute.xlu0 %4222 }
 0x9fd   :  { %8438 = vmatprep.mubr.msk.f32.mxu0 %vm1561_vm3, %v11378_v53  ;;  %v1536_v21 = vpop.permute.xlu1 %1535 }
 0x9fe   :  { %4894 = vrot.lane.b32.xlu0 %v11550_v4, %s9810_s14  ;;  %8141 = vmatmul.mubr.msk.f32.gmra.mrb[76].mxu1 %vm1561_vm3, %v1536_v21  ;;  %v5151_v4 = vld [vmem:[%s12411_s17 + $0x8] sm:$0xff] }
 0xa00   :  { %8439 = vmatmul.mubr.msk.f32.gmra.mrb[44].mxu0 %vm1561_vm3, %v11696_v18  ;;  %v4418_v42 = vpop.permute.xlu0 %4417 }
 0xa01   :  { %8441 = vmatprep.mubr.msk.f32.mxu0 %vm1561_vm3, %v11395_v47  ;;  %v1538_v15 = vpop.permute.xlu1 %1537  ;;  %v5150_v47 = vld [vmem:[%s12411_s17] sm:$0xff] }
 0xa02   :  { %4896 = vrot.lane.b32.xlu0 %v11567_v8, %s9810_s14  ;;  %8143 = vmatprep.mubr.msk.f32.mxu1 %vm1561_vm3, %v1538_v15  ;;  %v9252_v8 = vpack.c.bf16 %v5151_v4, %v5150_v47  ;;  %v5102_v4 = vld [vmem:[%s12412_s1] sm:$0xff] }
 0xa04   :  { %8442 = vmatmul.mubr.msk.f32.gmra.mrb[46].mxu0 %vm1561_vm3, %v11705_v12  ;;  %v4422_v53 = vpop.permute.xlu0 %4421  ;;  %9253 = vmatprep.subr.bf16.mxu1 %v9252_v8 }
 0xa05   :  { %8446 = vmatprep.mubr.msk.f32.mxu0 %vm1561_vm3, %v11412_v58  ;;  %v1540_v22 = vpop.permute.xlu1 %1539  ;;  %9255 = vmatpush3.bf16.msra.mxu1 %v9252_v8  ;;  %v5103_v8 = vld [vmem:[%s12412_s1 + $0x8] sm:$0xff] }
 0xa06   :  { %4898 = vrot.lane.b32.xlu0 %v11578_v29, %s9810_s14  ;;  %8144 = vmatmul.mubr.msk.f32.gmra.mrb[78].mxu1 %vm1561_vm3, %v1540_v22 }
 0xa08   :  { %8447 = vmatmul.mubr.msk.f32.vlgmr.msra.gmra.mrb[32].mxu0 %vm1561_vm3, %v11714_v38  ;;  %v4426_v49 = vpop.permute.xlu0 %4425 }
 0xa09   :  { %8471 = vmatpush3.msra.mxu0 %v11661_v27  ;;  %8449 = vmatprep.mubr.msk.f32.mxu0 %vm1561_vm3, %v11429_v3  ;;  %v1542_v58 = vpop.permute.xlu1 %1541 }
 0xa0a   :  { %4900 = vrot.lane.b32.xlu0 %v11434_v39, %s9810_s14  ;;  %8146 = vmatprep.mubr.msk.f32.mxu1 %vm1561_vm3, %v1542_v58 }
 0xa0c   :  { %8450 = vmatmul.mubr.msk.f32.gmra.mrb[34].mxu0 %vm1561_vm3, %v11723_v6  ;;  %v4430_v29 = vpop.permute.xlu0 %4429  ;;  %v5153_v6 = vld [vmem:[%s12411_s17 + $0x18] sm:$0xff] }
 0xa0d   :  { %8452 = vmatprep.mubr.msk.f32.mxu0 %vm1561_vm3, %v11451_v11  ;;  %v1544_v55 = vpop.permute.xlu1 %1543 }
 0xa0e   :  { %4902 = vrot.lane.b32.xlu0 %v11595_v33, %s9810_s14  ;;  %8147 = vmatmul.mubr.msk.f32.gmra.mrb[80].mxu1 %vm1561_vm3, %v1544_v55 }
 0xa10   :  { %8453 = vmatmul.mubr.msk.f32.gmra.mrb[36].mxu0 %vm1561_vm3, %v11738_v1  ;;  %v4434_v3 = vpop.permute.xlu0 %4433 }
 0xa11   :  { %8455 = vmatprep.mubr.msk.f32.mxu0 %vm1561_vm3, %v11473_v60  ;;  %v1546_v39 = vpop.permute.xlu1 %1545 }
 0xa12   :  { %4904 = vrot.lane.b32.xlu0 %v11456_v57, %s9810_s14  ;;  %8149 = vmatprep.mubr.msk.f32.mxu1 %vm1561_vm3, %v1546_v39 }
 0xa14   :  { %8456 = vmatmul.mubr.msk.f32.gmra.mrb[38].mxu0 %vm1561_vm3, %v11749_v45  ;;  %v4438_v11 = vpop.permute.xlu0 %4437 }
 0xa15   :  { %8458 = vmatprep.mubr.msk.f32.mxu0 %vm1561_vm3, %v11490_v46  ;;  %v1548_v33 = vpop.permute.xlu1 %1547 }
 0xa16   :  { %8150 = vmatmul.mubr.msk.f32.gmra.mrb[82].mxu1 %vm1561_vm3, %v1548_v33  ;;  %v5105_v33 = vld [vmem:[%s12412_s1 + $0x18] sm:$0xff] }
 0xa18   :  { %8459 = vmatmul.mubr.msk.f32.gmra.mrb[40].mxu0 %vm1561_vm3, %v11758_v48  ;;  %v4442_v60 = vpop.permute.xlu0 %4441 }
 0xa19   :  { %8461 = vmatprep.mubr.msk.f32.mxu0 %vm1561_vm3, %v11507_v36 }
 0xa1b   :  { %v1550_v57 = vpop.permute.xlu1 %1549 }
 0xa1c   :  { %8462 = vmatmul.mubr.msk.f32.gmra.mrb[42].mxu0 %vm1561_vm3, %v11767_v41  ;;  %v4446_v56 = vpop.permute.xlu0 %4445  ;;  %8152 = vmatprep.mubr.msk.f32.mxu1 %vm1561_vm3, %v1550_v57 }
 0xa1d   :  { %8464 = vmatprep.mubr.msk.f32.mxu0 %vm1561_vm3, %v11524_v0 }
 0xa1f   :  { %v1552_v46 = vpop.permute.xlu1 %1551 }
 0xa20   :  { %8465 = vmatmul.mubr.msk.f32.gmra.mrb[44].mxu0 %vm1561_vm3, %v4219_v63  ;;  %v4649_v9 = vpop.permute.xlu0 %4648  ;;  %8153 = vmatmul.mubr.msk.f32.gmra.mrb[84].mxu1 %vm1561_vm3, %v1552_v46 }
 0xa21   :  { %8467 = vmatprep.mubr.msk.f32.mxu0 %vm1561_vm3, %v11541_v5 }
 0xa23   :  { %v1554_v36 = vpop.permute.xlu1 %1553 }
 0xa24   :  { %8468 = vmatmul.mubr.msk.f32.gmra.mrb[46].mxu0 %vm1561_vm3, %v4223_v40  ;;  %v4653_v13 = vpop.permute.xlu0 %4652  ;;  %8155 = vmatprep.mubr.msk.f32.mxu1 %vm1561_vm3, %v1554_v36 }
 0xa25   :  { %8472 = vmatprep.mubr.msk.f32.mxu0 %vm1561_vm3, %v4418_v42 }
 0xa27   :  { %v1556_v7 = vpop.permute.xlu1 %1555 }
 0xa28   :  { %8473 = vmatmul.mubr.msk.f32.vlgmr.msra.gmra.mrb[32].mxu0 %vm1561_vm3, %v11558_v17  ;;  %v4657_v0 = vpop.permute.xlu0 %4656  ;;  %8156 = vmatmul.mubr.msk.f32.gmra.mrb[86].mxu1 %vm1561_vm3, %v1556_v7  ;;  %v5107_v7 = vld [vmem:[%s12412_s1 + $0x28] sm:$0xff] }
 0xa29   :  { %8475 = vmatprep.mubr.msk.f32.mxu0 %vm1561_vm3, %v4422_v53 }
 0xa2c   :  { %8476 = vmatmul.mubr.msk.f32.gmra.mrb[34].mxu0 %vm1561_vm3, %v11573_v25  ;;  %v4661_v5 = vpop.permute.xlu0 %4660 }
 0xa2d   :  { %8478 = vmatprep.mubr.msk.f32.mxu0 %vm1561_vm3, %v4426_v49 }
 0xa30   :  { %8479 = vmatmul.mubr.msk.f32.gmra.mrb[36].mxu0 %vm1561_vm3, %v11588_v14  ;;  %v4665_v27 = vpop.permute.xlu0 %4664 }
 0xa31   :  { %8481 = vmatprep.mubr.msk.f32.mxu0 %vm1561_vm3, %v4430_v29 }
 0xa34   :  { %8482 = vmatmul.mubr.msk.f32.gmra.mrb[38].mxu0 %vm1561_vm3, %v11603_v44  ;;  %v4669_v17 = vpop.permute.xlu0 %4668 }
 0xa35   :  { %8484 = vmatprep.mubr.msk.f32.mxu0 %vm1561_vm3, %v4434_v3 }
 0xa38   :  { %8485 = vmatmul.mubr.msk.f32.gmra.mrb[40].mxu0 %vm1561_vm3, %v11613_v19  ;;  %v4673_v23 = vpop.permute.xlu0 %4672 }
 0xa39   :  { %8487 = vmatprep.mubr.msk.f32.mxu0 %vm1561_vm3, %v4438_v11  ;;  %v5104_v11 = vld [vmem:[%s12412_s1 + $0x10] sm:$0xff] }
 0xa3c   :  { %8488 = vmatmul.mubr.msk.f32.gmra.mrb[42].mxu0 %vm1561_vm3, %v11623_v50  ;;  %v4677_v25 = vpop.permute.xlu0 %4676 }
 0xa3d   :  { %8490 = vmatprep.mubr.msk.f32.mxu0 %vm1561_vm3, %v4442_v60 }
 0xa40   :  { %8491 = vmatmul.mubr.msk.f32.gmra.mrb[44].mxu0 %vm1561_vm3, %v11633_v24  ;;  %v4875_v14 = vpop.permute.xlu0 %4874 }
 0xa41   :  { %8493 = vmatprep.mubr.msk.f32.mxu0 %vm1561_vm3, %v4446_v56 }
 0xa44   :  { %8494 = vmatmul.mubr.msk.f32.gmra.mrb[46].mxu0 %vm1561_vm3, %v11641_v54  ;;  %v4679_v44 = vpop.permute.xlu0 %4678 }
 0xa45   :  { %8498 = vmatprep.mubr.msk.f32.mxu0 %vm1561_vm3, %v11651_v16  ;;  %8496 = vmatprep.subr.mxu0 %v4679_v44 }
 0xa46   :  { %8497 = vmatpush3.msra.mxu0 %v4679_v44  ;;  %v5109_v44 = vld [vmem:[%s12412_s1 + $0x38] sm:$0xff] }
 0xa48   :  { %8499 = vmatmul.mubr.msk.f32.vlgmr.msra.gmra.mrb[32].mxu0 %vm1561_vm3, %v4649_v9  ;;  %v4877_v19 = vpop.permute.xlu0 %4876 }
 0xa49   :  { %8501 = vmatprep.mubr.msk.f32.mxu0 %vm1561_vm3, %v11671_v52 }
 0xa4c   :  { %8502 = vmatmul.mubr.msk.f32.gmra.mrb[34].mxu0 %vm1561_vm3, %v4653_v13  ;;  %v4879_v50 = vpop.permute.xlu0 %4878  ;;  %v5106_v13 = vld [vmem:[%s12412_s1 + $0x20] sm:$0xff] }
 0xa4d   :  { %8504 = vmatprep.mubr.msk.f32.mxu0 %vm1561_vm3, %v11681_v32 }
 0xa50   :  { %8505 = vmatmul.mubr.msk.f32.gmra.mrb[36].mxu0 %vm1561_vm3, %v4657_v0  ;;  %v4881_v24 = vpop.permute.xlu0 %4880 }
 0xa51   :  { %8507 = vmatprep.mubr.msk.f32.mxu0 %vm1561_vm3, %v11690_v61 }
 0xa54   :  { %8508 = vmatmul.mubr.msk.f32.gmra.mrb[38].mxu0 %vm1561_vm3, %v4661_v5  ;;  %v4883_v54 = vpop.permute.xlu0 %4882 }
 0xa55   :  { %8510 = vmatprep.mubr.msk.f32.mxu0 %vm1561_vm3, %v11699_v51 }
 0xa58   :  { %8511 = vmatmul.mubr.msk.f32.gmra.mrb[40].mxu0 %vm1561_vm3, %v4665_v27  ;;  %v4885_v16 = vpop.permute.xlu0 %4884 }
 0xa59   :  { %8513 = vmatprep.mubr.msk.f32.mxu0 %vm1561_vm3, %v11708_v20 }
 0xa5c   :  { %8514 = vmatmul.mubr.msk.f32.gmra.mrb[42].mxu0 %vm1561_vm3, %v4669_v17  ;;  %v4887_v52 = vpop.permute.xlu0 %4886 }
 0xa5d   :  { %8516 = vmatprep.mubr.msk.f32.mxu0 %vm1561_vm3, %v11717_v28  ;;  %v5152_v28 = vld [vmem:[%s12411_s17 + $0x10] sm:$0xff] }
 0xa60   :  { %8517 = vmatmul.mubr.msk.f32.gmra.mrb[44].mxu0 %vm1561_vm3, %v4673_v23  ;;  %v4889_v34 = vpop.permute.xlu0 %4888 }
 0xa61   :  { %8519 = vmatprep.mubr.msk.f32.mxu0 %vm1561_vm3, %v11726_v30  ;;  %v9256_v30 = vpack.c.bf16 %v5153_v6, %v5152_v28 }
 0xa63   :  { %9257 = vmatprep.subr.bf16.mxu1 %v9256_v30 }
 0xa64   :  { %8520 = vmatmul.mubr.msk.f32.gmra.mrb[46].mxu0 %vm1561_vm3, %v4677_v25  ;;  %v4907_v32 = vpop.permute.xlu0 %4906  ;;  %9259 = vmatpush3.bf16.msra.mxu1 %v9256_v30 }
 0xa65   :  { %8524 = vmatprep.mubr.msk.f32.mxu0 %vm1561_vm3, %v4875_v14  ;;  %8522 = vmatprep.subr.mxu0 %v4907_v32  ;;  %v5108_v14 = vld [vmem:[%s12412_s1 + $0x30] sm:$0xff] }
 0xa66   :  { %8523 = vmatpush3.msra.mxu0 %v4907_v32  ;;  %v5111_v32 = vld [vmem:[%s12412_s1 + $0x48] sm:$0xff] }
 0xa68   :  { %8525 = vmatmul.mubr.msk.f32.vlgmr.msra.gmra.mrb[32].mxu0 %vm1561_vm3, %v4877_v19  ;;  %v4891_v31 = vpop.permute.xlu0 %4890 }
 0xa69   :  { %8527 = vmatprep.mubr.msk.f32.mxu0 %vm1561_vm3, %v4879_v50 }
 0xa6c   :  { %8528 = vmatmul.mubr.msk.f32.gmra.mrb[34].mxu0 %vm1561_vm3, %v4881_v24  ;;  %v4893_v61 = vpop.permute.xlu0 %4892 }
 0xa6d   :  { %8530 = vmatprep.mubr.msk.f32.mxu0 %vm1561_vm3, %v4883_v54 }
 0xa70   :  { %8531 = vmatmul.mubr.msk.f32.gmra.mrb[36].mxu0 %vm1561_vm3, %v4885_v16  ;;  %v4895_v62 = vpop.permute.xlu0 %4894 }
 0xa71   :  { %8533 = vmatprep.mubr.msk.f32.mxu0 %vm1561_vm3, %v4887_v52 }
 0xa74   :  { %8534 = vmatmul.mubr.msk.f32.gmra.mrb[38].mxu0 %vm1561_vm3, %v4889_v34  ;;  %v4897_v18 = vpop.permute.xlu0 %4896  ;;  %v5110_v34 = vld [vmem:[%s12412_s1 + $0x40] sm:$0xff] }
 0xa75   :  { %8536 = vmatprep.mubr.msk.f32.mxu0 %vm1561_vm3, %v4891_v31 }
 0xa78   :  { %8537 = vmatmul.mubr.msk.f32.gmra.mrb[40].mxu0 %vm1561_vm3, %v4893_v61  ;;  %v4899_v51 = vpop.permute.xlu0 %4898 }
 0xa79   :  { %8539 = vmatprep.mubr.msk.f32.mxu0 %vm1561_vm3, %v4895_v62 }
 0xa7c   :  { %8540 = vmatmul.mubr.msk.f32.gmra.mrb[42].mxu0 %vm1561_vm3, %v4897_v18  ;;  %v4901_v12 = vpop.permute.xlu0 %4900 }
 0xa7d   :  { %8542 = vmatprep.mubr.msk.f32.mxu0 %vm1561_vm3, %v4899_v51 }
 0xa80   :  { %8543 = vmatmul.mubr.msk.f32.gmra.mrb[44].mxu0 %vm1561_vm3, %v4901_v12  ;;  %v4903_v20 = vpop.permute.xlu0 %4902 }
 0xa81   :  { %8545 = vmatprep.mubr.msk.f32.mxu0 %vm1561_vm3, %v4903_v20  ;;  %v5112_v20 = vld [vmem:[%s12412_s1 + $0x50] sm:$0xff] }
 0xa84   :  { %v4905_v38 = vpop.permute.xlu0 %4904 }
 0xa85   :  { %8546 = vmatmul.mubr.msk.f32.gmra.mrb[46].mxu0 %vm1561_vm3, %v4905_v38  ;;  %v5113_v38 = vld [vmem:[%s12412_s1 + $0x58] sm:$0xff] }
 0xac1   :  { %v8136_v10 = vpop.f32.mrb[72].mxu1 }
 0xac2   :  { %v1660_v37 = vpop.f32.mrb[73].mxu1 }
 0xac9   :  { %v8139_v1 = vpop.f32.mrb[74].mxu1 }
 0xaca   :  { %v1670_v2 = vpop.f32.mrb[75].mxu1 }
 0xad1   :  { %v8142_v45 = vpop.f32.mrb[76].mxu1 }
 0xad2   :  { %v1680_v59 = vpop.f32.mrb[77].mxu1 }
 0xad9   :  { %v8145_v48 = vpop.f32.mrb[78].mxu1 }
 0xada   :  { %v1690_v35 = vpop.f32.mrb[79].mxu1 }
 0xae1   :  { %v8148_v41 = vpop.f32.mrb[80].mxu1 }
 0xae2   :  { %v1700_v26 = vpop.f32.mrb[81].mxu1 }
 0xae9   :  { %v8151_v63 = vpop.f32.mrb[82].mxu1 }
 0xaea   :  { %v1710_v43 = vpop.f32.mrb[83].mxu1 }
 0xaf3   :  { %v11921_v40 = vpop.f32.mrb[84].mxu1 }
 0xaf4   :  { %v11923_v21 = vpop.f32.mrb[85].mxu1 }
 0xafb   :  { %v11925_v42 = vpop.f32.mrb[86].mxu1 }
 0xafc   :  { %v11927_v15 = vpop.f32.mrb[87].mxu1 }
 0xb3b   :  { %v8526_v53 = vpop.f32.mrb[32].mxu0 }
 0xb3c   :  { %v9516_v22 = vadd.f32 %v8526_v53, %v8136_v10  ;;  %v5007_v47 = vpop.f32.mrb[33].mxu0 }
 0xb3d   :  { %v9517_v49 = vadd.f32 %v5007_v47, %v1660_v37  ;;  %v6967_v47 = vld [vmem:[%s12414_s18] ss:$0 sm:$0xff] }
 0xb3e   :  { %v5119_v55 = vadd.f32 %v9516_v22, %v5103_v8 }
 0xb3f   :  { %v5118_v58 = vadd.f32 %v9517_v49, %v5102_v4  ;;  %v8529_v29 = vpop.f32.mrb[34].mxu0 }
 0xb40   :  { %v9518_v3 = vadd.f32 %v8529_v29, %v8139_v1  ;;  %v5017_v39 = vpop.f32.mrb[35].mxu0 }
 0xb41   :  { %v9519_v60 = vadd.f32 %v5017_v39, %v1670_v2  ;;  %8556 = vmatprep.mubr.msk.f32.mxu1 %vm131_vm0, %v5118_v58  ;;  %v5114_v2 = vld [vmem:[%s12412_s1 + $0x60] sm:$0xff] }
 0xb42   :  { %8557 = vmatmul.mubr.msk.f32.vlgmr.msra.gmra.mrb[88].mxu1 %vm131_vm0, %v5119_v55  ;;  %v5121_v46 = vadd.f32 %v9518_v3, %v5105_v33 }
 0xb43   :  { %v5120_v57 = vadd.f32 %v9519_v60, %v5104_v11  ;;  %v8532_v56 = vpop.f32.mrb[36].mxu0 }
 0xb44   :  { %v9520_v9 = vadd.f32 %v8532_v56, %v8142_v45  ;;  %v5027_v36 = vpop.f32.mrb[37].mxu0  ;;  %v5115_v45 = vld [vmem:[%s12412_s1 + $0x68] sm:$0xff] }
 0xb45   :  { %v9521_v0 = vadd.f32 %v5027_v36, %v1680_v59  ;;  %8559 = vmatprep.mubr.msk.f32.mxu1 %vm131_vm0, %v5120_v57 }
 0xb46   :  { %8560 = vmatmul.mubr.msk.f32.gmra.mrb[90].mxu1 %vm131_vm0, %v5121_v46  ;;  %v5123_v17 = vadd.f32 %v9520_v9, %v5107_v7 }
 0xb47   :  { %v5122_v5 = vadd.f32 %v9521_v0, %v5106_v13  ;;  %v8535_v27 = vpop.f32.mrb[38].mxu0 }
 0xb48   :  { %v9522_v23 = vadd.f32 %v8535_v27, %v8145_v48  ;;  %v5037_v25 = vpop.f32.mrb[39].mxu0 }
 0xb49   :  { %v9523_v19 = vadd.f32 %v5037_v25, %v1690_v35  ;;  %8562 = vmatprep.mubr.msk.f32.mxu1 %vm131_vm0, %v5122_v5 }
 0xb4a   :  { %8563 = vmatmul.mubr.msk.f32.gmra.mrb[92].mxu1 %vm131_vm0, %v5123_v17  ;;  %v5125_v54 = vadd.f32 %v9522_v23, %v5109_v44 }
 0xb4b   :  { %v5124_v50 = vadd.f32 %v9523_v19, %v5108_v14  ;;  %v8538_v24 = vpop.f32.mrb[40].mxu0 }
 0xb4c   :  { %v9524_v16 = vadd.f32 %v8538_v24, %v8148_v41  ;;  %v5047_v52 = vpop.f32.mrb[41].mxu0 }
 0xb4d   :  { %v9525_v31 = vadd.f32 %v5047_v52, %v1700_v26  ;;  %8565 = vmatprep.mubr.msk.f32.mxu1 %vm131_vm0, %v5124_v50 }
 0xb4e   :  { %8566 = vmatmul.mubr.msk.f32.gmra.mrb[94].mxu1 %vm131_vm0, %v5125_v54  ;;  %v5127_v18 = vadd.f32 %v9524_v16, %v5111_v32 }
 0xb4f   :  { %v5126_v61 = vadd.f32 %v9525_v31, %v5110_v34  ;;  %v8541_v62 = vpop.f32.mrb[42].mxu0 }
 0xb50   :  { %v9526_v51 = vadd.f32 %v8541_v62, %v8151_v63  ;;  %v5057_v12 = vpop.f32.mrb[43].mxu0 }
 0xb51   :  { %v9527_v28 = vadd.f32 %v5057_v12, %v1710_v43  ;;  %8568 = vmatprep.mubr.msk.f32.mxu1 %vm131_vm0, %v5126_v61  ;;  %v5116_v43 = vld [vmem:[%s12412_s1 + $0x70] sm:$0xff] }
 0xb52   :  { %8569 = vmatmul.mubr.msk.f32.gmra.mrb[96].mxu1 %vm131_vm0, %v5127_v18  ;;  %v5129_v10 = vadd.f32 %v9526_v51, %v5113_v38  ;;  %v5515_v18 = vld [vmem:[%s12415_s19] sm:$0xff]  ;;  %v5516_v51 = vld [vmem:[%s12415_s19 + $0x8] sm:$0xff] }
 0xb53   :  { %v5128_v6 = vadd.f32 %v9527_v28, %v5112_v20  ;;  %v8544_v30 = vpop.f32.mrb[44].mxu0  ;;  %v9292_v38 = vpack.c.bf16 %v5516_v51, %v5515_v18  ;;  %v5517_v28 = vld [vmem:[%s12415_s19 + $0x10] sm:$0xff] }
 0xb54   :  { %v9528_v37 = vadd.f32 %v8544_v30, %v11921_v40  ;;  %v5067_v1 = vpop.f32.mrb[45].mxu0  ;;  %v5117_v40 = vld [vmem:[%s12412_s1 + $0x78] sm:$0xff]  ;;  %v12021_v30 = vld [vmem:[%s12413_s3 + $0x8] sm:$0xff] }
 0xb55   :  { %v9529_v59 = vadd.f32 %v5067_v1, %v11923_v21  ;;  %8571 = vmatprep.mubr.msk.f32.mxu1 %vm131_vm0, %v5128_v6  ;;  %v5518_v6 = vld [vmem:[%s12415_s19 + $0x18] sm:$0xff]  ;;  %v5519_v1 = vld [vmem:[%s12415_s19 + $0x20] sm:$0xff] }
 0xb56   :  { %8572 = vmatmul.mubr.msk.f32.gmra.mrb[98].mxu1 %vm131_vm0, %v5129_v10  ;;  %v5131_v35 = vadd.f32 %v9528_v37, %v5115_v45  ;;  %v12026_v10 = vld [vmem:[%s12413_s3 + $0x10] sm:$0xff]  ;;  %v9296_v37 = vpack.c.bf16 %v5518_v6, %v5517_v28  ;;  %v12039_v45 = vld [vmem:[%s12413_s3 + $0x18] sm:$0xff] }
 0xb57   :  { %v5130_v48 = vadd.f32 %v9529_v59, %v5114_v2  ;;  %v5520_v2 = vld [vmem:[%s12415_s19 + $0x28] sm:$0xff]  ;;  %v12044_v59 = vld [vmem:[%s12413_s3 + $0x20] sm:$0xff] }
 0xb58   :  { %v8547_v41 = vpop.f32.mrb[46].mxu0 }
 0xb59   :  { %v9530_v26 = vadd.f32 %v8547_v41, %v11925_v42  ;;  %8574 = vmatprep.mubr.msk.f32.mxu1 %vm131_vm0, %v5130_v48  ;;  %v5077_v63 = vpop.f32.mrb[47].mxu0  ;;  %v12000_v42 = vld [vmem:[%s12413_s3] sm:$0xff]  ;;  %v9300_v48 = vpack.c.bf16 %v5520_v2, %v5519_v1  ;;  %v5522_v41 = vld [vmem:[%s12415_s19 + $0x38] sm:$0xff] }
 0xb5a   :  { %v9531_v21 = vadd.f32 %v5077_v63, %v11927_v15  ;;  %8575 = vmatmul.mubr.msk.f32.gmra.mrb[100].mxu1 %vm131_vm0, %v5131_v35  ;;  %v5521_v35 = vld [vmem:[%s12415_s19 + $0x30] sm:$0xff] }
 0xb5b   :  { %v5133_v22 = vadd.f32 %v9530_v26, %v5117_v40  ;;  %v12057_v26 = vld [vmem:[%s12413_s3 + $0x28] sm:$0xff]  ;;  %v12062_v63 = vld [vmem:[%s12413_s3 + $0x30] sm:$0xff]  ;;  %v5523_v40 = vld [vmem:[%s12415_s19 + $0x40] sm:$0xff] }
 0xb5c   :  { %v5132_v53 = vadd.f32 %v9531_v21, %v5116_v43  ;;  %v9304_v43 = vpack.c.bf16 %v5522_v41, %v5521_v35  ;;  %v5524_v21 = vld [vmem:[%s12415_s19 + $0x48] sm:$0xff] }
 0xb5e   :  { %8577 = vmatprep.mubr.msk.f32.mxu1 %vm131_vm0, %v5132_v53  ;;  %v12075_v53 = vld [vmem:[%s12413_s3 + $0x38] sm:$0xff] }
 0xb5f   :  { %8578 = vmatmul.mubr.msk.f32.gmra.mrb[102].mxu1 %vm131_vm0, %v5133_v22  ;;  %v12080_v22 = vld [vmem:[%s12413_s3 + $0x40] sm:$0xff] }
 0xb60   :  { %8612 = vmatprep.mubr.f32.mxu1 %v12000_v42 }
 0xc15   :  { %v8558_v15 = vpop.f32.mrb[88].mxu1 }
 0xc16   :  { %v5281_v4 = vadd.f32 %v8558_v15, %v6967_v47  ;;  %v5275_v8 = vpop.f32.mrb[89].mxu1  ;;  %v5525_v15 = vld [vmem:[%s12415_s19 + $0x50] sm:$0xff] }
 0xc17   :  { %v5276_v49 = vadd.f32 %v6967_v47, %v5275_v8  ;;  %v12093_v8 = vld [vmem:[%s12413_s3 + $0x48] sm:$0xff] }
 0xc19   :  { %v9260_v58 = vpack.c.bf16 %v5281_v4, %v5276_v49  ;;  %v8561_v29 = vpop.f32.mrb[90].mxu1  ;;  %v5526_v4 = vld [vmem:[%s12415_s19 + $0x58] sm:$0xff]  ;;  %v12098_v49 = vld [vmem:[%s12413_s3 + $0x50] sm:$0xff] }
 0xc1a   :  { %v5291_v55 = vadd.f32 %v8561_v29, %v6967_v47  ;;  %v5285_v3 = vpop.f32.mrb[91].mxu1  ;;  %v5527_v29 = vld [vmem:[%s12415_s19 + $0x60] sm:$0xff] }
 0xc1b   :  { %v5286_v39 = vadd.f32 %v6967_v47, %v5285_v3  ;;  %9261 = vmatprep.subr.bf16.mxu1 %v9260_v58  ;;  %v12111_v3 = vld [vmem:[%s12413_s3 + $0x58] sm:$0xff] }
 0xc1c   :  { %9263 = vmatpush3.bf16.msra.mxu1 %v9260_v58  ;;  %v9312_v58 = vpack.c.bf16 %v5526_v4, %v5525_v15 }
 0xc1d   :  { %v9264_v11 = vpack.c.bf16 %v5291_v55, %v5286_v39  ;;  %v8564_v33 = vpop.f32.mrb[92].mxu1  ;;  %v5528_v55 = vld [vmem:[%s12415_s19 + $0x68] sm:$0xff]  ;;  %v12116_v39 = vld [vmem:[%s12413_s3 + $0x60] sm:$0xff] }
 0xc1e   :  { %v5301_v60 = vadd.f32 %v8564_v33, %v6967_v47  ;;  %v5295_v57 = vpop.f32.mrb[93].mxu1  ;;  %v12123_v33 = vld [vmem:[%s12413_s3 + $0x68] sm:$0xff] }
 0xc1f   :  { %v5296_v56 = vadd.f32 %v6967_v47, %v5295_v57  ;;  %9265 = vmatprep.subr.bf16.mxu1 %v9264_v11  ;;  %v12135_v57 = vld [vmem:[%s12413_s3 + $0x78] sm:$0xff] }
 0xc20   :  { %9267 = vmatpush3.bf16.msra.mxu1 %v9264_v11  ;;  %v9316_v11 = vpack.c.bf16 %v5528_v55, %v5527_v29 }
 0xc21   :  { %v9268_v46 = vpack.c.bf16 %v5301_v60, %v5296_v56  ;;  %v8567_v9 = vpop.f32.mrb[94].mxu1  ;;  %v12128_v60 = vld [vmem:[%s12413_s3 + $0x70] sm:$0xff] }
 0xc22   :  { %v5311_v36 = vadd.f32 %v8567_v9, %v6967_v47  ;;  %v5305_v13 = vpop.f32.mrb[95].mxu1  ;;  %v5529_v56 = vld [vmem:[%s12415_s19 + $0x70] sm:$0xff] }
 0xc23   :  { %v5306_v7 = vadd.f32 %v6967_v47, %v5305_v13  ;;  %9269 = vmatprep.subr.bf16.mxu1 %v9268_v46 }
 0xc24   :  { %9271 = vmatpush3.bf16.msra.mxu1 %v9268_v46  ;;  %v5530_v46 = vld [vmem:[%s12415_s19 + $0x78] sm:$0xff] }
 0xc25   :  { %v9272_v0 = vpack.c.bf16 %v5311_v36, %v5306_v7  ;;  %v8570_v5 = vpop.f32.mrb[96].mxu1  ;;  %v9320_v9 = vpack.c.bf16 %v5530_v46, %v5529_v56 }
 0xc26   :  { %v5321_v27 = vadd.f32 %v8570_v5, %v6967_v47  ;;  %v5315_v17 = vpop.f32.mrb[97].mxu1 }
 0xc27   :  { %v5316_v23 = vadd.f32 %v6967_v47, %v5315_v17  ;;  %9273 = vmatprep.subr.bf16.mxu1 %v9272_v0 }
 0xc28   :  { %9275 = vmatpush3.bf16.msra.mxu1 %v9272_v0 }
 0xc29   :  { %v9276_v25 = vpack.c.bf16 %v5321_v27, %v5316_v23  ;;  %v8573_v14 = vpop.f32.mrb[98].mxu1 }
 0xc2a   :  { %v5331_v44 = vadd.f32 %v8573_v14, %v6967_v47  ;;  %v5325_v19 = vpop.f32.mrb[99].mxu1 }
 0xc2b   :  { %v5326_v50 = vadd.f32 %v6967_v47, %v5325_v19  ;;  %9277 = vmatprep.subr.bf16.mxu1 %v9276_v25 }
 0xc2c   :  { %9279 = vmatpush3.bf16.msra.mxu1 %v9276_v25 }
 0xc2d   :  { %v9280_v24 = vpack.c.bf16 %v5331_v44, %v5326_v50  ;;  %v8576_v54 = vpop.f32.mrb[100].mxu1 }
 0xc2e   :  { %v5341_v16 = vadd.f32 %v8576_v54, %v6967_v47  ;;  %v5335_v52 = vpop.f32.mrb[101].mxu1 }
 0xc2f   :  { %v5336_v34 = vadd.f32 %v6967_v47, %v5335_v52  ;;  %9281 = vmatprep.subr.bf16.mxu1 %v9280_v24 }
 0xc30   :  { %9283 = vmatpush3.bf16.msra.mxu1 %v9280_v24 }
 0xc31   :  { %v9284_v32 = vpack.c.bf16 %v5341_v16, %v5336_v34 }
 0xc32   :  { %v8579_v31 = vpop.f32.mrb[102].mxu1 }
 0xc33   :  { %v5351_v61 = vadd.f32 %v8579_v31, %v6967_v47  ;;  %9285 = vmatprep.subr.bf16.mxu1 %v9284_v32  ;;  %v5345_v62 = vpop.f32.mrb[103].mxu1 }
 0xc34   :  { %v5346_v12 = vadd.f32 %v6967_v47, %v5345_v62  ;;  %9287 = vmatpush3.bf16.msra.mxu1 %v9284_v32  ;;  %v9308_v47 = vpack.c.bf16 %v5524_v21, %v5523_v40 }
 0xc36   :  { %v9288_v20 = vpack.c.bf16 %v5351_v61, %v5346_v12 }
 0xc38   :  { %9289 = vmatprep.subr.bf16.mxu1 %v9288_v20 }
 0xc39   :  { %9291 = vmatpush3.bf16.msra.mxu1 %v9288_v20 }
 0xc3a   :  { %9293 = vmatprep.subr.bf16.mxu1 %v9292_v38 }
 0xc3c   :  { %8613 = vmatmul.mubr.f32.vlgmr.msra.gmra.mrb[104].mxu1 %v12021_v30 }
 0xc3d   :  { %8615 = vmatprep.mubr.f32.mxu1 %v12026_v10  ;;  %9295 = vmatpush3.bf16.msra.mxu1 %v9292_v38 }
 0xc3e   :  { %9297 = vmatprep.subr.bf16.mxu1 %v9296_v37 }
 0xc40   :  { %8616 = vmatmul.mubr.f32.gmra.mrb[106].mxu1 %v12039_v45 }
 0xc41   :  { %8618 = vmatprep.mubr.f32.mxu1 %v12044_v59  ;;  %9299 = vmatpush3.bf16.msra.mxu1 %v9296_v37 }
 0xc42   :  { %9301 = vmatprep.subr.bf16.mxu1 %v9300_v48 }
 0xc44   :  { %8619 = vmatmul.mubr.f32.gmra.mrb[108].mxu1 %v12057_v26 }
 0xc45   :  { %8621 = vmatprep.mubr.f32.mxu1 %v12062_v63  ;;  %9303 = vmatpush3.bf16.msra.mxu1 %v9300_v48  ;;  %v6984_v48 = vld [vmem:[%s12416_s20] ss:$0 sm:$0xff] }
 0xc46   :  { %9305 = vmatprep.subr.bf16.mxu1 %v9304_v43 }
 0xc48   :  { %8622 = vmatmul.mubr.f32.gmra.mrb[110].mxu1 %v12075_v53 }
 0xc49   :  { %8624 = vmatprep.mubr.f32.mxu1 %v12080_v22  ;;  %9307 = vmatpush3.bf16.msra.mxu1 %v9304_v43 }
 0xc4a   :  { %9309 = vmatprep.subr.bf16.mxu1 %v9308_v47 }
 0xc4c   :  { %8625 = vmatmul.mubr.f32.gmra.mrb[112].mxu1 %v12093_v8 }
 0xc4d   :  { %8627 = vmatprep.mubr.f32.mxu1 %v12098_v49  ;;  %9311 = vmatpush3.bf16.msra.mxu1 %v9308_v47 }
 0xc4e   :  { %9313 = vmatprep.subr.bf16.mxu1 %v9312_v58 }
 0xc50   :  { %8628 = vmatmul.mubr.f32.gmra.mrb[114].mxu1 %v12111_v3 }
 0xc51   :  { %8630 = vmatprep.mubr.f32.mxu1 %v12116_v39  ;;  %9315 = vmatpush3.bf16.msra.mxu1 %v9312_v58 }
 0xc52   :  { %9317 = vmatprep.subr.bf16.mxu1 %v9316_v11 }
 0xc54   :  { %8631 = vmatmul.mubr.f32.gmra.mrb[116].mxu1 %v12123_v33 }
 0xc55   :  { %8633 = vmatprep.mubr.f32.mxu1 %v12128_v60  ;;  %9319 = vmatpush3.bf16.msra.mxu1 %v9316_v11 }
 0xc56   :  { %9321 = vmatprep.subr.bf16.mxu1 %v9320_v9 }
 0xc58   :  { %8634 = vmatmul.mubr.f32.gmra.mrb[118].mxu1 %v12135_v57 }
 0xc59   :  { %9323 = vmatpush3.bf16.msra.mxu1 %v9320_v9 }
 0xd0f   :  { %v8614_v36 = vpop.f32.mrb[104].mxu1 }
 0xd10   :  { %v5420_v13 = vpop.f32.mrb[105].mxu1  ;;  %v5500_v0 = vmax.f32 %v8614_v36, 0.0 }
 0xd11   :  { %v5499_v7 = vmax.f32 %v5420_v13, 0.0 }
 0xd13   :  { %v8617_v5 = vpop.f32.mrb[106].mxu1  ;;  %8668 = vmatprep.mubr.f32.mxu1 %v5499_v7 }
 0xd14   :  { %v5430_v27 = vpop.f32.mrb[107].mxu1  ;;  %8669 = vmatmul.mubr.f32.vlgmr.msra.gmra.mrb[120].mxu1 %v5500_v0  ;;  %v5502_v23 = vmax.f32 %v8617_v5, 0.0 }
 0xd15   :  { %v5501_v17 = vmax.f32 %v5430_v27, 0.0 }
 0xd17   :  { %v8620_v25 = vpop.f32.mrb[108].mxu1  ;;  %8671 = vmatprep.mubr.f32.mxu1 %v5501_v17 }
 0xd18   :  { %v5440_v14 = vpop.f32.mrb[109].mxu1  ;;  %8672 = vmatmul.mubr.f32.gmra.mrb[122].mxu1 %v5502_v23  ;;  %v5504_v19 = vmax.f32 %v8620_v25, 0.0 }
 0xd19   :  { %v5503_v44 = vmax.f32 %v5440_v14, 0.0 }
 0xd1b   :  { %v8623_v50 = vpop.f32.mrb[110].mxu1  ;;  %8674 = vmatprep.mubr.f32.mxu1 %v5503_v44 }
 0xd1c   :  { %v5450_v24 = vpop.f32.mrb[111].mxu1  ;;  %8675 = vmatmul.mubr.f32.gmra.mrb[124].mxu1 %v5504_v19  ;;  %v5506_v16 = vmax.f32 %v8623_v50, 0.0 }
 0xd1d   :  { %v5505_v54 = vmax.f32 %v5450_v24, 0.0 }
 0xd1f   :  { %v8626_v52 = vpop.f32.mrb[112].mxu1  ;;  %8677 = vmatprep.mubr.f32.mxu1 %v5505_v54 }
 0xd20   :  { %v5460_v34 = vpop.f32.mrb[113].mxu1  ;;  %8678 = vmatmul.mubr.f32.gmra.mrb[126].mxu1 %v5506_v16  ;;  %v5508_v31 = vmax.f32 %v8626_v52, 0.0 }
 0xd21   :  { %v5507_v32 = vmax.f32 %v5460_v34, 0.0 }
 0xd23   :  { %v8629_v61 = vpop.f32.mrb[114].mxu1  ;;  %8680 = vmatprep.mubr.f32.mxu1 %v5507_v32 }
 0xd24   :  { %v5470_v62 = vpop.f32.mrb[115].mxu1  ;;  %8681 = vmatmul.mubr.f32.gmra.mrb[128].mxu1 %v5508_v31  ;;  %v5510_v51 = vmax.f32 %v8629_v61, 0.0 }
 0xd25   :  { %v5509_v18 = vmax.f32 %v5470_v62, 0.0 }
 0xd27   :  { %v8632_v12 = vpop.f32.mrb[116].mxu1  ;;  %8683 = vmatprep.mubr.f32.mxu1 %v5509_v18 }
 0xd28   :  { %v5480_v20 = vpop.f32.mrb[117].mxu1  ;;  %8684 = vmatmul.mubr.f32.gmra.mrb[130].mxu1 %v5510_v51  ;;  %v5512_v28 = vmax.f32 %v8632_v12, 0.0  ;;  %v5844_v51 = vld [vmem:[%s12417_s21] sm:$0xff]  ;;  %v5845_v12 = vld [vmem:[%s12417_s21 + $0x8] sm:$0xff] }
 0xd29   :  { %v5511_v38 = vmax.f32 %v5480_v20, 0.0 }
 0xd2b   :  { %v8635_v6 = vpop.f32.mrb[118].mxu1  ;;  %8686 = vmatprep.mubr.f32.mxu1 %v5511_v38 }
 0xd2c   :  { %v5490_v37 = vpop.f32.mrb[119].mxu1  ;;  %8687 = vmatmul.mubr.f32.gmra.mrb[132].mxu1 %v5512_v28  ;;  %v5514_v2 = vmax.f32 %v8635_v6, 0.0  ;;  %v9356_v28 = vpack.c.bf16 %v5845_v12, %v5844_v51  ;;  %v5846_v6 = vld [vmem:[%s12417_s21 + $0x10] sm:$0xff] }
 0xd2d   :  { %v5513_v1 = vmax.f32 %v5490_v37, 0.0  ;;  %v5847_v37 = vld [vmem:[%s12417_s21 + $0x18] sm:$0xff] }
 0xd2f   :  { %8689 = vmatprep.mubr.f32.mxu1 %v5513_v1  ;;  %v9360_v1 = vpack.c.bf16 %v5847_v37, %v5846_v6 }
 0xd30   :  { %8690 = vmatmul.mubr.f32.gmra.mrb[134].mxu1 %v5514_v2  ;;  %v5848_v2 = vld [vmem:[%s12417_s21 + $0x20] sm:$0xff] }
 0xd31   :  { %8724 = vmatprep.mubr.f32.mxu1 %v12000_v42 }
 0xde7   :  { %v8670_v35 = vpop.f32.mrb[120].mxu1 }
 0xde8   :  { %v5610_v41 = vadd.f32 %v8670_v35, %v6984_v48  ;;  %v5604_v43 = vpop.f32.mrb[121].mxu1 }
 0xde9   :  { %v5605_v40 = vadd.f32 %v6984_v48, %v5604_v43  ;;  %v5851_v43 = vld [vmem:[%s12417_s21 + $0x38] sm:$0xff] }
 0xdeb   :  { %v9324_v21 = vpack.c.bf16 %v5610_v41, %v5605_v40  ;;  %v8673_v47 = vpop.f32.mrb[122].mxu1  ;;  %v5850_v41 = vld [vmem:[%s12417_s21 + $0x30] sm:$0xff] }
 0xdec   :  { %v5620_v15 = vadd.f32 %v8673_v47, %v6984_v48  ;;  %v5614_v4 = vpop.f32.mrb[123].mxu1  ;;  %v9368_v40 = vpack.c.bf16 %v5851_v43, %v5850_v41  ;;  %v5853_v47 = vld [vmem:[%s12417_s21 + $0x48] sm:$0xff] }
 0xded   :  { %v5615_v58 = vadd.f32 %v6984_v48, %v5614_v4  ;;  %9325 = vmatprep.subr.bf16.mxu1 %v9324_v21  ;;  %v5854_v4 = vld [vmem:[%s12417_s21 + $0x50] sm:$0xff] }
 0xdee   :  { %9327 = vmatpush3.bf16.msra.mxu1 %v9324_v21  ;;  %v5852_v21 = vld [vmem:[%s12417_s21 + $0x40] sm:$0xff] }
 0xdef   :  { %v9328_v29 = vpack.c.bf16 %v5620_v15, %v5615_v58  ;;  %v8676_v55 = vpop.f32.mrb[124].mxu1  ;;  %v9372_v15 = vpack.c.bf16 %v5853_v47, %v5852_v21  ;;  %v5855_v58 = vld [vmem:[%s12417_s21 + $0x58] sm:$0xff] }
 0xdf0   :  { %v5630_v11 = vadd.f32 %v8676_v55, %v6984_v48  ;;  %v5624_v56 = vpop.f32.mrb[125].mxu1  ;;  %v5856_v55 = vld [vmem:[%s12417_s21 + $0x60] sm:$0xff] }
 0xdf1   :  { %v5625_v46 = vadd.f32 %v6984_v48, %v5624_v56  ;;  %9329 = vmatprep.subr.bf16.mxu1 %v9328_v29 }
 0xdf2   :  { %9331 = vmatpush3.bf16.msra.mxu1 %v9328_v29  ;;  %v9376_v29 = vpack.c.bf16 %v5855_v58, %v5854_v4 }
 0xdf3   :  { %v9332_v9 = vpack.c.bf16 %v5630_v11, %v5625_v46  ;;  %v8679_v36 = vpop.f32.mrb[126].mxu1  ;;  %v5857_v11 = vld [vmem:[%s12417_s21 + $0x68] sm:$0xff]  ;;  %v5858_v46 = vld [vmem:[%s12417_s21 + $0x70] sm:$0xff] }
 0xdf4   :  { %v5640_v13 = vadd.f32 %v8679_v36, %v6984_v48  ;;  %v5634_v7 = vpop.f32.mrb[127].mxu1  ;;  %v9380_v56 = vpack.c.bf16 %v5857_v11, %v5856_v55 }
 0xdf5   :  { %v5635_v0 = vadd.f32 %v6984_v48, %v5634_v7  ;;  %9333 = vmatprep.subr.bf16.mxu1 %v9332_v9 }
 0xdf6   :  { %9335 = vmatpush3.bf16.msra.mxu1 %v9332_v9  ;;  %v5859_v9 = vld [vmem:[%s12417_s21 + $0x78] sm:$0xff] }
 0xdf7   :  { %v9336_v5 = vpack.c.bf16 %v5640_v13, %v5635_v0  ;;  %v8682_v27 = vpop.f32.mrb[128].mxu1  ;;  %v9384_v36 = vpack.c.bf16 %v5859_v9, %v5858_v46 }
 0xdf8   :  { %v5650_v17 = vadd.f32 %v8682_v27, %v6984_v48  ;;  %v5644_v23 = vpop.f32.mrb[129].mxu1 }
 0xdf9   :  { %v5645_v25 = vadd.f32 %v6984_v48, %v5644_v23  ;;  %9337 = vmatprep.subr.bf16.mxu1 %v9336_v5 }
 0xdfa   :  { %9339 = vmatpush3.bf16.msra.mxu1 %v9336_v5 }
 0xdfb   :  { %v9340_v14 = vpack.c.bf16 %v5650_v17, %v5645_v25  ;;  %v8685_v44 = vpop.f32.mrb[130].mxu1 }
 0xdfc   :  { %v5660_v19 = vadd.f32 %v8685_v44, %v6984_v48  ;;  %v5654_v50 = vpop.f32.mrb[131].mxu1 }
 0xdfd   :  { %v5655_v24 = vadd.f32 %v6984_v48, %v5654_v50  ;;  %9341 = vmatprep.subr.bf16.mxu1 %v9340_v14 }
 0xdfe   :  { %9343 = vmatpush3.bf16.msra.mxu1 %v9340_v14 }
 0xdff   :  { %v9344_v54 = vpack.c.bf16 %v5660_v19, %v5655_v24  ;;  %v8688_v16 = vpop.f32.mrb[132].mxu1 }
 0xe00   :  { %v5670_v52 = vadd.f32 %v8688_v16, %v6984_v48  ;;  %v5664_v34 = vpop.f32.mrb[133].mxu1 }
 0xe01   :  { %v5665_v32 = vadd.f32 %v6984_v48, %v5664_v34  ;;  %9345 = vmatprep.subr.bf16.mxu1 %v9344_v54 }
 0xe02   :  { %9347 = vmatpush3.bf16.msra.mxu1 %v9344_v54 }
 0xe03   :  { %v9348_v31 = vpack.c.bf16 %v5670_v52, %v5665_v32  ;;  %v8691_v61 = vpop.f32.mrb[134].mxu1 }
 0xe04   :  { %v5680_v62 = vadd.f32 %v8691_v61, %v6984_v48  ;;  %v5674_v18 = vpop.f32.mrb[135].mxu1 }
 0xe05   :  { %v5675_v20 = vadd.f32 %v6984_v48, %v5674_v18  ;;  %9349 = vmatprep.subr.bf16.mxu1 %v9348_v31  ;;  %v5849_v48 = vld [vmem:[%s12417_s21 + $0x28] sm:$0xff] }
 0xe06   :  { %9351 = vmatpush3.bf16.msra.mxu1 %v9348_v31  ;;  %v9364_v35 = vpack.c.bf16 %v5849_v48, %v5848_v2 }
 0xe07   :  { %v9352_v38 = vpack.c.bf16 %v5680_v62, %v5675_v20 }
 0xe09   :  { %9353 = vmatprep.subr.bf16.mxu1 %v9352_v38 }
 0xe0a   :  { %9355 = vmatpush3.bf16.msra.mxu1 %v9352_v38 }
 0xe0b   :  { %9357 = vmatprep.subr.bf16.mxu1 %v9356_v28 }
 0xe0d   :  { %8725 = vmatmul.mubr.f32.vlgmr.msra.gmra.mrb[136].mxu1 %v12021_v30 }
 0xe0e   :  { %8727 = vmatprep.mubr.f32.mxu1 %v12026_v10  ;;  %9359 = vmatpush3.bf16.msra.mxu1 %v9356_v28 }
 0xe0f   :  { %9361 = vmatprep.subr.bf16.mxu1 %v9360_v1 }
 0xe11   :  { %8728 = vmatmul.mubr.f32.gmra.mrb[138].mxu1 %v12039_v45 }
 0xe12   :  { %8730 = vmatprep.mubr.f32.mxu1 %v12044_v59  ;;  %9363 = vmatpush3.bf16.msra.mxu1 %v9360_v1 }
 0xe13   :  { %9365 = vmatprep.subr.bf16.mxu1 %v9364_v35 }
 0xe15   :  { %8731 = vmatmul.mubr.f32.gmra.mrb[140].mxu1 %v12057_v26 }
 0xe16   :  { %8733 = vmatprep.mubr.f32.mxu1 %v12062_v63  ;;  %9367 = vmatpush3.bf16.msra.mxu1 %v9364_v35  ;;  %v6985_v35 = vld [vmem:[%s12418_s22] ss:$0 sm:$0xff] }
 0xe17   :  { %9369 = vmatprep.subr.bf16.mxu1 %v9368_v40 }
 0xe19   :  { %8734 = vmatmul.mubr.f32.gmra.mrb[142].mxu1 %v12075_v53 }
 0xe1a   :  { %8736 = vmatprep.mubr.f32.mxu1 %v12080_v22  ;;  %9371 = vmatpush3.bf16.msra.mxu1 %v9368_v40 }
 0xe1b   :  { %9373 = vmatprep.subr.bf16.mxu1 %v9372_v15 }
 0xe1d   :  { %8737 = vmatmul.mubr.f32.gmra.mrb[144].mxu1 %v12093_v8 }
 0xe1e   :  { %8739 = vmatprep.mubr.f32.mxu1 %v12098_v49  ;;  %9375 = vmatpush3.bf16.msra.mxu1 %v9372_v15 }
 0xe1f   :  { %9377 = vmatprep.subr.bf16.mxu1 %v9376_v29 }
 0xe21   :  { %8740 = vmatmul.mubr.f32.gmra.mrb[146].mxu1 %v12111_v3 }
 0xe22   :  { %8742 = vmatprep.mubr.f32.mxu1 %v12116_v39  ;;  %9379 = vmatpush3.bf16.msra.mxu1 %v9376_v29 }
 0xe23   :  { %9381 = vmatprep.subr.bf16.mxu1 %v9380_v56 }
 0xe25   :  { %8743 = vmatmul.mubr.f32.gmra.mrb[148].mxu1 %v12123_v33 }
 0xe26   :  { %8745 = vmatprep.mubr.f32.mxu1 %v12128_v60  ;;  %9383 = vmatpush3.bf16.msra.mxu1 %v9380_v56 }
 0xe27   :  { %9385 = vmatprep.subr.bf16.mxu1 %v9384_v36 }
 0xe29   :  { %8746 = vmatmul.mubr.f32.gmra.mrb[150].mxu1 %v12135_v57 }
 0xe2a   :  { %9387 = vmatpush3.bf16.msra.mxu1 %v9384_v36 }
 0xee0   :  { %v8726_v13 = vpop.f32.mrb[136].mxu1 }
 0xee1   :  { %v5749_v7 = vpop.f32.mrb[137].mxu1  ;;  %v5829_v5 = vmax.f32 %v8726_v13, 0.0 }
 0xee2   :  { %v5828_v0 = vmax.f32 %v5749_v7, 0.0 }
 0xee4   :  { %v8729_v27 = vpop.f32.mrb[138].mxu1  ;;  %8780 = vmatprep.mubr.f32.mxu1 %v5828_v0 }
 0xee5   :  { %v5759_v17 = vpop.f32.mrb[139].mxu1  ;;  %8781 = vmatmul.mubr.f32.vlgmr.msra.gmra.mrb[152].mxu1 %v5829_v5  ;;  %v5831_v25 = vmax.f32 %v8729_v27, 0.0 }
 0xee6   :  { %v5830_v23 = vmax.f32 %v5759_v17, 0.0 }
 0xee8   :  { %v8732_v14 = vpop.f32.mrb[140].mxu1  ;;  %8783 = vmatprep.mubr.f32.mxu1 %v5830_v23 }
 0xee9   :  { %v5769_v44 = vpop.f32.mrb[141].mxu1  ;;  %8784 = vmatmul.mubr.f32.gmra.mrb[154].mxu1 %v5831_v25  ;;  %v5833_v50 = vmax.f32 %v8732_v14, 0.0 }
 0xeea   :  { %v5832_v19 = vmax.f32 %v5769_v44, 0.0 }
 0xeec   :  { %v8735_v24 = vpop.f32.mrb[142].mxu1  ;;  %8786 = vmatprep.mubr.f32.mxu1 %v5832_v19 }
 0xeed   :  { %v5779_v54 = vpop.f32.mrb[143].mxu1  ;;  %8787 = vmatmul.mubr.f32.gmra.mrb[156].mxu1 %v5833_v50  ;;  %v5835_v52 = vmax.f32 %v8735_v24, 0.0 }
 0xeee   :  { %v5834_v16 = vmax.f32 %v5779_v54, 0.0 }
 0xef0   :  { %v8738_v34 = vpop.f32.mrb[144].mxu1  ;;  %8789 = vmatprep.mubr.f32.mxu1 %v5834_v16 }
 0xef1   :  { %v5789_v32 = vpop.f32.mrb[145].mxu1  ;;  %8790 = vmatmul.mubr.f32.gmra.mrb[158].mxu1 %v5835_v52  ;;  %v5837_v61 = vmax.f32 %v8738_v34, 0.0 }
 0xef2   :  { %v5836_v31 = vmax.f32 %v5789_v32, 0.0 }
 0xef4   :  { %v8741_v62 = vpop.f32.mrb[146].mxu1  ;;  %8792 = vmatprep.mubr.f32.mxu1 %v5836_v31 }
 0xef5   :  { %v5799_v18 = vpop.f32.mrb[147].mxu1  ;;  %8793 = vmatmul.mubr.f32.gmra.mrb[160].mxu1 %v5837_v61  ;;  %v5839_v12 = vmax.f32 %v8741_v62, 0.0 }
 0xef6   :  { %v5838_v51 = vmax.f32 %v5799_v18, 0.0 }
 0xef8   :  { %v8744_v20 = vpop.f32.mrb[148].mxu1  ;;  %8795 = vmatprep.mubr.f32.mxu1 %v5838_v51 }
 0xef9   :  { %v5809_v38 = vpop.f32.mrb[149].mxu1  ;;  %8796 = vmatmul.mubr.f32.gmra.mrb[162].mxu1 %v5839_v12  ;;  %v5841_v6 = vmax.f32 %v8744_v20, 0.0  ;;  %v6173_v12 = vld [vmem:[%s12419_s23] sm:$0xff]  ;;  %v6174_v20 = vld [vmem:[%s12419_s23 + $0x8] sm:$0xff] }
 0xefa   :  { %v5840_v28 = vmax.f32 %v5809_v38, 0.0 }
 0xefc   :  { %v8747_v37 = vpop.f32.mrb[150].mxu1  ;;  %8798 = vmatprep.mubr.f32.mxu1 %v5840_v28 }
 0xefd   :  { %v5819_v1 = vpop.f32.mrb[151].mxu1  ;;  %8799 = vmatmul.mubr.f32.gmra.mrb[164].mxu1 %v5841_v6  ;;  %v5843_v48 = vmax.f32 %v8747_v37, 0.0  ;;  %v9420_v6 = vpack.c.bf16 %v6174_v20, %v6173_v12  ;;  %v6175_v37 = vld [vmem:[%s12419_s23 + $0x10] sm:$0xff] }
 0xefe   :  { %v5842_v2 = vmax.f32 %v5819_v1, 0.0  ;;  %v6176_v1 = vld [vmem:[%s12419_s23 + $0x18] sm:$0xff] }
 0xf00   :  { %8801 = vmatprep.mubr.f32.mxu1 %v5842_v2  ;;  %v9424_v2 = vpack.c.bf16 %v6176_v1, %v6175_v37 }
 0xf01   :  { %8802 = vmatmul.mubr.f32.gmra.mrb[166].mxu1 %v5843_v48  ;;  %v6177_v48 = vld [vmem:[%s12419_s23 + $0x20] sm:$0xff] }
 0xf02   :  { %8836 = vmatprep.mubr.f32.mxu1 %v12000_v42 }
 0xfb8   :  { %v8782_v41 = vpop.f32.mrb[152].mxu1 }
 0xfb9   :  { %v5939_v43 = vadd.f32 %v8782_v41, %v6985_v35  ;;  %v5933_v40 = vpop.f32.mrb[153].mxu1 }
 0xfba   :  { %v5934_v21 = vadd.f32 %v6985_v35, %v5933_v40  ;;  %v6180_v40 = vld [vmem:[%s12419_s23 + $0x38] sm:$0xff] }
 0xfbc   :  { %v9388_v47 = vpack.c.bf16 %v5939_v43, %v5934_v21  ;;  %v8785_v15 = vpop.f32.mrb[154].mxu1  ;;  %v6179_v43 = vld [vmem:[%s12419_s23 + $0x30] sm:$0xff] }
 0xfbd   :  { %v5949_v4 = vadd.f32 %v8785_v15, %v6985_v35  ;;  %v5943_v58 = vpop.f32.mrb[155].mxu1  ;;  %v9432_v21 = vpack.c.bf16 %v6180_v40, %v6179_v43  ;;  %v6182_v15 = vld [vmem:[%s12419_s23 + $0x48] sm:$0xff] }
 0xfbe   :  { %v5944_v29 = vadd.f32 %v6985_v35, %v5943_v58  ;;  %9389 = vmatprep.subr.bf16.mxu1 %v9388_v47  ;;  %v6183_v58 = vld [vmem:[%s12419_s23 + $0x50] sm:$0xff] }
 0xfbf   :  { %9391 = vmatpush3.bf16.msra.mxu1 %v9388_v47  ;;  %v6181_v47 = vld [vmem:[%s12419_s23 + $0x40] sm:$0xff] }
 0xfc0   :  { %v9392_v55 = vpack.c.bf16 %v5949_v4, %v5944_v29  ;;  %v8788_v11 = vpop.f32.mrb[156].mxu1  ;;  %v9436_v4 = vpack.c.bf16 %v6182_v15, %v6181_v47  ;;  %v6184_v29 = vld [vmem:[%s12419_s23 + $0x58] sm:$0xff] }
 0xfc1   :  { %v5959_v56 = vadd.f32 %v8788_v11, %v6985_v35  ;;  %v5953_v46 = vpop.f32.mrb[157].mxu1  ;;  %v6185_v11 = vld [vmem:[%s12419_s23 + $0x60] sm:$0xff] }
 0xfc2   :  { %v5954_v9 = vadd.f32 %v6985_v35, %v5953_v46  ;;  %9393 = vmatprep.subr.bf16.mxu1 %v9392_v55 }
 0xfc3   :  { %9395 = vmatpush3.bf16.msra.mxu1 %v9392_v55  ;;  %v9440_v55 = vpack.c.bf16 %v6184_v29, %v6183_v58 }
 0xfc4   :  { %v9396_v36 = vpack.c.bf16 %v5959_v56, %v5954_v9  ;;  %v8791_v13 = vpop.f32.mrb[158].mxu1  ;;  %v6186_v56 = vld [vmem:[%s12419_s23 + $0x68] sm:$0xff]  ;;  %v6187_v9 = vld [vmem:[%s12419_s23 + $0x70] sm:$0xff] }
 0xfc5   :  { %v5969_v7 = vadd.f32 %v8791_v13, %v6985_v35  ;;  %v5963_v0 = vpop.f32.mrb[159].mxu1  ;;  %v9444_v46 = vpack.c.bf16 %v6186_v56, %v6185_v11 }
 0xfc6   :  { %v5964_v5 = vadd.f32 %v6985_v35, %v5963_v0  ;;  %9397 = vmatprep.subr.bf16.mxu1 %v9396_v36 }
 0xfc7   :  { %9399 = vmatpush3.bf16.msra.mxu1 %v9396_v36  ;;  %v6188_v36 = vld [vmem:[%s12419_s23 + $0x78] sm:$0xff] }
 0xfc8   :  { %v9400_v27 = vpack.c.bf16 %v5969_v7, %v5964_v5  ;;  %v8794_v17 = vpop.f32.mrb[160].mxu1  ;;  %v9448_v13 = vpack.c.bf16 %v6188_v36, %v6187_v9 }
 0xfc9   :  { %v5979_v23 = vadd.f32 %v8794_v17, %v6985_v35  ;;  %v5973_v25 = vpop.f32.mrb[161].mxu1 }
 0xfca   :  { %v5974_v14 = vadd.f32 %v6985_v35, %v5973_v25  ;;  %9401 = vmatprep.subr.bf16.mxu1 %v9400_v27 }
 0xfcb   :  { %9403 = vmatpush3.bf16.msra.mxu1 %v9400_v27 }
 0xfcc   :  { %v9404_v44 = vpack.c.bf16 %v5979_v23, %v5974_v14  ;;  %v8797_v19 = vpop.f32.mrb[162].mxu1 }
 0xfcd   :  { %v5989_v50 = vadd.f32 %v8797_v19, %v6985_v35  ;;  %v5983_v24 = vpop.f32.mrb[163].mxu1 }
 0xfce   :  { %v5984_v54 = vadd.f32 %v6985_v35, %v5983_v24  ;;  %9405 = vmatprep.subr.bf16.mxu1 %v9404_v44 }
 0xfcf   :  { %9407 = vmatpush3.bf16.msra.mxu1 %v9404_v44 }
 0xfd0   :  { %v9408_v16 = vpack.c.bf16 %v5989_v50, %v5984_v54  ;;  %v8800_v52 = vpop.f32.mrb[164].mxu1 }
 0xfd1   :  { %v5999_v34 = vadd.f32 %v8800_v52, %v6985_v35  ;;  %v5993_v32 = vpop.f32.mrb[165].mxu1 }
 0xfd2   :  { %v5994_v31 = vadd.f32 %v6985_v35, %v5993_v32  ;;  %9409 = vmatprep.subr.bf16.mxu1 %v9408_v16 }
 0xfd3   :  { %9411 = vmatpush3.bf16.msra.mxu1 %v9408_v16 }
 0xfd4   :  { %v9412_v61 = vpack.c.bf16 %v5999_v34, %v5994_v31  ;;  %v8803_v62 = vpop.f32.mrb[166].mxu1 }
 0xfd5   :  { %v6009_v18 = vadd.f32 %v8803_v62, %v6985_v35  ;;  %v6003_v51 = vpop.f32.mrb[167].mxu1 }
 0xfd6   :  { %v6004_v38 = vadd.f32 %v6985_v35, %v6003_v51  ;;  %9413 = vmatprep.subr.bf16.mxu1 %v9412_v61  ;;  %v6178_v35 = vld [vmem:[%s12419_s23 + $0x28] sm:$0xff] }
 0xfd7   :  { %9415 = vmatpush3.bf16.msra.mxu1 %v9412_v61  ;;  %v9428_v41 = vpack.c.bf16 %v6178_v35, %v6177_v48 }
 0xfd8   :  { %v9416_v28 = vpack.c.bf16 %v6009_v18, %v6004_v38 }
 0xfda   :  { %9417 = vmatprep.subr.bf16.mxu1 %v9416_v28 }
 0xfdb   :  { %9419 = vmatpush3.bf16.msra.mxu1 %v9416_v28 }
 0xfdc   :  { %9421 = vmatprep.subr.bf16.mxu1 %v9420_v6 }
 0xfde   :  { %8837 = vmatmul.mubr.f32.vlgmr.msra.gmra.mrb[168].mxu1 %v12021_v30 }
 0xfdf   :  { %8839 = vmatprep.mubr.f32.mxu1 %v12026_v10  ;;  %9423 = vmatpush3.bf16.msra.mxu1 %v9420_v6 }
 0xfe0   :  { %9425 = vmatprep.subr.bf16.mxu1 %v9424_v2 }
 0xfe2   :  { %8840 = vmatmul.mubr.f32.gmra.mrb[170].mxu1 %v12039_v45 }
 0xfe3   :  { %8842 = vmatprep.mubr.f32.mxu1 %v12044_v59  ;;  %9427 = vmatpush3.bf16.msra.mxu1 %v9424_v2 }
 0xfe4   :  { %9429 = vmatprep.subr.bf16.mxu1 %v9428_v41 }
 0xfe6   :  { %8843 = vmatmul.mubr.f32.gmra.mrb[172].mxu1 %v12057_v26 }
 0xfe7   :  { %8845 = vmatprep.mubr.f32.mxu1 %v12062_v63  ;;  %9431 = vmatpush3.bf16.msra.mxu1 %v9428_v41  ;;  %v6986_v41 = vld [vmem:[%s12420_s24] ss:$0 sm:$0xff] }
 0xfe8   :  { %9433 = vmatprep.subr.bf16.mxu1 %v9432_v21 }
 0xfea   :  { %8846 = vmatmul.mubr.f32.gmra.mrb[174].mxu1 %v12075_v53 }
 0xfeb   :  { %8848 = vmatprep.mubr.f32.mxu1 %v12080_v22  ;;  %9435 = vmatpush3.bf16.msra.mxu1 %v9432_v21 }
 0xfec   :  { %9437 = vmatprep.subr.bf16.mxu1 %v9436_v4 }
 0xfee   :  { %8849 = vmatmul.mubr.f32.gmra.mrb[176].mxu1 %v12093_v8 }
 0xfef   :  { %8851 = vmatprep.mubr.f32.mxu1 %v12098_v49  ;;  %9439 = vmatpush3.bf16.msra.mxu1 %v9436_v4 }
 0xff0   :  { %9441 = vmatprep.subr.bf16.mxu1 %v9440_v55 }
 0xff2   :  { %8852 = vmatmul.mubr.f32.gmra.mrb[178].mxu1 %v12111_v3 }
 0xff3   :  { %8854 = vmatprep.mubr.f32.mxu1 %v12116_v39  ;;  %9443 = vmatpush3.bf16.msra.mxu1 %v9440_v55 }
 0xff4   :  { %9445 = vmatprep.subr.bf16.mxu1 %v9444_v46 }
 0xff6   :  { %8855 = vmatmul.mubr.f32.gmra.mrb[180].mxu1 %v12123_v33 }
 0xff7   :  { %8857 = vmatprep.mubr.f32.mxu1 %v12128_v60  ;;  %9447 = vmatpush3.bf16.msra.mxu1 %v9444_v46 }
 0xff8   :  { %9449 = vmatprep.subr.bf16.mxu1 %v9448_v13 }
 0xffa   :  { %8858 = vmatmul.mubr.f32.gmra.mrb[182].mxu1 %v12135_v57 }
 0xffb   :  { %9451 = vmatpush3.bf16.msra.mxu1 %v9448_v13 }
0x10b1   :  { %v8838_v7 = vpop.f32.mrb[168].mxu1 }
0x10b2   :  { %v6078_v0 = vpop.f32.mrb[169].mxu1  ;;  %v6158_v27 = vmax.f32 %v8838_v7, 0.0 }
0x10b3   :  { %v6157_v5 = vmax.f32 %v6078_v0, 0.0 }
0x10b5   :  { %v8841_v17 = vpop.f32.mrb[170].mxu1  ;;  %8892 = vmatprep.mubr.f32.mxu1 %v6157_v5 }
0x10b6   :  { %v6088_v23 = vpop.f32.mrb[171].mxu1  ;;  %8893 = vmatmul.mubr.f32.vlgmr.msra.gmra.mrb[184].mxu1 %v6158_v27  ;;  %v6160_v14 = vmax.f32 %v8841_v17, 0.0 }
0x10b7   :  { %v6159_v25 = vmax.f32 %v6088_v23, 0.0 }
0x10b9   :  { %v8844_v44 = vpop.f32.mrb[172].mxu1  ;;  %8895 = vmatprep.mubr.f32.mxu1 %v6159_v25 }
0x10ba   :  { %v6098_v19 = vpop.f32.mrb[173].mxu1  ;;  %8896 = vmatmul.mubr.f32.gmra.mrb[186].mxu1 %v6160_v14  ;;  %v6162_v24 = vmax.f32 %v8844_v44, 0.0 }
0x10bb   :  { %v6161_v50 = vmax.f32 %v6098_v19, 0.0 }
0x10bd   :  { %v8847_v54 = vpop.f32.mrb[174].mxu1  ;;  %8898 = vmatprep.mubr.f32.mxu1 %v6161_v50 }
0x10be   :  { %v6108_v16 = vpop.f32.mrb[175].mxu1  ;;  %8899 = vmatmul.mubr.f32.gmra.mrb[188].mxu1 %v6162_v24  ;;  %v6164_v34 = vmax.f32 %v8847_v54, 0.0 }
0x10bf   :  { %v6163_v52 = vmax.f32 %v6108_v16, 0.0 }
0x10c1   :  { %v8850_v32 = vpop.f32.mrb[176].mxu1  ;;  %8901 = vmatprep.mubr.f32.mxu1 %v6163_v52 }
0x10c2   :  { %v6118_v31 = vpop.f32.mrb[177].mxu1  ;;  %8902 = vmatmul.mubr.f32.gmra.mrb[190].mxu1 %v6164_v34  ;;  %v6166_v62 = vmax.f32 %v8850_v32, 0.0 }
0x10c3   :  { %v6165_v61 = vmax.f32 %v6118_v31, 0.0 }
0x10c5   :  { %v8853_v18 = vpop.f32.mrb[178].mxu1  ;;  %8904 = vmatprep.mubr.f32.mxu1 %v6165_v61 }
0x10c6   :  { %v6128_v51 = vpop.f32.mrb[179].mxu1  ;;  %8905 = vmatmul.mubr.f32.gmra.mrb[192].mxu1 %v6166_v62  ;;  %v6168_v20 = vmax.f32 %v8853_v18, 0.0 }
0x10c7   :  { %v6167_v12 = vmax.f32 %v6128_v51, 0.0 }
0x10c9   :  { %v8856_v38 = vpop.f32.mrb[180].mxu1  ;;  %8907 = vmatprep.mubr.f32.mxu1 %v6167_v12  ;;  %v6502_v12 = vld [vmem:[%s12421_s25] sm:$0xff] }
0x10ca   :  { %v6138_v28 = vpop.f32.mrb[181].mxu1  ;;  %8908 = vmatmul.mubr.f32.gmra.mrb[194].mxu1 %v6168_v20  ;;  %v6170_v37 = vmax.f32 %v8856_v38, 0.0  ;;  %v6503_v20 = vld [vmem:[%s12421_s25 + $0x8] sm:$0xff] }
0x10cb   :  { %v6169_v6 = vmax.f32 %v6138_v28, 0.0 }
0x10cd   :  { %v8859_v1 = vpop.f32.mrb[182].mxu1  ;;  %8910 = vmatprep.mubr.f32.mxu1 %v6169_v6  ;;  %v9484_v6 = vpack.c.bf16 %v6503_v20, %v6502_v12 }
0x10ce   :  { %v6148_v2 = vpop.f32.mrb[183].mxu1  ;;  %8911 = vmatmul.mubr.f32.gmra.mrb[196].mxu1 %v6170_v37  ;;  %v6172_v35 = vmax.f32 %v8859_v1, 0.0  ;;  %v6504_v37 = vld [vmem:[%s12421_s25 + $0x10] sm:$0xff]  ;;  %v6505_v1 = vld [vmem:[%s12421_s25 + $0x18] sm:$0xff] }
0x10cf   :  { %v6171_v48 = vmax.f32 %v6148_v2, 0.0  ;;  %v9488_v2 = vpack.c.bf16 %v6505_v1, %v6504_v37 }
0x10d1   :  { %8913 = vmatprep.mubr.f32.mxu1 %v6171_v48  ;;  %v6506_v48 = vld [vmem:[%s12421_s25 + $0x20] sm:$0xff] }
0x10d2   :  { %8914 = vmatmul.mubr.f32.gmra.mrb[198].mxu1 %v6172_v35  ;;  %v6507_v35 = vld [vmem:[%s12421_s25 + $0x28] sm:$0xff] }
0x10d3   :  { %8948 = vmatprep.mubr.f32.mxu1 %v12000_v42 }
0x1189   :  { %v8894_v43 = vpop.f32.mrb[184].mxu1 }
0x118a   :  { %v6268_v40 = vadd.f32 %v8894_v43, %v6986_v41  ;;  %v6262_v21 = vpop.f32.mrb[185].mxu1  ;;  %v6508_v43 = vld [vmem:[%s12421_s25 + $0x30] sm:$0xff] }
0x118b   :  { %v6263_v47 = vadd.f32 %v6986_v41, %v6262_v21  ;;  %v6511_v21 = vld [vmem:[%s12421_s25 + $0x48] sm:$0xff] }
0x118d   :  { %v9452_v15 = vpack.c.bf16 %v6268_v40, %v6263_v47  ;;  %v8897_v4 = vpop.f32.mrb[186].mxu1  ;;  %v6509_v40 = vld [vmem:[%s12421_s25 + $0x38] sm:$0xff] }
0x118e   :  { %v6278_v58 = vadd.f32 %v8897_v4, %v6986_v41  ;;  %v6272_v29 = vpop.f32.mrb[187].mxu1  ;;  %v6513_v47 = vld [vmem:[%s12421_s25 + $0x58] sm:$0xff] }
0x118f   :  { %v6273_v55 = vadd.f32 %v6986_v41, %v6272_v29  ;;  %9453 = vmatprep.subr.bf16.mxu1 %v9452_v15 }
0x1190   :  { %9455 = vmatpush3.bf16.msra.mxu1 %v9452_v15  ;;  %v6515_v15 = vld [vmem:[%s12421_s25 + $0x68] sm:$0xff] }
0x1191   :  { %v9456_v11 = vpack.c.bf16 %v6278_v58, %v6273_v55  ;;  %v8900_v56 = vpop.f32.mrb[188].mxu1 }
0x1192   :  { %v6288_v46 = vadd.f32 %v8900_v56, %v6986_v41  ;;  %v6282_v9 = vpop.f32.mrb[189].mxu1 }
0x1193   :  { %v6283_v42 = vadd.f32 %v6986_v41, %v6282_v9  ;;  %9457 = vmatprep.subr.bf16.mxu1 %v9456_v11 }
0x1194   :  { %9459 = vmatpush3.bf16.msra.mxu1 %v9456_v11 }
0x1195   :  { %v9460_v36 = vpack.c.bf16 %v6288_v46, %v6283_v42  ;;  %v8903_v13 = vpop.f32.mrb[190].mxu1 }
0x1196   :  { %v6298_v7 = vadd.f32 %v8903_v13, %v6986_v41  ;;  %v6292_v0 = vpop.f32.mrb[191].mxu1 }
0x1197   :  { %v6293_v5 = vadd.f32 %v6986_v41, %v6292_v0  ;;  %9461 = vmatprep.subr.bf16.mxu1 %v9460_v36 }
0x1198   :  { %9463 = vmatpush3.bf16.msra.mxu1 %v9460_v36 }
0x1199   :  { %v9464_v27 = vpack.c.bf16 %v6298_v7, %v6293_v5  ;;  %v8906_v17 = vpop.f32.mrb[192].mxu1 }
0x119a   :  { %v6308_v23 = vadd.f32 %v8906_v17, %v6986_v41  ;;  %v6302_v25 = vpop.f32.mrb[193].mxu1 }
0x119b   :  { %v6303_v14 = vadd.f32 %v6986_v41, %v6302_v25  ;;  %9465 = vmatprep.subr.bf16.mxu1 %v9464_v27 }
0x119c   :  { %9467 = vmatpush3.bf16.msra.mxu1 %v9464_v27 }
0x119d   :  { %v9468_v44 = vpack.c.bf16 %v6308_v23, %v6303_v14  ;;  %v8909_v19 = vpop.f32.mrb[194].mxu1 }
0x119e   :  { %v6318_v50 = vadd.f32 %v8909_v19, %v6986_v41  ;;  %v6312_v24 = vpop.f32.mrb[195].mxu1 }
0x119f   :  { %v6313_v54 = vadd.f32 %v6986_v41, %v6312_v24  ;;  %9469 = vmatprep.subr.bf16.mxu1 %v9468_v44 }
0x11a0   :  { %9471 = vmatpush3.bf16.msra.mxu1 %v9468_v44 }
0x11a1   :  { %v9472_v16 = vpack.c.bf16 %v6318_v50, %v6313_v54  ;;  %v8912_v52 = vpop.f32.mrb[196].mxu1 }
0x11a2   :  { %v6328_v34 = vadd.f32 %v8912_v52, %v6986_v41  ;;  %v6322_v32 = vpop.f32.mrb[197].mxu1 }
0x11a3   :  { %v6323_v31 = vadd.f32 %v6986_v41, %v6322_v32  ;;  %9473 = vmatprep.subr.bf16.mxu1 %v9472_v16  ;;  %v6987_v32 = vld [vmem:[%s12422_s26] ss:$0 sm:$0xff] }
0x11a4   :  { %9475 = vmatpush3.bf16.msra.mxu1 %v9472_v16 }
0x11a5   :  { %v9476_v61 = vpack.c.bf16 %v6328_v34, %v6323_v31  ;;  %v8915_v62 = vpop.f32.mrb[198].mxu1 }
0x11a6   :  { %v6338_v18 = vadd.f32 %v8915_v62, %v6986_v41  ;;  %v6332_v51 = vpop.f32.mrb[199].mxu1 }
0x11a7   :  { %v6333_v38 = vadd.f32 %v6986_v41, %v6332_v51  ;;  %9477 = vmatprep.subr.bf16.mxu1 %v9476_v61  ;;  %v9492_v41 = vpack.c.bf16 %v6507_v35, %v6506_v48 }
0x11a8   :  { %9479 = vmatpush3.bf16.msra.mxu1 %v9476_v61 }
0x11a9   :  { %v9480_v28 = vpack.c.bf16 %v6338_v18, %v6333_v38 }
0x11ab   :  { %9481 = vmatprep.subr.bf16.mxu1 %v9480_v28 }
0x11ac   :  { %9483 = vmatpush3.bf16.msra.mxu1 %v9480_v28 }
0x11ad   :  { %9485 = vmatprep.subr.bf16.mxu1 %v9484_v6 }
0x11af   :  { %8949 = vmatmul.mubr.f32.vlgmr.msra.gmra.mrb[200].mxu1 %v12021_v30  ;;  %v9496_v30 = vpack.c.bf16 %v6509_v40, %v6508_v43 }
0x11b0   :  { %8951 = vmatprep.mubr.f32.mxu1 %v12026_v10  ;;  %9487 = vmatpush3.bf16.msra.mxu1 %v9484_v6  ;;  %v6510_v10 = vld [vmem:[%s12421_s25 + $0x40] sm:$0xff] }
0x11b1   :  { %9489 = vmatprep.subr.bf16.mxu1 %v9488_v2 }
0x11b3   :  { %8952 = vmatmul.mubr.f32.gmra.mrb[202].mxu1 %v12039_v45  ;;  %v9500_v45 = vpack.c.bf16 %v6511_v21, %v6510_v10 }
0x11b4   :  { %8954 = vmatprep.mubr.f32.mxu1 %v12044_v59  ;;  %9491 = vmatpush3.bf16.msra.mxu1 %v9488_v2  ;;  %v6512_v59 = vld [vmem:[%s12421_s25 + $0x50] sm:$0xff] }
0x11b5   :  { %9493 = vmatprep.subr.bf16.mxu1 %v9492_v41 }
0x11b7   :  { %8955 = vmatmul.mubr.f32.gmra.mrb[204].mxu1 %v12057_v26  ;;  %v9504_v26 = vpack.c.bf16 %v6513_v47, %v6512_v59 }
0x11b8   :  { %8957 = vmatprep.mubr.f32.mxu1 %v12062_v63  ;;  %9495 = vmatpush3.bf16.msra.mxu1 %v9492_v41  ;;  %v6514_v63 = vld [vmem:[%s12421_s25 + $0x60] sm:$0xff] }
0x11b9   :  { %9497 = vmatprep.subr.bf16.mxu1 %v9496_v30 }
0x11bb   :  { %8958 = vmatmul.mubr.f32.gmra.mrb[206].mxu1 %v12075_v53  ;;  %v9508_v53 = vpack.c.bf16 %v6515_v15, %v6514_v63 }
0x11bc   :  { %8960 = vmatprep.mubr.f32.mxu1 %v12080_v22  ;;  %9499 = vmatpush3.bf16.msra.mxu1 %v9496_v30  ;;  %v6516_v22 = vld [vmem:[%s12421_s25 + $0x70] sm:$0xff] }
0x11bd   :  { %9501 = vmatprep.subr.bf16.mxu1 %v9500_v45 }
0x11bf   :  { %8961 = vmatmul.mubr.f32.gmra.mrb[208].mxu1 %v12093_v8  ;;  %v6517_v8 = vld [vmem:[%s12421_s25 + $0x78] sm:$0xff] }
0x11c0   :  { %8963 = vmatprep.mubr.f32.mxu1 %v12098_v49  ;;  %9503 = vmatpush3.bf16.msra.mxu1 %v9500_v45  ;;  %v9512_v49 = vpack.c.bf16 %v6517_v8, %v6516_v22 }
0x11c1   :  { %9505 = vmatprep.subr.bf16.mxu1 %v9504_v26 }
0x11c3   :  { %8964 = vmatmul.mubr.f32.gmra.mrb[210].mxu1 %v12111_v3 }
0x11c4   :  { %8966 = vmatprep.mubr.f32.mxu1 %v12116_v39  ;;  %9507 = vmatpush3.bf16.msra.mxu1 %v9504_v26 }
0x11c5   :  { %9509 = vmatprep.subr.bf16.mxu1 %v9508_v53 }
0x11c7   :  { %8967 = vmatmul.mubr.f32.gmra.mrb[212].mxu1 %v12123_v33 }
0x11c8   :  { %8969 = vmatprep.mubr.f32.mxu1 %v12128_v60  ;;  %9511 = vmatpush3.bf16.msra.mxu1 %v9508_v53 }
0x11c9   :  { %9513 = vmatprep.subr.bf16.mxu1 %v9512_v49 }
0x11cb   :  { %8970 = vmatmul.mubr.f32.gmra.mrb[214].mxu1 %v12135_v57 }
0x11cc   :  { %9515 = vmatpush3.bf16.msra.mxu1 %v9512_v49 }
0x1282   :  { %v8950_v3 = vpop.f32.mrb[200].mxu1 }
0x1283   :  { %v6407_v39 = vpop.f32.mrb[201].mxu1  ;;  %v6487_v33 = vmax.f32 %v8950_v3, 0.0 }
0x1284   :  { %v6486_v4 = vmax.f32 %v6407_v39, 0.0 }
0x1286   :  { %v8953_v58 = vpop.f32.mrb[202].mxu1  ;;  %9004 = vmatprep.mubr.f32.mxu1 %v6486_v4 }
0x1287   :  { %v6417_v60 = vpop.f32.mrb[203].mxu1  ;;  %9005 = vmatmul.mubr.f32.vlgmr.msra.gmra.mrb[216].mxu1 %v6487_v33  ;;  %v6489_v29 = vmax.f32 %v8953_v58, 0.0 }
0x1288   :  { %v6488_v57 = vmax.f32 %v6417_v60, 0.0 }
0x128a   :  { %v8956_v55 = vpop.f32.mrb[204].mxu1  ;;  %9007 = vmatprep.mubr.f32.mxu1 %v6488_v57 }
0x128b   :  { %v6427_v11 = vpop.f32.mrb[205].mxu1  ;;  %9008 = vmatmul.mubr.f32.gmra.mrb[218].mxu1 %v6489_v29  ;;  %v6491_v46 = vmax.f32 %v8956_v55, 0.0 }
0x128c   :  { %v6490_v56 = vmax.f32 %v6427_v11, 0.0 }
0x128e   :  { %v8959_v9 = vpop.f32.mrb[206].mxu1  ;;  %9010 = vmatprep.mubr.f32.mxu1 %v6490_v56 }
0x128f   :  { %v6437_v42 = vpop.f32.mrb[207].mxu1  ;;  %9011 = vmatmul.mubr.f32.gmra.mrb[220].mxu1 %v6491_v46  ;;  %v6493_v13 = vmax.f32 %v8959_v9, 0.0 }
0x1290   :  { %v6492_v36 = vmax.f32 %v6437_v42, 0.0 }
0x1292   :  { %v8962_v7 = vpop.f32.mrb[208].mxu1  ;;  %9013 = vmatprep.mubr.f32.mxu1 %v6492_v36 }
0x1293   :  { %v6447_v0 = vpop.f32.mrb[209].mxu1  ;;  %9014 = vmatmul.mubr.f32.gmra.mrb[222].mxu1 %v6493_v13  ;;  %v6495_v27 = vmax.f32 %v8962_v7, 0.0 }
0x1294   :  { %v6494_v5 = vmax.f32 %v6447_v0, 0.0 }
0x1296   :  { %v8965_v17 = vpop.f32.mrb[210].mxu1  ;;  %9016 = vmatprep.mubr.f32.mxu1 %v6494_v5 }
0x1297   :  { %v6457_v23 = vpop.f32.mrb[211].mxu1  ;;  %9017 = vmatmul.mubr.f32.gmra.mrb[224].mxu1 %v6495_v27  ;;  %v6497_v14 = vmax.f32 %v8965_v17, 0.0 }
0x1298   :  { %v6496_v25 = vmax.f32 %v6457_v23, 0.0 }
0x129a   :  { %v8968_v44 = vpop.f32.mrb[212].mxu1  ;;  %9019 = vmatprep.mubr.f32.mxu1 %v6496_v25 }
0x129b   :  { %v6467_v19 = vpop.f32.mrb[213].mxu1  ;;  %9020 = vmatmul.mubr.f32.gmra.mrb[226].mxu1 %v6497_v14  ;;  %v6499_v24 = vmax.f32 %v8968_v44, 0.0 }
0x129c   :  { %v6498_v50 = vmax.f32 %v6467_v19, 0.0 }
0x129e   :  { %v8971_v54 = vpop.f32.mrb[214].mxu1  ;;  %9022 = vmatprep.mubr.f32.mxu1 %v6498_v50 }
0x129f   :  { %v6477_v16 = vpop.f32.mrb[215].mxu1  ;;  %9023 = vmatmul.mubr.f32.gmra.mrb[228].mxu1 %v6499_v24  ;;  %v6501_v34 = vmax.f32 %v8971_v54, 0.0 }
0x12a0   :  { %v6500_v52 = vmax.f32 %v6477_v16, 0.0 }
0x12a2   :  { %9025 = vmatprep.mubr.f32.mxu1 %v6500_v52 }
0x12a3   :  { %9026 = vmatmul.mubr.f32.gmra.mrb[230].mxu1 %v6501_v34 }
0x135a   :  { %v9006_v31 = vpop.f32.mrb[216].mxu1 }
0x135b   :  { %v6597_v61 = vadd.f32 %v9006_v31, %v6987_v32  ;;  %v6591_v62 = vpop.f32.mrb[217].mxu1 }
0x135c   :  { %v6592_v18 = vadd.f32 %v6987_v32, %v6591_v62 }
0x135d   :  { %6671 = vst [vmem:[%s12423_s27 + $0x8] sm:$0xff] %v6597_v61 }
0x135e   :  { %6670 = vst [vmem:[%s12423_s27] sm:$0xff] %v6592_v18  ;;  %v9009_v51 = vpop.f32.mrb[218].mxu1 }
0x135f   :  { %v6607_v12 = vadd.f32 %v9009_v51, %v6987_v32  ;;  %v6601_v20 = vpop.f32.mrb[219].mxu1 }
0x1360   :  { %v6602_v38 = vadd.f32 %v6987_v32, %v6601_v20 }
0x1361   :  { %6673 = vst [vmem:[%s12423_s27 + $0x18] sm:$0xff] %v6607_v12 }
0x1362   :  { %6672 = vst [vmem:[%s12423_s27 + $0x10] sm:$0xff] %v6602_v38  ;;  %v9012_v28 = vpop.f32.mrb[220].mxu1 }
0x1363   :  { %v6617_v6 = vadd.f32 %v9012_v28, %v6987_v32  ;;  %v6611_v37 = vpop.f32.mrb[221].mxu1 }
0x1364   :  { %v6612_v1 = vadd.f32 %v6987_v32, %v6611_v37 }
0x1365   :  { %6675 = vst [vmem:[%s12423_s27 + $0x28] sm:$0xff] %v6617_v6 }
0x1366   :  { %6674 = vst [vmem:[%s12423_s27 + $0x20] sm:$0xff] %v6612_v1  ;;  %v9015_v2 = vpop.f32.mrb[222].mxu1 }
0x1367   :  { %v6627_v48 = vadd.f32 %v9015_v2, %v6987_v32  ;;  %v6621_v35 = vpop.f32.mrb[223].mxu1 }
0x1368   :  { %v6622_v41 = vadd.f32 %v6987_v32, %v6621_v35 }
0x1369   :  { %6677 = vst [vmem:[%s12423_s27 + $0x38] sm:$0xff] %v6627_v48 }
0x136a   :  { %6676 = vst [vmem:[%s12423_s27 + $0x30] sm:$0xff] %v6622_v41  ;;  %v9018_v43 = vpop.f32.mrb[224].mxu1 }
0x136b   :  { %v6637_v40 = vadd.f32 %v9018_v43, %v6987_v32  ;;  %v6631_v30 = vpop.f32.mrb[225].mxu1 }
0x136c   :  { %v6632_v10 = vadd.f32 %v6987_v32, %v6631_v30 }
0x136d   :  { %6679 = vst [vmem:[%s12423_s27 + $0x48] sm:$0xff] %v6637_v40 }
0x136e   :  { %6678 = vst [vmem:[%s12423_s27 + $0x40] sm:$0xff] %v6632_v10  ;;  %v9021_v21 = vpop.f32.mrb[226].mxu1 }
0x136f   :  { %v6647_v45 = vadd.f32 %v9021_v21, %v6987_v32  ;;  %v6641_v59 = vpop.f32.mrb[227].mxu1 }
0x1370   :  { %v6642_v47 = vadd.f32 %v6987_v32, %v6641_v59 }
0x1371   :  { %6681 = vst [vmem:[%s12423_s27 + $0x58] sm:$0xff] %v6647_v45 }
0x1372   :  { %6680 = vst [vmem:[%s12423_s27 + $0x50] sm:$0xff] %v6642_v47  ;;  %v9024_v26 = vpop.f32.mrb[228].mxu1 }
0x1373   :  { %v6657_v63 = vadd.f32 %v9024_v26, %v6987_v32  ;;  %v6651_v15 = vpop.f32.mrb[229].mxu1 }
0x1374   :  { %v6652_v53 = vadd.f32 %v6987_v32, %v6651_v15 }
0x1375   :  { %6683 = vst [vmem:[%s12423_s27 + $0x68] sm:$0xff] %v6657_v63 }
0x1376   :  { %6682 = vst [vmem:[%s12423_s27 + $0x60] sm:$0xff] %v6652_v53  ;;  %v9027_v22 = vpop.f32.mrb[230].mxu1 }
0x1377   :  { %v6667_v8 = vadd.f32 %v9027_v22, %v6987_v32  ;;  %v6661_v49 = vpop.f32.mrb[231].mxu1 }
0x1378   :  { %v6662_v3 = vadd.f32 %v6987_v32, %v6661_v49 }
0x1379   :  { %6685 = vst [vmem:[%s12423_s27 + $0x78] sm:$0xff] %v6667_v8 }
0x137a   :  { %6684 = vst [vmem:[%s12423_s27 + $0x70] sm:$0xff] %v6662_v3 }

</bundles_post_ra>
